<compile_context>
chip_gen: v7x
topology: tpu7x:2x2x1
jax: 0.10.0
libtpu: 0.0.40
codegen_flags: <defaults>
</compile_context>

<pallas_src>
import jax
import jax.numpy as jnp
from jax.experimental import pallas as pl
from jax.experimental.pallas import tpu as pltpu


# --------------------------------------------------------------------------- #
# Helpers
# --------------------------------------------------------------------------- #
def _normalize_gamma(gamma):
    """Return int(gamma) when gamma is a non-negative integral value, else None."""
    try:
        gf = float(gamma)
    except (TypeError, ValueError):
        return None
    if gf >= 0.0 and gf == int(gf):
        return int(gf)
    return None


def _default_tile_budget_bytes():
    """Per-input-tile byte budget (counted as f32), by TPU generation.

    Mem-bound elementwise kernel -> few fat grid steps.  v5e's slower HBM and
    smaller scoped-VMEM default want a smaller tile; v6e/v7x want big tiles so
    the ~0.35us per-grid-step overhead is amortized.
    """
    try:
        kind = jax.devices()[0].device_kind.lower()
    except Exception:
        kind = ""
    if "v5 lite" in kind or "v5e" in kind or "v5lite" in kind:
        return 512 * 1024
    return 4 * 1024 * 1024


def _vmem_limit_bytes(working_set_bytes):
    # working set + headroom, at least the 32 MiB default, never above v7x's
    # 64 MiB physical VMEM.
    return int(min(max(working_set_bytes + (4 << 20), 32 << 20), 64 << 20))


def _choose_layout(inputs, targets, pw, C, N):
    """Pick a lane-dense 2-D (rows, lanes) layout. Returns (x2, t2, pw_row, L)."""
    if pw.size == 1 and C % 128 != 0:
        # Scalar pos_weight: free to re-pack to any lane width that divides N.
        for L in (2048, 1024, 512, 256, 128):
            if N % L == 0:
                x2 = inputs.reshape(-1, L)
                t2 = targets.reshape(-1, L)
                return x2, t2, jnp.broadcast_to(pw.reshape(1, 1), (1, L)), L
    # Default: class axis last (required when pos_weight is per-class).
    # TODO(synk): per-class pos_weight with C % 128 != 0 keeps masked vst lanes.
    x2 = inputs.reshape(-1, C)
    t2 = targets.reshape(-1, C)
    return x2, t2, jnp.broadcast_to(pw, (C,)).reshape(1, C), C


# --------------------------------------------------------------------------- #
# Kernel math
# --------------------------------------------------------------------------- #
def _focal_elementwise(x, t, pw, gamma_int, gamma, alpha):
    """Per-element focal loss. x, t: (TM, L) f32; pw: (1, L) f32 (pos_weight)."""
    # Numerically stable pieces (matches BCEWithLogits):
    #   log sigma(x)     = min(x, 0)  - log(1 + exp(-|x|))
    #   log (1-sigma(x)) = min(-x, 0) - log(1 + exp(-|x|))
    e = jnp.exp(-jnp.abs(x))                     # exp(-|x|) in (0, 1]
    log1pexp = jnp.log(1.0 + e)
    log_p = jnp.minimum(x, 0.0) - log1pexp       # log sigma(x)
    log_1mp = jnp.minimum(-x, 0.0) - log1pexp    # log (1 - sigma(x))

    # binary_cross_entropy_with_logits(..., pos_weight=nfreqs, reduction='none')
    ce = -(pw * t * log_p + (1.0 - t) * log_1mp)

    # sigmoid(x) rebuilt from e (saves one EUP exp vs exp(log_p)).
    inv = 1.0 / (1.0 + e)
    p = jnp.where(x >= 0.0, inv, e * inv)

    p_t = p * t + (1.0 - p) * (1.0 - t)
    omp = 1.0 - p_t

    if gamma_int is not None:
        mod = jnp.ones_like(omp)
        for _ in range(gamma_int):               # static unroll; gamma=2 -> omp*omp
            mod = mod * omp
    else:
        mod = jnp.power(jnp.maximum(omp, 0.0), gamma)

    loss = ce * mod
    if alpha >= 0:
        alpha_t = alpha * t + (1.0 - alpha) * (1.0 - t)
        loss = alpha_t * loss
    return loss


def _make_elem_kernel(gamma_int, gamma, alpha):
    def kernel(x_ref, t_ref, w_ref, o_ref):
        x = x_ref[...].astype(jnp.float32)       # cast in VMEM, not in the wrapper
        t = t_ref[...].astype(jnp.float32)
        loss = _focal_elementwise(x, t, w_ref[...], gamma_int, gamma, alpha)
        o_ref[...] = loss.astype(o_ref.dtype)
    return kernel


def _make_reduce_kernel(gamma_int, gamma, alpha, n_rows, tm, n_inner):
    def kernel(x_ref, t_ref, w_ref, out_ref):
        p_id = pl.program_id(0)                  # stripe ('parallel')
        i = pl.program_id(1)                     # inner ('arbitrary')

        @pl.when(i == 0)
        def _init():
            out_ref[...] = jnp.zeros_like(out_ref)

        x = x_ref[...].astype(jnp.float32)
        t = t_ref[...].astype(jnp.float32)
        loss = _focal_elementwise(x, t, w_ref[...], gamma_int, gamma, alpha)

        # Mask ragged rows of the last block and any extra (clamped) grid steps
        # using the *logical* row index derived from the program ids.
        blk = p_id * n_inner + i
        row = blk * tm + jax.lax.broadcasted_iota(jnp.int32, loss.shape, 0)
        loss = jnp.where(row < n_rows, loss, 0.0)

        out_ref[...] += jnp.sum(loss, axis=0, keepdims=True)   # (1, L) partial sum
    return kernel


# --------------------------------------------------------------------------- #
# Wrapper
# --------------------------------------------------------------------------- #
def focal_loss(inputs, targets, nfreqs, gamma=2, alpha=0.25,
               reduction='mean', tile_budget_bytes=None):
    """Pallas-TPU FocalLoss forward.

    inputs, targets: same arbitrary shape, class axis last.
    nfreqs: pos_weight, scalar or (C,) broadcast over the last axis.
    """
    if reduction not in ('none', 'mean', 'sum'):
        raise ValueError(
            f"Invalid Value for arg 'reduction': '{reduction}' "
            "\n Supported reduction modes: 'none', 'mean', 'sum'")
    if targets.shape != inputs.shape:
        raise ValueError("inputs and targets must have the same shape")

    orig_shape = inputs.shape
    C = int(orig_shape[-1])
    N = 1
    for d in orig_shape:
        N *= int(d)

    pw = jnp.asarray(nfreqs, jnp.float32).reshape(-1)
    x2, t2, pw_row, L = _choose_layout(inputs, targets, pw, C, N)
    R = x2.shape[0]

    gamma_int = _normalize_gamma(gamma)

    # Byte-budget row tiling (multiple of 8 rows, or full extent when small).
    budget = int(tile_budget_bytes) if tile_budget_bytes else _default_tile_budget_bytes()
    tm_budget = max(8, (budget // (L * 4)) // 8 * 8)
    if tm_budget >= R:
        tm = R                       # single full-extent block (always legal)
        n_blocks = 1
    else:
        tm = tm_budget
        n_blocks = -(-R // tm)       # cdiv; ragged last block handled in-kernel

    xb = x2.dtype.itemsize
    tb = t2.dtype.itemsize

    if reduction == 'none':
        out_dtype = x2.dtype
        ob = jnp.dtype(out_dtype).itemsize
        ws = 2 * tm * L * (xb + tb + ob) + 2 * L * 4
        out = pl.pallas_call(
            _make_elem_kernel(gamma_int, gamma, alpha),
            out_shape=jax.ShapeDtypeStruct((R, L), out_dtype),
            grid=(n_blocks,),
            in_specs=[
                pl.BlockSpec((tm, L), lambda i: (i, 0)),
                pl.BlockSpec((tm, L), lambda i: (i, 0)),
                pl.BlockSpec((1, L), lambda i: (0, 0)),
            ],
            out_specs=pl.BlockSpec((tm, L), lambda i: (i, 0)),
            compiler_params=pltpu.CompilerParams(
                dimension_semantics=("parallel",),
                vmem_limit_bytes=_vmem_limit_bytes(ws)),
        )(x2, t2, pw_row)
        return out.reshape(orig_shape)

    # 'mean' / 'sum': (P, L) partial sums, P stripes run in parallel (v7x 2 TCs).
    P = 2 if n_blocks >= 2 else 1
    n_inner = -(-n_blocks // P)

    def in_idx(p, i):
        # Clamp so reads of any "extra" grid step (P*n_inner > n_blocks) stay
        # in bounds; the kernel's logical-row mask zeroes their contribution.
        return (jnp.minimum(p * n_inner + i, n_blocks - 1), 0)

    ws = 2 * tm * L * (xb + tb) + 4 * L * 4
    partial = pl.pallas_call(
        _make_reduce_kernel(gamma_int, gamma, alpha, R, tm, n_inner),
        out_shape=jax.ShapeDtypeStruct((P, L), jnp.float32),
        grid=(P, n_inner),
        in_specs=[
            pl.BlockSpec((tm, L), in_idx),
            pl.BlockSpec((tm, L), in_idx),
            pl.BlockSpec((1, L), lambda p, i: (0, 0)),
        ],
        out_specs=pl.BlockSpec((1, L), lambda p, i: (p, 0)),
        compiler_params=pltpu.CompilerParams(
            dimension_semantics=("parallel", "arbitrary"),
            vmem_limit_bytes=_vmem_limit_bytes(ws)),
    )(x2, t2, pw_row)

    total = jnp.sum(partial)
    if reduction == 'sum':
        return total
    return total / N


# --------------------------------------------------------------------------- #
# Pure-JAX reference (mirrors the PyTorch FocalLoss.forward)
# --------------------------------------------------------------------------- #
def focal_loss_ref(inputs, targets, nfreqs, gamma=2, alpha=0.25, reduction='mean'):
    x = inputs.astype(jnp.float32)
    t = targets.astype(jnp.float32)
    pw = jnp.asarray(nfreqs, jnp.float32)
    p = jax.nn.sigmoid(x)
    ce = -(pw * t * jax.nn.log_sigmoid(x) + (1.0 - t) * jax.nn.log_sigmoid(-x))
    p_t = p * t + (1.0 - p) * (1.0 - t)
    loss = ce * (1.0 - p_t) ** gamma
    if alpha >= 0:
        alpha_t = alpha * t + (1.0 - alpha) * (1.0 - t)
        loss = alpha_t * loss
    if reduction == 'mean':
        return loss.mean()
    if reduction == 'sum':
        return loss.sum()
    return loss


# --------------------------------------------------------------------------- #
# Demo / self-test
# --------------------------------------------------------------------------- #
if __name__ == "__main__":
    key = jax.random.PRNGKey(0)
    k1, k2, k3, k4, k5 = jax.random.split(key, 5)

    # Case 1: per-class pos_weight, lane-dense C=128. (batch=2, seq=150, C=128)
    B, S, C = 2, 150, 128
    inputs = jax.random.normal(k1, (B, S, C), jnp.float32) * 2.0
    targets = (jax.random.uniform(k2, (B, S, C)) < 0.3).astype(jnp.float32)
    nfreqs = jax.random.uniform(k3, (C,), jnp.float32, minval=0.5, maxval=4.0)

    for red in ("mean", "sum", "none"):
        out = focal_loss(inputs, targets, nfreqs, gamma=2, alpha=0.25, reduction=red)
        jax.block_until_ready(out)
        ref = focal_loss_ref(inputs, targets, nfreqs, gamma=2, alpha=0.25, reduction=red)
        assert out.shape == ref.shape, f"{red}: shape mismatch (case 1)"
        assert jnp.allclose(out, ref, atol=1e-5, rtol=1e-4), f"{red} mismatch (case 1)"

    # Case 1b: tiny tile budget -> multi-block grid, ragged last tile, and the
    # two-stripe 'parallel' reduction path (incl. one masked extra grid step).
    for red in ("mean", "none"):
        out = focal_loss(inputs, targets, nfreqs, gamma=2, alpha=0.25, reduction=red,
                         tile_budget_bytes=64 * 1024)
        jax.block_until_ready(out)
        ref = focal_loss_ref(inputs, targets, nfreqs, gamma=2, alpha=0.25, reduction=red)
        assert jnp.allclose(out, ref, atol=1e-5, rtol=1e-4), f"{red} mismatch (case 1b)"

    # Case 2: scalar pos_weight with a non-128-multiple class axis (C=96);
    # the wrapper re-packs to a lane-dense (rows, 256) layout.  gamma=2.0
    # (float) exercises the integral-gamma normalization.
    B2, S2, C2 = 2, 20, 96
    inputs2 = jax.random.normal(k4, (B2, S2, C2), jnp.float32)
    targets2 = (jax.random.uniform(k5, (B2, S2, C2)) < 0.5).astype(jnp.float32)
    nfreqs2 = 1.7
    for red in ("mean", "none"):
        out = focal_loss(inputs2, targets2, nfreqs2, gamma=2.0, alpha=0.25, reduction=red)
        jax.block_until_ready(out)
        ref = focal_loss_ref(inputs2, targets2, nfreqs2, gamma=2.0, alpha=0.25, reduction=red)
        assert out.shape == ref.shape, f"{red}: shape mismatch (case 2)"
        assert jnp.allclose(out, ref, atol=1e-5, rtol=1e-4), f"{red} mismatch (case 2)"

    print("KERNEL_OK")
</pallas_src>

<mosaic_0001>
module attributes {stable_mosaic.version = 11 : i64} {
  func.func @kernel(%arg0: i32, %arg1: i32, %arg2: memref<300x128xf32, #tpu.memory_space<vmem>>, %arg3: memref<300x128xf32, #tpu.memory_space<vmem>>, %arg4: memref<1x128xf32, #tpu.memory_space<vmem>>, %arg5: memref<1x128xf32, #tpu.memory_space<vmem>>) attributes {dimension_semantics = [#tpu.dimension_semantics<parallel>, #tpu.dimension_semantics<arbitrary>], iteration_bounds = array<i64: 1, 1>, scalar_prefetch = 0 : i64, scratch_operands = 0 : i64, tpu.core_type = #tpu.core_type<tc>, window_params = [{transform_indices = @transform_0, window_bounds = array<i64: 300, 128>}, {transform_indices = @transform_1, window_bounds = array<i64: 300, 128>}, {pipeline_mode = #tpu.pipeline_mode<synchronous>, transform_indices = @transform_2, window_bounds = array<i64: 1, 128>}, {transform_indices = @transform_3, window_bounds = array<i64: 1, 128>}]} {
    %c0_i32 = arith.constant 0 : i32
    %0 = arith.cmpi eq, %arg1, %c0_i32 : i32
    %1 = arith.extui %0 : i1 to i32
    %c0_i32_0 = arith.constant 0 : i32
    %2 = arith.cmpi ne, %1, %c0_i32_0 : i32
    scf.if %2 {
      %cst_29 = arith.constant 0.000000e+00 : f32
      %74 = vector.broadcast %cst_29 : f32 to vector<1x128xf32>
      %c0_30 = arith.constant 0 : index
      %c0_31 = arith.constant 0 : index
      %75 = vector.load %arg5[%c0_30, %c0_31] : memref<1x128xf32, #tpu.memory_space<vmem>>, vector<1x128xf32>
      tpu.vector_store %arg5[%c0_30, %c0_31], %74 {strides = array<i32>} : memref<1x128xf32, #tpu.memory_space<vmem>>, vector<1x128xf32>,
    } else {
    }
    %c0 = arith.constant 0 : index
    %c0_1 = arith.constant 0 : index
    %3 = vector.load %arg2[%c0, %c0_1] : memref<300x128xf32, #tpu.memory_space<vmem>>, vector<300x128xf32>
    %c0_2 = arith.constant 0 : index
    %c0_3 = arith.constant 0 : index
    %4 = vector.load %arg3[%c0_2, %c0_3] : memref<300x128xf32, #tpu.memory_space<vmem>>, vector<300x128xf32>
    %c0_4 = arith.constant 0 : index
    %c0_5 = arith.constant 0 : index
    %5 = vector.load %arg4[%c0_4, %c0_5] : memref<1x128xf32, #tpu.memory_space<vmem>>, vector<1x128xf32>
    %6 = math.absf %3 : vector<300x128xf32>
    %cst = arith.constant 0.000000e+00 : f32
    %7 = vector.broadcast %cst : f32 to vector<300x128xf32>
    %8 = arith.subf %7, %6 : vector<300x128xf32>
    %9 = math.exp %8 : vector<300x128xf32>
    %cst_6 = arith.constant 1.000000e+00 : f32
    %10 = vector.broadcast %cst_6 : f32 to vector<300x128xf32>
    %11 = arith.addf %10, %9 : vector<300x128xf32>
    %12 = math.log %11 : vector<300x128xf32>
    %cst_7 = arith.constant 0.000000e+00 : f32
    %13 = vector.broadcast %cst_7 : f32 to vector<300x128xf32>
    %14 = arith.minimumf %3, %13 : vector<300x128xf32>
    %15 = arith.subf %14, %12 : vector<300x128xf32>
    %cst_8 = arith.constant 0.000000e+00 : f32
    %16 = vector.broadcast %cst_8 : f32 to vector<300x128xf32>
    %17 = arith.subf %16, %3 : vector<300x128xf32>
    %cst_9 = arith.constant 0.000000e+00 : f32
    %18 = vector.broadcast %cst_9 : f32 to vector<300x128xf32>
    %19 = arith.minimumf %17, %18 : vector<300x128xf32>
    %20 = arith.subf %19, %12 : vector<300x128xf32>
    %21 = vector.broadcast %5 : vector<1x128xf32> to vector<300x128xf32>
    %22 = arith.mulf %21, %4 : vector<300x128xf32>
    %23 = arith.mulf %22, %15 : vector<300x128xf32>
    %cst_10 = arith.constant 1.000000e+00 : f32
    %24 = vector.broadcast %cst_10 : f32 to vector<300x128xf32>
    %25 = arith.subf %24, %4 : vector<300x128xf32>
    %26 = arith.mulf %25, %20 : vector<300x128xf32>
    %27 = arith.addf %23, %26 : vector<300x128xf32>
    %cst_11 = arith.constant 0.000000e+00 : f32
    %28 = vector.broadcast %cst_11 : f32 to vector<300x128xf32>
    %29 = arith.subf %28, %27 : vector<300x128xf32>
    %cst_12 = arith.constant 1.000000e+00 : f32
    %30 = vector.broadcast %cst_12 : f32 to vector<300x128xf32>
    %31 = arith.addf %30, %9 : vector<300x128xf32>
    %cst_13 = arith.constant 1.000000e+00 : f32
    %32 = vector.broadcast %cst_13 : f32 to vector<300x128xf32>
    %33 = arith.divf %32, %31 : vector<300x128xf32>
    %cst_14 = arith.constant 0.000000e+00 : f32
    %34 = vector.broadcast %cst_14 : f32 to vector<300x128xf32>
    %35 = arith.cmpf oge, %3, %34 : vector<300x128xf32>
    %36 = arith.mulf %9, %33 : vector<300x128xf32>
    %37 = arith.select %35, %33, %36 : vector<300x128xi1>, vector<300x128xf32>
    %38 = arith.mulf %37, %4 : vector<300x128xf32>
    %cst_15 = arith.constant 1.000000e+00 : f32
    %39 = vector.broadcast %cst_15 : f32 to vector<300x128xf32>
    %40 = arith.subf %39, %37 : vector<300x128xf32>
    %cst_16 = arith.constant 1.000000e+00 : f32
    %41 = vector.broadcast %cst_16 : f32 to vector<300x128xf32>
    %42 = arith.subf %41, %4 : vector<300x128xf32>
    %43 = arith.mulf %40, %42 : vector<300x128xf32>
    %44 = arith.addf %38, %43 : vector<300x128xf32>
    %cst_17 = arith.constant 1.000000e+00 : f32
    %45 = vector.broadcast %cst_17 : f32 to vector<300x128xf32>
    %46 = arith.subf %45, %44 : vector<300x128xf32>
    %cst_18 = arith.constant 1.000000e+00 : f32
    %47 = vector.broadcast %cst_18 : f32 to vector<300x128xf32>
    %48 = arith.mulf %47, %46 : vector<300x128xf32>
    %49 = arith.mulf %48, %46 : vector<300x128xf32>
    %50 = arith.mulf %29, %49 : vector<300x128xf32>
    %cst_19 = arith.constant 2.500000e-01 : f32
    %51 = vector.broadcast %cst_19 : f32 to vector<300x128xf32>
    %52 = arith.mulf %51, %4 : vector<300x128xf32>
    %cst_20 = arith.constant 1.000000e+00 : f32
    %53 = vector.broadcast %cst_20 : f32 to vector<300x128xf32>
    %54 = arith.subf %53, %4 : vector<300x128xf32>
    %cst_21 = arith.constant 7.500000e-01 : f32
    %55 = vector.broadcast %cst_21 : f32 to vector<300x128xf32>
    %56 = arith.mulf %55, %54 : vector<300x128xf32>
    %57 = arith.addf %52, %56 : vector<300x128xf32>
    %58 = arith.mulf %57, %50 : vector<300x128xf32>
    %c1_i32 = arith.constant 1 : i32
    %59 = arith.muli %arg0, %c1_i32 : i32
    %60 = arith.addi %59, %arg1 : i32
    %c300_i32 = arith.constant 300 : i32
    %61 = arith.muli %60, %c300_i32 : i32
    %62 = tpu.iota {dimensions = array<i32: 0>} : vector<300x128xi32>
    %63 = vector.broadcast %61 : i32 to vector<300x128xi32>
    %64 = arith.addi %63, %62 : vector<300x128xi32>
    %c300_i32_22 = arith.constant 300 : i32
    %65 = vector.broadcast %c300_i32_22 : i32 to vector<300x128xi32>
    %66 = arith.cmpi slt, %64, %65 : vector<300x128xi32>
    %cst_23 = arith.constant 0.000000e+00 : f32
    %67 = vector.broadcast %cst_23 : f32 to vector<300x128xf32>
    %68 = arith.select %66, %58, %67 : vector<300x128xi1>, vector<300x128xf32>
    %c0_24 = arith.constant 0 : index
    %c0_25 = arith.constant 0 : index
    %69 = vector.load %arg5[%c0_24, %c0_25] : memref<1x128xf32, #tpu.memory_space<vmem>>, vector<1x128xf32>
    %cst_26 = arith.constant dense<0.000000e+00> : vector<128xf32>
    %70 = vector.multi_reduction <add>, %68, %cst_26 [0] : vector<300x128xf32> to vector<128xf32>
    %71 = vector.shape_cast %70 : vector<128xf32> to vector<1x128xf32>
    %72 = arith.addf %69, %71 : vector<1x128xf32>
    %c0_27 = arith.constant 0 : index
    %c0_28 = arith.constant 0 : index
    %73 = vector.load %arg5[%c0_27, %c0_28] : memref<1x128xf32, #tpu.memory_space<vmem>>, vector<1x128xf32>
    tpu.vector_store %arg5[%c0_27, %c0_28], %72 {strides = array<i32>} : memref<1x128xf32, #tpu.memory_space<vmem>>, vector<1x128xf32>,
    return
  }
  func.func @transform_0(%arg0: i32, %arg1: i32) -> (i32, i32) {
    %c1_i32 = arith.constant 1 : i32
    %0 = arith.muli %arg0, %c1_i32 : i32
    %1 = arith.addi %0, %arg1 : i32
    %c0_i32 = arith.constant 0 : i32
    %2 = arith.minsi %1, %c0_i32 : i32
    %c0_i32_0 = arith.constant 0 : i32
    %c0_i32_1 = arith.constant 0 : i32
    return %2, %c0_i32_0 : i32, i32
  }
  func.func @transform_1(%arg0: i32, %arg1: i32) -> (i32, i32) {
    %c1_i32 = arith.constant 1 : i32
    %0 = arith.muli %arg0, %c1_i32 : i32
    %1 = arith.addi %0, %arg1 : i32
    %c0_i32 = arith.constant 0 : i32
    %2 = arith.minsi %1, %c0_i32 : i32
    %c0_i32_0 = arith.constant 0 : i32
    %c0_i32_1 = arith.constant 0 : i32
    return %2, %c0_i32_0 : i32, i32
  }
  func.func @transform_2(%arg0: i32, %arg1: i32) -> (i32, i32) {
    %c0_i32 = arith.constant 0 : i32
    %c0_i32_0 = arith.constant 0 : i32
    %c0_i32_1 = arith.constant 0 : i32
    return %c0_i32, %c0_i32_0 : i32, i32
  }
  func.func @transform_3(%arg0: i32, %arg1: i32) -> (i32, i32) {
    %c0_i32 = arith.constant 0 : i32
    %c0_i32_0 = arith.constant 0 : i32
    return %arg0, %c0_i32 : i32, i32
  }
}

</mosaic_0001>

<bundles_post_ra>
// kernel: tpu_custom_call.1
= control target key start
LH: loop header
LB: loop body
LE: loop exit
PB: predicated region body
PF: predicated region fallthrough
CT: control target
= control target key end

     0   :  { %8 = vsyncpa [#allocation3], 0  ;;  %s4761_s0 = inlined_call_operand.hbm [shape: f32[300,128], index: 0, kind: input, shape index: {}]   ;;  %s4762_s1 = inlined_call_operand.hbm [shape: f32[300,128], index: 1, kind: input, shape index: {}]   ;;  %s4763_s2 = inlined_call_operand.vmem [shape: f32[1,128], index: 2, kind: input, shape index: {}]   ;;  %s4764_s3 = inlined_call_operand.hbm [shape: f32[1,128], index: 3, kind: output, shape index: {}]  }
   0x1   :  { %9 = vsyncpa [#allocation6], 0 }
   0x2   :  { %10 = vsyncpa [#allocation4], 0  ;;  %s2053_s12 = smov [#allocation2]   ;;  %s1981_s16 = scalar_lea.hbm %s4761_s0, 4864 }
   0x3   :  { %s22_s13 = sshll.u32 %s2053_s12, 4  ;;  %p1982_p0 = scmp.ne.s32.totalorder %s4761_s0, %s1981_s16  ;;  %s23_s13 = int_to_ptr.vmem [resolvable:$true] %s22_s13 }
   0x4   :  { %p1985_p1 = scmp.lt.u32.totalorder %s1981_s16, %s4761_s0 }
   0x6   :  { %p1987_p2 = pnand %p1985_p1, %p1982_p0 }
   0x8   :  { %1990 = shalt.err (!%p1987_p2)
}
   0x9   :  { %s1991_s21 = scalar_lea.vmem %s23_s13, 4864  ;;  %p1996_p4 = scmp.lt.s32.totalorder %s23_s13, %s23_s13 }
   0xa   :  { %p1992_p3 = scmp.ne.s32.totalorder %s23_s13, %s1991_s21  ;;  %p1997_p5 = scmp.lt.s32.totalorder %s1991_s21, %s1991_s21 }
   0xc   :  { %p1998_p6 = por %p1997_p5, %p1996_p4 }
   0xe   :  { %p1999_p7 = pnand %p1998_p6, %p1992_p3 }
  0x10   :  { %2002 = shalt.err (!%p1999_p7)
}
  0x11   :  { %s2054_s22 = smov 128   ;;  %s2055_s23 = smov 8  }
  0x12   :  { %28 = dma.hbm_to_vmem [thread:$0]  %s4761_s0, 4864, %s23_s13, [#allocation3], %s2054_s22, %s2054_s22, %s2055_s23  }
  0x13   :  { %s2056_s26 = smov [#allocation5]   ;;  %s2003_s30 = scalar_lea.hbm %s4762_s1, 4864 }
  0x14   :  { %s40_s27 = sshll.u32 %s2056_s26, 4  ;;  %p2004_p8 = scmp.ne.s32.totalorder %s4762_s1, %s2003_s30  ;;  %s41_s27 = int_to_ptr.vmem [resolvable:$true] %s40_s27 }
  0x15   :  { %p2007_p9 = scmp.lt.u32.totalorder %s2003_s30, %s4762_s1 }
  0x17   :  { %p2009_p10 = pnand %p2007_p9, %p2004_p8 }
  0x19   :  { %2012 = shalt.err (!%p2009_p10)
}
  0x1a   :  { %s2013_s8 = scalar_lea.vmem %s41_s27, 4864  ;;  %p2018_p12 = scmp.lt.s32.totalorder %s41_s27, %s41_s27 }
  0x1b   :  { %p2014_p11 = scmp.ne.s32.totalorder %s41_s27, %s2013_s8  ;;  %p2019_p13 = scmp.lt.s32.totalorder %s2013_s8, %s2013_s8 }
  0x1d   :  { %p2020_p0 = por %p2019_p13, %p2018_p12 }
  0x1f   :  { %p2021_p1 = pnand %p2020_p0, %p2014_p11 }
  0x21   :  { %2024 = shalt.err (!%p2021_p1)
}
  0x22   :  { %46 = dma.hbm_to_vmem [thread:$0]  %s4762_s1, 4864, %s41_s27, [#allocation6], %s2054_s22, %s2054_s22, %s2055_s23  }
  0x23   :  { %2047 = dma.done.wait [#allocation3], 4864  }
  0x24   :  { %2048 = vsyncadd [#allocation3], 4294962432 }
  0x25   :  { %2049 = dma.done.wait [#allocation6], 4864  }
  0x26   :  { %2050 = vsyncadd [#allocation6], 4294962432  ;;  %v2057_v0 = vmov 0.0   ;;  %v2103_v1 = vld [vmem:[#allocation2] sm:$0xff]  ;;  %v2105_v2 = vld [vmem:[#allocation2 + $0x8] sm:$0xff] }
  0x27   :  { %67 = vst [vmem:[#allocation7] sm:$0x1] %v2057_v0  ;;  %5167 = vst [vmem:[#allocation11_spill] sm:$0xff] %v2103_v1  ;;  %v2107_v3 = vld [vmem:[#allocation2 + $0x10] sm:$0xff]  ;;  %v2109_v4 = vld [vmem:[#allocation2 + $0x18] sm:$0xff] }
  0x28   :  { %5168 = vst [vmem:[#allocation12_spill] sm:$0xff] %v2105_v2  ;;  %v2111_v5 = vld [vmem:[#allocation2 + $0x20] sm:$0xff]  ;;  %v2113_v6 = vld [vmem:[#allocation2 + $0x28] sm:$0xff]  ;;  %v145_v7 = vand.u32 2147483647, %v2103_v1  ;;  %v2116_v8 = vld [vmem:[#allocation2 + $0x30] sm:$0xff] }
  0x29   :  { %v2118_v9 = vld [vmem:[#allocation2 + $0x38] sm:$0xff]  ;;  %v146_v10 = vand.u32 2147483647, %v2105_v2  ;;  %v147_v11 = vand.u32 2147483647, %v2107_v3  ;;  %v2123_v13 = vld [vmem:[#allocation2 + $0x40] sm:$0xff] }
  0x2a   :  { %v148_v12 = vand.u32 2147483647, %v2109_v4  ;;  %v2125_v14 = vld [vmem:[#allocation2 + $0x48] sm:$0xff]  ;;  %v149_v15 = vand.u32 2147483647, %v2111_v5  ;;  %v2129_v17 = vld [vmem:[#allocation2 + $0x50] sm:$0xff] }
  0x2b   :  { %v150_v16 = vand.u32 2147483647, %v2113_v6  ;;  %v2131_v18 = vld [vmem:[#allocation2 + $0x58] sm:$0xff]  ;;  %v2133_v19 = vld [vmem:[#allocation2 + $0x60] sm:$0xff]  ;;  %v2135_v20 = vld [vmem:[#allocation2 + $0x68] sm:$0xff]  ;;  %v2141_v23 = vsub.f32 0.0, %v145_v7 }
  0x2c   :  { %5169 = vst [vmem:[#allocation13_spill] sm:$0xff] %v2135_v20  ;;  %v2137_v21 = vld [vmem:[#allocation2 + $0x70] sm:$0xff]  ;;  %v2139_v22 = vld [vmem:[#allocation2 + $0x78] sm:$0xff]  ;;  %v2145_v26 = vld [vmem:[#allocation2 + $0x80] sm:$0xff]  ;;  %v2151_v29 = vsub.f32 0.0, %v146_v10  ;;  %v2153_v30 = vsub.f32 0.0, %v147_v11 }
  0x2d   :  { %5170 = vst [vmem:[#allocation14_spill] sm:$0xff] %v2137_v21  ;;  %5171 = vst [vmem:[#allocation15_spill] sm:$0xff] %v2139_v22  ;;  %v2147_v27 = vld [vmem:[#allocation2 + $0x88] sm:$0xff]  ;;  %v2149_v28 = vld [vmem:[#allocation2 + $0x90] sm:$0xff]  ;;  %v2155_v31 = vsub.f32 0.0, %v148_v12  ;;  %v2163_v36 = vsub.f32 0.0, %v149_v15 }
  0x2e   :  { %5172 = vst [vmem:[#allocation16_spill] sm:$0xff] %v2145_v26  ;;  %5173 = vst [vmem:[#allocation17_spill] sm:$0xff] %v2147_v27  ;;  %v2157_v32 = vld [vmem:[#allocation2 + $0x98] sm:$0xff]  ;;  %v2159_v33 = vld [vmem:[#allocation2 + $0xa0] sm:$0xff]  ;;  %v151_v34 = vand.u32 2147483647, %v2116_v8 }
  0x2f   :  { %5174 = vst [vmem:[#allocation18_spill] sm:$0xff] %v2149_v28  ;;  %5175 = vst [vmem:[#allocation19_spill] sm:$0xff] %v2157_v32  ;;  %v152_v35 = vand.u32 2147483647, %v2118_v9  ;;  %v2165_v37 = vsub.f32 0.0, %v150_v16  ;;  %v2170_v41 = vld [vmem:[#allocation2 + $0xa8] sm:$0xff] }
  0x30   :  { %5176 = vst [vmem:[#allocation20_spill] sm:$0xff] %v2159_v33  ;;  %v153_v38 = vand.u32 2147483647, %v2123_v13  ;;  %v154_v39 = vand.u32 2147483647, %v2125_v14  ;;  %5177 = vst [vmem:[#allocation21_spill] sm:$0xff] %v2170_v41 }
  0x31   :  { %v155_v40 = vand.u32 2147483647, %v2129_v17  ;;  %v156_v42 = vand.u32 2147483647, %v2131_v18  ;;  %v157_v43 = vand.u32 2147483647, %v2133_v19 }
  0x32   :  { %v158_v44 = vand.u32 2147483647, %v2135_v20  ;;  %v2175_v45 = vld [vmem:[#allocation2 + $0xb0] sm:$0xff]  ;;  %v159_v46 = vand.u32 2147483647, %v2137_v21  ;;  %v2180_v49 = vld [vmem:[#allocation2 + $0xb8] sm:$0xff] }
  0x33   :  { %5178 = vst [vmem:[#allocation22_spill] sm:$0xff] %v2175_v45  ;;  %v160_v47 = vand.u32 2147483647, %v2139_v22  ;;  %v161_v48 = vand.u32 2147483647, %v2145_v26  ;;  %5179 = vst [vmem:[#allocation23_spill] sm:$0xff] %v2180_v49 }
  0x34   :  { %v2182_v50 = vld [vmem:[#allocation2 + $0xc0] sm:$0xff]  ;;  %v162_v51 = vand.u32 2147483647, %v2147_v27  ;;  %v163_v52 = vand.u32 2147483647, %v2149_v28  ;;  %v2186_v53 = vsub.f32 0.0, %v151_v34 }
  0x35   :  { %5180 = vst [vmem:[#allocation24_spill] sm:$0xff] %v2182_v50  ;;  %v2188_v54 = vsub.f32 0.0, %v152_v35  ;;  %v2190_v55 = vld [vmem:[#allocation2 + $0xc8] sm:$0xff]  ;;  %v2192_v56 = vld [vmem:[#allocation2 + $0xd0] sm:$0xff]  ;;  %v2194_v57 = vld [vmem:[#allocation2 + $0xd8] sm:$0xff]  ;;  %v2198_v60 = vsub.f32 0.0, %v153_v38 }
  0x36   :  { %5181 = vst [vmem:[#allocation25_spill] sm:$0xff] %v2190_v55  ;;  %5182 = vst [vmem:[#allocation26_spill] sm:$0xff] %v2192_v56  ;;  %v164_v58 = vand.u32 2147483647, %v2157_v32  ;;  %v165_v59 = vand.u32 2147483647, %v2159_v33 }
  0x37   :  { %5183 = vst [vmem:[#allocation27_spill] sm:$0xff] %v2194_v57  ;;  %v2200_v61 = vsub.f32 0.0, %v154_v39  ;;  %v2202_v62 = vld [vmem:[#allocation2 + $0xe0] sm:$0xff]  ;;  %v2204_v63 = vld [vmem:[#allocation2 + $0xe8] sm:$0xff]  ;;  %v2206_v0 = vld [vmem:[#allocation2 + $0xf0] sm:$0xff]  ;;  %v2208_v7 = vsub.f32 0.0, %v155_v40 }
  0x38   :  { %5184 = vst [vmem:[#allocation28_spill] sm:$0xff] %v2202_v62  ;;  %5185 = vst [vmem:[#allocation29_spill] sm:$0xff] %v2204_v63  ;;  %v2210_v10 = vsub.f32 0.0, %v156_v42  ;;  %v2212_v11 = vsub.f32 0.0, %v157_v43  ;;  %v2214_v12 = vsub.f32 0.0, %v158_v44  ;;  %v2216_v15 = vld [vmem:[#allocation2 + $0xf8] sm:$0xff] }
  0x39   :  { %5186 = vst [vmem:[#allocation30_spill] sm:$0xff] %v2206_v0  ;;  %5187 = vst [vmem:[#allocation31_spill] sm:$0xff] %v2216_v15  ;;  %v2218_v16 = vld [vmem:[#allocation2 + $0x100] sm:$0xff]  ;;  %v166_v34 = vand.u32 2147483647, %v2170_v41  ;;  %v2221_v35 = vsub.f32 0.0, %v159_v46 }
  0x3a   :  { %5188 = vst [vmem:[#allocation32_spill] sm:$0xff] %v2218_v16  ;;  %v2223_v38 = vsub.f32 0.0, %v160_v47  ;;  %v2225_v39 = vsub.f32 0.0, %v161_v48  ;;  %v2227_v40 = vld [vmem:[#allocation2 + $0x108] sm:$0xff]  ;;  %v2229_v42 = vld [vmem:[#allocation2 + $0x110] sm:$0xff]  ;;  %v2237_v24 = vsub.f32 0.0, %v162_v51 }
  0x3b   :  { %5189 = vst [vmem:[#allocation33_spill] sm:$0xff] %v2227_v40  ;;  %5190 = vst [vmem:[#allocation34_spill] sm:$0xff] %v2229_v42  ;;  %v106_v43 = vld [vmem:[#allocation5] sm:$0xff]  ;;  %v2234_v44 = vld [vmem:[%s4763_s2] ss:$0 sm:$0xff]  ;;  %v2239_v46 = vsub.f32 0.0, %v163_v52 }
  0x3c   :  { %v167_v25 = vand.u32 2147483647, %v2175_v45  ;;  %v2241_v47 = vld [vmem:[#allocation2 + $0x118] sm:$0xff]  ;;  %v2243_v48 = vld [vmem:[#allocation2 + $0x120] sm:$0xff]  ;;  %v168_v1 = vand.u32 2147483647, %v2180_v49 }
  0x3d   :  { %5191 = vst [vmem:[#allocation35_spill] sm:$0xff] %v2241_v47  ;;  %5192 = vst [vmem:[#allocation36_spill] sm:$0xff] %v2243_v48  ;;  %v107_v2 = vld [vmem:[#allocation5 + $0x8] sm:$0xff]  ;;  %v169_v41 = vand.u32 2147483647, %v2182_v50  ;;  %v2247_v33 = vsub.f32 0.0, %v164_v58  ;;  %v2260_v58 = vmul.f32 %v2234_v44, %v106_v43 }
  0x3e   :  { %v2249_v32 = vsub.f32 0.0, %v165_v59  ;;  %v2251_v28 = vld [vmem:[#allocation2 + $0x128] sm:$0xf]  ;;  %v108_v45 = vld [vmem:[#allocation5 + $0x10] sm:$0xff]  ;;  %v170_v51 = vand.u32 2147483647, %v2190_v55 }
  0x3f   :  { %5193 = vst [vmem:[#allocation37_spill] sm:$0xff] %v2251_v28  ;;  %v171_v52 = vand.u32 2147483647, %v2192_v56  ;;  %v172_v27 = vand.u32 2147483647, %v2194_v57  ;;  %v109_v26 = vld [vmem:[#allocation5 + $0x18] sm:$0xff]  ;;  %v2266_v56 = vmul.f32 %v2234_v44, %v107_v2 }
  0x40   :  { %v173_v22 = vand.u32 2147483647, %v2202_v62  ;;  %v174_v49 = vand.u32 2147483647, %v2204_v63  ;;  %v175_v50 = vand.u32 2147483647, %v2206_v0  ;;  %v2272_v0 = vmul.f32 %v2234_v44, %v108_v45 }
  0x41   :  { %5194 = vst [vmem:[#allocation38_spill] sm:$0xff] %v2260_v58  ;;  %v176_v59 = vand.u32 2147483647, %v2216_v15  ;;  %v177_v21 = vand.u32 2147483647, %v2218_v16  ;;  %5195 = vst [vmem:[#allocation39_spill] sm:$0xff] %v2266_v56 }
  0x42   :  { %v221_v55 = vmul.f32 1.442695, %v2141_v23  ;;  %v178_v57 = vand.u32 2147483647, %v2227_v40  ;;  %v179_v62 = vand.u32 2147483647, %v2229_v42  ;;  %v2278_v23 = vmul.f32 %v2234_v44, %v109_v26 }
  0x43   :  { %v223_v63 = vmul.f32 1.442695, %v2151_v29  ;;  %5196 = vst [vmem:[#allocation40_spill] sm:$0xff] %v2272_v0  ;;  %v180_v43 = vand.u32 2147483647, %v2241_v47  ;;  %v204_v56 = vsub.f32 0.0, %v166_v34 }
  0x44   :  { %v181_v58 = vand.u32 2147483647, %v2243_v48  ;;  %v225_v16 = vmul.f32 1.442695, %v2153_v30  ;;  %5197 = vst [vmem:[#allocation41_spill] sm:$0xff] %v2278_v23  ;;  %v205_v40 = vsub.f32 0.0, %v167_v25  ;;  %1674 = vpow2.f32 %v221_v55 }
  0x45   :  { %v182_v2 = vand.u32 2147483647, %v2251_v28  ;;  %v227_v42 = vmul.f32 1.442695, %v2155_v31  ;;  %v206_v15 = vsub.f32 0.0, %v168_v1  ;;  %v207_v29 = vsub.f32 0.0, %v169_v41 }
  0x46   :  { %v229_v45 = vmul.f32 1.442695, %v2163_v36  ;;  %v208_v0 = vsub.f32 0.0, %v170_v51  ;;  %v209_v47 = vsub.f32 0.0, %v171_v52  ;;  %1676 = vpow2.f32 %v223_v63 }
  0x47   :  { %v231_v48 = vmul.f32 1.442695, %v2165_v37  ;;  %v210_v30 = vsub.f32 0.0, %v172_v27  ;;  %v211_v20 = vsub.f32 0.0, %v173_v22  ;;  %1678 = vpow2.f32 %v225_v16  ;;  %v110_v27 = vld [vmem:[#allocation5 + $0x20] sm:$0xff] }
  0x48   :  { %v233_v26 = vmul.f32 1.442695, %v2186_v53  ;;  %v212_v23 = vsub.f32 0.0, %v174_v49  ;;  %v213_v34 = vsub.f32 0.0, %v175_v50  ;;  %1680 = vpow2.f32 %v227_v42 }
  0x49   :  { %v235_v25 = vmul.f32 1.442695, %v2188_v54  ;;  %v214_v1 = vsub.f32 0.0, %v176_v59  ;;  %v215_v31 = vsub.f32 0.0, %v177_v21  ;;  %1682 = vpow2.f32 %v229_v45 }
  0x4a   :  { %v237_v36 = vmul.f32 1.442695, %v2198_v60  ;;  %v216_v41 = vsub.f32 0.0, %v178_v57  ;;  %v217_v55 = vsub.f32 0.0, %v179_v62  ;;  %1684 = vpow2.f32 %v231_v48 }
  0x4b   :  { %v239_v37 = vmul.f32 1.442695, %v2200_v61  ;;  %v218_v22 = vsub.f32 0.0, %v180_v43  ;;  %v219_v63 = vsub.f32 0.0, %v181_v58  ;;  %1686 = vpow2.f32 %v233_v26  ;;  %v5231_v26 = vld [vmem:[#allocation19_spill] sm:$0xff] }
  0x4c   :  { %v241_v49 = vmul.f32 1.442695, %v2208_v7  ;;  %v220_v50 = vsub.f32 0.0, %v182_v2  ;;  %1688 = vpow2.f32 %v235_v25  ;;  %v243_v53 = vmul.f32 1.442695, %v2210_v10 }
  0x4d   :  { %v2291_v21 = vmul.f32 %v2234_v44, %v110_v27  ;;  %1690 = vpow2.f32 %v237_v36  ;;  %v245_v54 = vmul.f32 1.442695, %v2212_v11  ;;  %v247_v57 = vmul.f32 1.442695, %v2214_v12  ;;  %v5227_v36 = vld [vmem:[#allocation17_spill] sm:$0xff] }
  0x4e   :  { %v249_v60 = vmul.f32 1.442695, %v2221_v35  ;;  %1692 = vpow2.f32 %v239_v37  ;;  %v251_v61 = vmul.f32 1.442695, %v2223_v38  ;;  %v253_v62 = vmul.f32 1.442695, %v2225_v39  ;;  %v2299_v16 = vpop.eup %1674 }
  0x4f   :  { %5198 = vst [vmem:[#allocation42_spill] sm:$0xff] %v2291_v21  ;;  %v255_v7 = vmul.f32 1.442695, %v2237_v24  ;;  %5199 = vst [vmem:[#allocation43_spill] sm:$0xff] %v2299_v16  ;;  %1694 = vpow2.f32 %v241_v49  ;;  %v257_v10 = vmul.f32 1.442695, %v2239_v46 }
  0x50   :  { %v259_v42 = vmul.f32 1.442695, %v2247_v33  ;;  %v261_v11 = vmul.f32 1.442695, %v2249_v32  ;;  %v2304_v44 = vpop.eup %1676  ;;  %1696 = vpow2.f32 %v243_v53  ;;  %v263_v12 = vmul.f32 1.442695, %v204_v56 }
  0x51   :  { %5200 = vst [vmem:[#allocation44_spill] sm:$0xff] %v2304_v44  ;;  %v265_v35 = vmul.f32 1.442695, %v205_v40  ;;  %v267_v48 = vmul.f32 1.442695, %v206_v15  ;;  %v2306_v38 = vpop.eup %1678  ;;  %1698 = vpow2.f32 %v245_v54  ;;  %v5223_v49 = vld [vmem:[#allocation15_spill] sm:$0xff] }
  0x52   :  { %5201 = vst [vmem:[#allocation45_spill] sm:$0xff] %v2306_v38  ;;  %v269_v39 = vmul.f32 1.442695, %v207_v29  ;;  %v271_v24 = vmul.f32 1.442695, %v208_v0  ;;  %v2310_v52 = vpop.eup %1680  ;;  %1700 = vpow2.f32 %v247_v57  ;;  %v2341_v29 = vadd.f32 1.0, %v2299_v16 }
  0x53   :  { %v2308_v51 = vmul.f32 1.442695, %v209_v47  ;;  %5202 = vst [vmem:[#allocation46_spill] sm:$0xff] %v2310_v52  ;;  %v2312_v46 = vmul.f32 1.442695, %v210_v30  ;;  %v2318_v58 = vpop.eup %1682  ;;  %1702 = vpow2.f32 %v249_v60  ;;  %v2346_v30 = vadd.f32 1.0, %v2304_v44 }
  0x54   :  { %v2314_v33 = vmul.f32 1.442695, %v211_v20  ;;  %v2316_v32 = vmul.f32 1.442695, %v212_v23  ;;  %5203 = vst [vmem:[#allocation47_spill] sm:$0xff] %v2318_v58  ;;  %v2326_v0 = vpop.eup %1684  ;;  %1704 = vpow2.f32 %v251_v61  ;;  %5206 = vst [vmem:[#allocation50_spill] sm:$0xff] %v2341_v29 }
  0x55   :  { %v2320_v56 = vmul.f32 1.442695, %v213_v34  ;;  %v2322_v15 = vmul.f32 1.442695, %v214_v1  ;;  %v2324_v40 = vmul.f32 1.442695, %v215_v31  ;;  %v2334_v43 = vpop.eup %1686  ;;  %1706 = vpow2.f32 %v253_v62 }
  0x56   :  { %5204 = vst [vmem:[#allocation48_spill] sm:$0xff] %v2326_v0  ;;  %v2328_v47 = vmul.f32 1.442695, %v216_v41  ;;  %v2330_v59 = vmul.f32 1.442695, %v217_v55  ;;  %5205 = vst [vmem:[#allocation49_spill] sm:$0xff] %v2334_v43  ;;  %v2343_v45 = vpop.eup %1688  ;;  %1708 = vpow2.f32 %v255_v7 }
  0x57   :  { %v2332_v20 = vmul.f32 1.442695, %v218_v22  ;;  %v2336_v23 = vmul.f32 1.442695, %v219_v63  ;;  %v2338_v2 = vmul.f32 1.442695, %v220_v50  ;;  %v2350_v25 = vpop.eup %1690  ;;  %1710 = vpow2.f32 %v257_v10 }
  0x58   :  { %5207 = vst [vmem:[#allocation51_spill] sm:$0xff] %v2343_v45  ;;  %5208 = vst [vmem:[#allocation52_spill] sm:$0xff] %v2346_v30  ;;  %v2353_v1 = vadd.f32 1.0, %v2306_v38  ;;  %v2357_v41 = vpop.eup %1692  ;;  %1712 = vpow2.f32 %v259_v42  ;;  %v2360_v55 = vadd.f32 1.0, %v2310_v52  ;;  %v2367_v63 = vadd.f32 1.0, %v2318_v58  ;;  %v5219_v10 = vld [vmem:[#allocation13_spill] sm:$0xff] }
  0x59   :  { %5209 = vst [vmem:[#allocation53_spill] sm:$0xff] %v2350_v25  ;;  %5211 = vst [vmem:[#allocation55_spill] sm:$0xff] %v2357_v41  ;;  %v2364_v22 = vpop.eup %1694  ;;  %1714 = vpow2.f32 %v261_v11  ;;  %v2374_v54 = vadd.f32 1.0, %v2326_v0  ;;  %v2381_v62 = vadd.f32 1.0, %v2334_v43  ;;  %v5222_v50 = vld [vmem:[#allocation14_spill] sm:$0xff]  ;;  %v5226_v37 = vld [vmem:[#allocation16_spill] sm:$0xff] }
  0x5a   :  { %5210 = vst [vmem:[#allocation54_spill] sm:$0xff] %v2353_v1  ;;  %5212 = vst [vmem:[#allocation56_spill] sm:$0xff] %v2360_v55  ;;  %v2371_v53 = vpop.eup %1696  ;;  %1716 = vpow2.f32 %v263_v12  ;;  %v2388_v12 = vadd.f32 1.0, %v2343_v45  ;;  %v5230_v34 = vld [vmem:[#allocation18_spill] sm:$0xff]  ;;  %v5234_v7 = vld [vmem:[#allocation20_spill] sm:$0xff] }
  0x5b   :  { %5213 = vst [vmem:[#allocation57_spill] sm:$0xff] %v2364_v22  ;;  %5214 = vst [vmem:[#allocation58_spill] sm:$0xff] %v2367_v63  ;;  %v2378_v61 = vpop.eup %1698  ;;  %1718 = vpow2.f32 %v265_v35  ;;  %v2395_v35 = vadd.f32 1.0, %v2350_v25  ;;  %v5235_v42 = vld [vmem:[#allocation21_spill] sm:$0xff]  ;;  %v5250_v43 = vld [vmem:[#allocation28_spill] sm:$0xff] }
  0x5c   :  { %5215 = vst [vmem:[#allocation59_spill] sm:$0xff] %v2371_v53  ;;  %5216 = vst [vmem:[#allocation60_spill] sm:$0xff] %v2374_v54  ;;  %v2385_v11 = vpop.eup %1700  ;;  %1720 = vpow2.f32 %v267_v48  ;;  %v2402_v48 = vadd.f32 1.0, %v2357_v41  ;;  %v5258_v38 = vld [vmem:[#allocation32_spill] sm:$0xff]  ;;  %v5262_v16 = vld [vmem:[#allocation34_spill] sm:$0xff] }
  0x5d   :  { %5217 = vst [vmem:[#allocation61_spill] sm:$0xff] %v2378_v61  ;;  %5218 = vst [vmem:[#allocation62_spill] sm:$0xff] %v2381_v62  ;;  %v2392_v27 = vpop.eup %1702  ;;  %1722 = vpow2.f32 %v269_v39  ;;  %v2410_v39 = vadd.f32 1.0, %v2364_v22 }
  0x5e   :  { %5220 = vst [vmem:[#allocation13_spill] sm:$0xff] %v2385_v11  ;;  %5221 = vst [vmem:[#allocation63_spill] sm:$0xff] %v2388_v12  ;;  %v2399_v31 = vpop.eup %1704  ;;  %1724 = vpow2.f32 %v271_v24  ;;  %v2418_v24 = vadd.f32 1.0, %v2371_v53 }
  0x5f   :  { %5224 = vst [vmem:[#allocation14_spill] sm:$0xff] %v2392_v27  ;;  %5225 = vst [vmem:[#allocation15_spill] sm:$0xff] %v2395_v35  ;;  %v2406_v45 = vpop.eup %1706  ;;  %1726 = vpow2.f32 %v2308_v51  ;;  %v2426_v51 = vadd.f32 1.0, %v2378_v61 }
  0x60   :  { %5228 = vst [vmem:[#allocation16_spill] sm:$0xff] %v2399_v31  ;;  %5229 = vst [vmem:[#allocation17_spill] sm:$0xff] %v2402_v48  ;;  %v2414_v0 = vpop.eup %1708  ;;  %1728 = vpow2.f32 %v2312_v46  ;;  %v2434_v46 = vadd.f32 1.0, %v2385_v11 }
  0x61   :  { %5232 = vst [vmem:[#allocation18_spill] sm:$0xff] %v2406_v45  ;;  %5233 = vst [vmem:[#allocation19_spill] sm:$0xff] %v2410_v39  ;;  %v2422_v52 = vpop.eup %1710  ;;  %1730 = vpow2.f32 %v2314_v33  ;;  %v2442_v33 = vadd.f32 1.0, %v2392_v27 }
  0x62   :  { %5236 = vst [vmem:[#allocation20_spill] sm:$0xff] %v2414_v0  ;;  %5237 = vst [vmem:[#allocation21_spill] sm:$0xff] %v2418_v24  ;;  %v2430_v44 = vpop.eup %1712  ;;  %1732 = vpow2.f32 %v2316_v32  ;;  %v2450_v32 = vadd.f32 1.0, %v2399_v31 }
  0x63   :  { %5240 = vst [vmem:[#allocation64_spill] sm:$0xff] %v2422_v52  ;;  %5241 = vst [vmem:[#allocation65_spill] sm:$0xff] %v2426_v51  ;;  %v2438_v21 = vpop.eup %1714  ;;  %1734 = vpow2.f32 %v2320_v56  ;;  %v2458_v56 = vadd.f32 1.0, %v2406_v45 }
  0x64   :  { %5244 = vst [vmem:[#allocation66_spill] sm:$0xff] %v2430_v44  ;;  %5245 = vst [vmem:[#allocation67_spill] sm:$0xff] %v2434_v46  ;;  %v2446_v24 = vpop.eup %1716  ;;  %1736 = vpow2.f32 %v2322_v15  ;;  %v2466_v15 = vadd.f32 1.0, %v2414_v0  ;;  %v5269_v46 = vld [vmem:[#allocation11_spill] sm:$0xff]  ;;  %v5270_v0 = vld [vmem:[#allocation12_spill] sm:$0xff] }
  0x65   :  { %5248 = vst [vmem:[#allocation68_spill] sm:$0xff] %v2438_v21  ;;  %5249 = vst [vmem:[#allocation69_spill] sm:$0xff] %v2442_v33  ;;  %v2454_v53 = vpop.eup %1718  ;;  %1738 = vpow2.f32 %v2324_v40  ;;  %v2474_v40 = vadd.f32 1.0, %v2422_v52 }
  0x66   :  { %5252 = vst [vmem:[#allocation28_spill] sm:$0xff] %v2446_v24  ;;  %5253 = vst [vmem:[#allocation70_spill] sm:$0xff] %v2450_v32  ;;  %v2462_v61 = vpop.eup %1720  ;;  %1740 = vpow2.f32 %v2328_v47  ;;  %v2482_v47 = vadd.f32 1.0, %v2430_v44 }
  0x67   :  { %5256 = vst [vmem:[#allocation71_spill] sm:$0xff] %v2454_v53  ;;  %5257 = vst [vmem:[#allocation72_spill] sm:$0xff] %v2458_v56  ;;  %v2470_v11 = vpop.eup %1722  ;;  %1742 = vpow2.f32 %v2330_v59  ;;  %v2490_v59 = vadd.f32 1.0, %v2438_v21 }
  0x68   :  { %5260 = vst [vmem:[#allocation32_spill] sm:$0xff] %v2462_v61  ;;  %5261 = vst [vmem:[#allocation73_spill] sm:$0xff] %v2466_v15  ;;  %v2478_v56 = vpop.eup %1724  ;;  %1744 = vpow2.f32 %v2332_v20  ;;  %v2498_v20 = vadd.f32 1.0, %v2446_v24 }
  0x69   :  { %5264 = vst [vmem:[#allocation34_spill] sm:$0xff] %v2470_v11  ;;  %5265 = vst [vmem:[#allocation74_spill] sm:$0xff] %v2474_v40  ;;  %v2486_v31 = vpop.eup %1726  ;;  %1746 = vpow2.f32 %v2336_v23  ;;  %v2505_v23 = vadd.f32 1.0, %v2454_v53  ;;  %v2521_v53 = vadd.f32 1.0, %v2470_v11  ;;  %v5298_v57 = vld [vmem:[#allocation21_spill] sm:$0xff] }
  0x6a   :  { %5267 = vst [vmem:[#allocation75_spill] sm:$0xff] %v2478_v56  ;;  %5268 = vst [vmem:[#allocation76_spill] sm:$0xff] %v2482_v47  ;;  %v2494_v52 = vpop.eup %1728  ;;  %1748 = vpow2.f32 %v2338_v2  ;;  %v2513_v2 = vadd.f32 1.0, %v2462_v61  ;;  %v2529_v61 = vadd.f32 1.0, %v2478_v56  ;;  %v2537_v11 = vadd.f32 1.0, %v2486_v31  ;;  %v5301_v25 = vld [vmem:[#allocation65_spill] sm:$0xff] }
  0x6b   :  { %5271 = vst [vmem:[#allocation11_spill] sm:$0xff] %v2486_v31  ;;  %5272 = vst [vmem:[#allocation12_spill] sm:$0xff] %v2490_v59  ;;  %v2502_v44 = vpop.eup %1730  ;;  %1750 = vlog2.f32 %v2341_v29  ;;  %v2545_v56 = vadd.f32 1.0, %v2494_v52  ;;  %v5304_v60 = vld [vmem:[#allocation67_spill] sm:$0xff] }
  0x6c   :  { %5273 = vst [vmem:[#allocation77_spill] sm:$0xff] %v2494_v52  ;;  %5274 = vst [vmem:[#allocation78_spill] sm:$0xff] %v2498_v20  ;;  %v2510_v21 = vpop.eup %1732  ;;  %1752 = vlog2.f32 %v2346_v30  ;;  %v2553_v31 = vadd.f32 1.0, %v2502_v44 }
  0x6d   :  { %5275 = vst [vmem:[#allocation79_spill] sm:$0xff] %v2502_v44  ;;  %5276 = vst [vmem:[#allocation80_spill] sm:$0xff] %v2505_v23  ;;  %v2518_v24 = vpop.eup %1734  ;;  %1754 = vlog2.f32 %v2353_v1  ;;  %v2561_v52 = vadd.f32 1.0, %v2510_v21 }
  0x6e   :  { %5277 = vst [vmem:[#allocation81_spill] sm:$0xff] %v2510_v21  ;;  %5278 = vst [vmem:[#allocation82_spill] sm:$0xff] %v2513_v2  ;;  %v2526_v29 = vpop.eup %1736  ;;  %1756 = vlog2.f32 %v2360_v55  ;;  %v2569_v44 = vadd.f32 1.0, %v2518_v24 }
  0x6f   :  { %5279 = vst [vmem:[#allocation83_spill] sm:$0xff] %v2518_v24  ;;  %5280 = vst [vmem:[#allocation84_spill] sm:$0xff] %v2521_v53  ;;  %v2534_v30 = vpop.eup %1738  ;;  %1758 = vlog2.f32 %v2367_v63  ;;  %v2577_v21 = vadd.f32 1.0, %v2526_v29 }
  0x70   :  { %5281 = vst [vmem:[#allocation85_spill] sm:$0xff] %v2526_v29  ;;  %5282 = vst [vmem:[#allocation86_spill] sm:$0xff] %v2529_v61  ;;  %v2542_v1 = vpop.eup %1740  ;;  %1760 = vlog2.f32 %v2374_v54  ;;  %v2583_v24 = vadd.f32 1.0, %v2534_v30 }
  0x71   :  { %5283 = vst [vmem:[#allocation87_spill] sm:$0xff] %v2534_v30  ;;  %5284 = vst [vmem:[#allocation88_spill] sm:$0xff] %v2537_v11  ;;  %v2550_v55 = vpop.eup %1742  ;;  %1762 = vlog2.f32 %v2381_v62  ;;  %v2589_v29 = vadd.f32 1.0, %v2542_v1 }
  0x72   :  { %5285 = vst [vmem:[#allocation89_spill] sm:$0xff] %v2542_v1  ;;  %5286 = vst [vmem:[#allocation90_spill] sm:$0xff] %v2545_v56  ;;  %v2558_v63 = vpop.eup %1744  ;;  %1764 = vlog2.f32 %v2388_v12  ;;  %v2595_v30 = vadd.f32 1.0, %v2550_v55 }
  0x73   :  { %5287 = vst [vmem:[#allocation91_spill] sm:$0xff] %v2550_v55  ;;  %5288 = vst [vmem:[#allocation92_spill] sm:$0xff] %v2553_v31  ;;  %v2566_v54 = vpop.eup %1746  ;;  %1766 = vlog2.f32 %v2395_v35  ;;  %v2601_v1 = vadd.f32 1.0, %v2558_v63 }
  0x74   :  { %5289 = vst [vmem:[#allocation93_spill] sm:$0xff] %v2558_v63  ;;  %5290 = vst [vmem:[#allocation94_spill] sm:$0xff] %v2561_v52  ;;  %v2574_v62 = vpop.eup %1748  ;;  %1768 = vlog2.f32 %v2402_v48  ;;  %v2607_v55 = vadd.f32 1.0, %v2566_v54  ;;  %v5306_v48 = vmov %v2442_v33  ;;  %v5309_v63 = vmov %v2450_v32 }
  0x75   :  { %5291 = vst [vmem:[#allocation95_spill] sm:$0xff] %v2566_v54  ;;  %5292 = vst [vmem:[#allocation96_spill] sm:$0xff] %v2569_v44  ;;  %v1751_v12 = vpop.eup %1750  ;;  %1770 = vlog2.f32 %v2410_v39  ;;  %v2618_v27 = vadd.f32 1.0, %v2574_v62  ;;  %v5313_v33 = vsub.f32 0.0, %v5269_v46 }
  0x76   :  { %5293 = vst [vmem:[#allocation97_spill] sm:$0xff] %v2574_v62  ;;  %5294 = vst [vmem:[#allocation98_spill] sm:$0xff] %v2577_v21  ;;  %v1753_v41 = vpop.eup %1752  ;;  %1772 = vlog2.f32 %v5298_v57  ;;  %v2612_v58 = vmul.f32 0.6931472, %v1751_v12  ;;  %v5319_v62 = vsub.f32 0.0, %v2107_v3 }
  0x77   :  { %5295 = vst [vmem:[#allocation99_spill] sm:$0xff] %v2583_v24  ;;  %5297 = vst [vmem:[#allocation100_spill] sm:$0xff] %v2589_v29  ;;  %v1755_v22 = vpop.eup %1754  ;;  %1774 = vlog2.f32 %v5301_v25  ;;  %v2620_v54 = vmul.f32 0.6931472, %v1753_v41  ;;  %v2625_v35 = vmin.f32 %v5313_v33, 0.0  ;;  %v5322_v33 = vsub.f32 0.0, %v2109_v4 }
  0x78   :  { %5300 = vst [vmem:[#allocation101_spill] sm:$0xff] %v2595_v30  ;;  %v1757_v45 = vpop.eup %1756  ;;  %5303 = vst [vmem:[#allocation102_spill] sm:$0xff] %v2601_v1  ;;  %1776 = vlog2.f32 %v5304_v60  ;;  %v2627_v25 = vmul.f32 0.6931472, %v1755_v22  ;;  %v5317_v60 = vsub.f32 0.0, %v5270_v0  ;;  %v2636_v28 = vmin.f32 %v5319_v62, 0.0 }
  0x79   :  { %v1759_v57 = vpop.eup %1758  ;;  %5305 = vst [vmem:[#allocation103_spill] sm:$0xff] %v2607_v55  ;;  %1778 = vlog2.f32 %v5306_v48  ;;  %5308 = vst [vmem:[#allocation104_spill] sm:$0xff] %v2612_v58  ;;  %v5312_v48 = vld [vmem:[#allocation72_spill] sm:$0xff]  ;;  %v2638_v51 = vmul.f32 0.6931472, %v1757_v45  ;;  %v5324_v22 = vsub.f32 0.0, %v2111_v5 }
  0x7a   :  { %v1761_v39 = vpop.eup %1760  ;;  %1780 = vlog2.f32 %v5309_v63  ;;  %5310 = vst [vmem:[#allocation105_spill] sm:$0xff] %v2618_v27  ;;  %5311 = vst [vmem:[#allocation106_spill] sm:$0xff] %v2620_v54  ;;  %v5316_v63 = vld [vmem:[#allocation73_spill] sm:$0xff]  ;;  %v2632_v32 = vmin.f32 %v5317_v60, 0.0  ;;  %v2649_v60 = vmul.f32 0.6931472, %v1759_v57 }
  0x7b   :  { %v1763_v15 = vpop.eup %1762  ;;  %1782 = vlog2.f32 %v5312_v48  ;;  %5314 = vst [vmem:[#allocation107_spill] sm:$0xff] %v2625_v35  ;;  %5315 = vst [vmem:[#allocation108_spill] sm:$0xff] %v2627_v25  ;;  %v2643_v48 = vmin.f32 %v5322_v33, 0.0  ;;  %v5327_v62 = vmin.f32 %v5269_v46, 0.0  ;;  %v5332_v57 = vmin.f32 %v5270_v0, 0.0 }
  0x7c   :  { %v1765_v12 = vpop.eup %1764  ;;  %1784 = vlog2.f32 %v5316_v63  ;;  %5318 = vst [vmem:[#allocation109_spill] sm:$0xff] %v2632_v32  ;;  %5320 = vst [vmem:[#allocation110_spill] sm:$0xff] %v2636_v28  ;;  %v2647_v63 = vmin.f32 %v5324_v22, 0.0 }
  0x7d   :  { %v1767_v41 = vpop.eup %1766  ;;  %5321 = vst [vmem:[#allocation111_spill] sm:$0xff] %v2638_v51  ;;  %1786 = vlog2.f32 %v2474_v40  ;;  %5323 = vst [vmem:[#allocation112_spill] sm:$0xff] %v2643_v48  ;;  %v2655_v45 = vsub.f32 %v5327_v62, %v2612_v58  ;;  %v5329_v40 = vsub.f32 0.0, %v2113_v6  ;;  %v2661_v48 = vmul.f32 0.6931472, %v1761_v39 }
  0x7e   :  { %5325 = vst [vmem:[#allocation113_spill] sm:$0xff] %v2647_v63  ;;  %v1769_v35 = vpop.eup %1768  ;;  %5326 = vst [vmem:[#allocation114_spill] sm:$0xff] %v2649_v60  ;;  %1788 = vlog2.f32 %v2482_v47  ;;  %v2667_v22 = vsub.f32 %v5332_v57, %v2620_v54  ;;  %v5334_v47 = vsub.f32 0.0, %v2116_v8  ;;  %v2673_v62 = vmul.f32 0.6931472, %v1763_v15 }
  0x7f   :  { %5328 = vst [vmem:[#allocation115_spill] sm:$0xff] %v2655_v45  ;;  %v2659_v28 = vmin.f32 %v5329_v40, 0.0  ;;  %v1771_v33 = vpop.eup %1770  ;;  %5331 = vst [vmem:[#allocation117_spill] sm:$0xff] %v2661_v48  ;;  %1790 = vlog2.f32 %v2490_v59  ;;  %v5337_v39 = vmin.f32 %v2107_v3, 0.0  ;;  %v5339_v59 = vsub.f32 0.0, %v2118_v9 }
  0x80   :  { %5333 = vst [vmem:[#allocation118_spill] sm:$0xff] %v2667_v22  ;;  %v2671_v63 = vmin.f32 %v5334_v47, 0.0  ;;  %v1773_v46 = vpop.eup %1772  ;;  %5336 = vst [vmem:[#allocation120_spill] sm:$0xff] %v2673_v62  ;;  %1792 = vlog2.f32 %v2498_v20  ;;  %v2685_v57 = vmul.f32 0.6931472, %v1765_v12  ;;  %v5342_v15 = vmin.f32 %v2109_v4, 0.0 }
  0x81   :  { %5330 = vst [vmem:[#allocation116_spill] sm:$0xff] %v2659_v28  ;;  %v2679_v40 = vsub.f32 %v5337_v39, %v2627_v25  ;;  %v2683_v45 = vmin.f32 %v5339_v59, 0.0  ;;  %v1775_v0 = vpop.eup %1774  ;;  %1794 = vlog2.f32 %v2505_v23  ;;  %v5344_v20 = vsub.f32 0.0, %v2123_v13 }
  0x82   :  { %5335 = vst [vmem:[#allocation119_spill] sm:$0xff] %v2671_v63  ;;  %5341 = vst [vmem:[#allocation123_spill] sm:$0xff] %v2685_v57  ;;  %v2691_v47 = vsub.f32 %v5342_v15, %v2638_v51  ;;  %v1777_v3 = vpop.eup %1776  ;;  %v2697_v39 = vmul.f32 0.6931472, %v1767_v41  ;;  %1796 = vlog2.f32 %v2513_v2  ;;  %v5347_v59 = vmin.f32 %v2111_v5, 0.0  ;;  %v3215_v51 = vld [vmem:[#allocation5 + $0x108] sm:$0xff] }
  0x83   :  { %5338 = vst [vmem:[#allocation121_spill] sm:$0xff] %v2679_v40  ;;  %5340 = vst [vmem:[#allocation122_spill] sm:$0xff] %v2683_v45  ;;  %v2695_v22 = vmin.f32 %v5344_v20, 0.0  ;;  %v5349_v23 = vsub.f32 0.0, %v2125_v14  ;;  %v1779_v4 = vpop.eup %1778  ;;  %v2709_v15 = vmul.f32 0.6931472, %v1769_v35  ;;  %1798 = vlog2.f32 %v2521_v53 }
  0x84   :  { %5343 = vst [vmem:[#allocation124_spill] sm:$0xff] %v2691_v47  ;;  %5346 = vst [vmem:[#allocation126_spill] sm:$0xff] %v2697_v39  ;;  %v2703_v12 = vsub.f32 %v5347_v59, %v2649_v60  ;;  %v5352_v20 = vmin.f32 %v2113_v6, 0.0  ;;  %v5354_v2 = vsub.f32 0.0, %v2129_v17  ;;  %v1781_v5 = vpop.eup %1780  ;;  %v2721_v59 = vmul.f32 0.6931472, %v1771_v33 }
  0x85   :  { %5345 = vst [vmem:[#allocation125_spill] sm:$0xff] %v2695_v22  ;;  %v2707_v40 = vmin.f32 %v5349_v23, 0.0  ;;  %5351 = vst [vmem:[#allocation129_spill] sm:$0xff] %v2709_v15  ;;  %1800 = vlog2.f32 %v2529_v61  ;;  %v5357_v35 = vmin.f32 %v2116_v8, 0.0  ;;  %v5359_v53 = vsub.f32 0.0, %v2131_v18  ;;  %v1783_v6 = vpop.eup %1782  ;;  %v3205_v45 = vld [vmem:[#allocation5 + $0xf0] sm:$0xff] }
  0x86   :  { %5348 = vst [vmem:[#allocation127_spill] sm:$0xff] %v2703_v12  ;;  %v2715_v41 = vsub.f32 %v5352_v20, %v2661_v48  ;;  %v2719_v47 = vmin.f32 %v5354_v2, 0.0  ;;  %5356 = vst [vmem:[#allocation132_spill] sm:$0xff] %v2721_v59  ;;  %v2733_v20 = vmul.f32 0.6931472, %v1773_v46  ;;  %1802 = vlog2.f32 %v2537_v11  ;;  %v1785_v8 = vpop.eup %1784 }
  0x87   :  { %5350 = vst [vmem:[#allocation128_spill] sm:$0xff] %v2707_v40  ;;  %v2727_v23 = vsub.f32 %v5357_v35, %v2673_v62  ;;  %v2731_v12 = vmin.f32 %v5359_v53, 0.0  ;;  %v5362_v2 = vmin.f32 %v2118_v9, 0.0  ;;  %v5364_v61 = vsub.f32 0.0, %v2133_v19  ;;  %v1787_v9 = vpop.eup %1786  ;;  %5562 = vst [vmem:[#allocation223_spill] sm:$0xff] %v3205_v45  ;;  %v3207_v62 = vld [vmem:[#allocation5 + $0xf8] sm:$0xff] }
  0x88   :  { %5353 = vst [vmem:[#allocation130_spill] sm:$0xff] %v2715_v41  ;;  %5355 = vst [vmem:[#allocation131_spill] sm:$0xff] %v2719_v47  ;;  %v2745_v35 = vmul.f32 0.6931472, %v1775_v0  ;;  %1804 = vlog2.f32 %v2545_v56  ;;  %v5367_v53 = vmin.f32 %v2123_v13, 0.0  ;;  %v5369_v11 = vsub.f32 0.0, %v5219_v10  ;;  %v1789_v13 = vpop.eup %1788 }
  0x89   :  { %5358 = vst [vmem:[#allocation133_spill] sm:$0xff] %v2727_v23  ;;  %5360 = vst [vmem:[#allocation134_spill] sm:$0xff] %v2731_v12  ;;  %v2739_v33 = vsub.f32 %v5362_v2, %v2685_v57  ;;  %v2743_v41 = vmin.f32 %v5364_v61, 0.0  ;;  %v2757_v2 = vmul.f32 0.6931472, %v1777_v3  ;;  %1806 = vlog2.f32 %v2553_v31  ;;  %v3193_v12 = vld [vmem:[#allocation5 + $0xd0] sm:$0xff] }
  0x8a   :  { %5361 = vst [vmem:[#allocation135_spill] sm:$0xff] %v2733_v20  ;;  %5366 = vst [vmem:[#allocation138_spill] sm:$0xff] %v2745_v35  ;;  %v2751_v46 = vsub.f32 %v5367_v53, %v2697_v39  ;;  %v2755_v23 = vmin.f32 %v5369_v11, 0.0  ;;  %v5372_v61 = vmin.f32 %v2125_v14, 0.0  ;;  %v5374_v56 = vsub.f32 0.0, %v5222_v50  ;;  %v1791_v14 = vpop.eup %1790  ;;  %v3197_v47 = vld [vmem:[#allocation5 + $0xe0] sm:$0xff] }
  0x8b   :  { %5363 = vst [vmem:[#allocation136_spill] sm:$0xff] %v2739_v33  ;;  %5365 = vst [vmem:[#allocation137_spill] sm:$0xff] %v2743_v41  ;;  %v2769_v53 = vmul.f32 0.6931472, %v1779_v4  ;;  %1808 = vlog2.f32 %v2561_v52  ;;  %v5377_v11 = vmin.f32 %v2129_v17, 0.0  ;;  %v5379_v31 = vsub.f32 0.0, %v5223_v49  ;;  %v1793_v17 = vpop.eup %1792 }
  0x8c   :  { %5368 = vst [vmem:[#allocation139_spill] sm:$0xff] %v2751_v46  ;;  %5370 = vst [vmem:[#allocation140_spill] sm:$0xff] %v2755_v23  ;;  %v2763_v0 = vsub.f32 %v5372_v61, %v2709_v15  ;;  %v2767_v33 = vmin.f32 %v5374_v56, 0.0  ;;  %v2781_v61 = vmul.f32 0.6931472, %v1781_v5  ;;  %1810 = vlog2.f32 %v2569_v44  ;;  %v3203_v57 = vld [vmem:[#allocation5 + $0xe8] sm:$0xff] }
  0x8d   :  { %5371 = vst [vmem:[#allocation141_spill] sm:$0xff] %v2757_v2  ;;  %5376 = vst [vmem:[#allocation144_spill] sm:$0xff] %v2769_v53  ;;  %v2775_v3 = vsub.f32 %v5377_v11, %v2721_v59  ;;  %v2779_v46 = vmin.f32 %v5379_v31, 0.0  ;;  %v5382_v56 = vmin.f32 %v2131_v18, 0.0  ;;  %v5384_v52 = vsub.f32 0.0, %v5226_v37  ;;  %v1795_v18 = vpop.eup %1794  ;;  %v3195_v59 = vld [vmem:[#allocation5 + $0xd8] sm:$0xff] }
  0x8e   :  { %5373 = vst [vmem:[#allocation142_spill] sm:$0xff] %v2763_v0  ;;  %5375 = vst [vmem:[#allocation143_spill] sm:$0xff] %v2767_v33  ;;  %v2793_v11 = vmul.f32 0.6931472, %v1783_v6  ;;  %1812 = vlog2.f32 %v2577_v21  ;;  %v5387_v31 = vmin.f32 %v2133_v19, 0.0  ;;  %v5389_v44 = vsub.f32 0.0, %v5227_v36  ;;  %v1797_v19 = vpop.eup %1796 }
  0x8f   :  { %5378 = vst [vmem:[#allocation145_spill] sm:$0xff] %v2775_v3  ;;  %5380 = vst [vmem:[#allocation146_spill] sm:$0xff] %v2779_v46  ;;  %v2787_v4 = vsub.f32 %v5382_v56, %v2733_v20  ;;  %v2791_v0 = vmin.f32 %v5384_v52, 0.0  ;;  %v2805_v56 = vmul.f32 0.6931472, %v1785_v8  ;;  %1814 = vlog2.f32 %v2583_v24  ;;  %v3106_v46 = vld [vmem:[#allocation5 + $0x28] sm:$0xff] }
  0x90   :  { %5381 = vst [vmem:[#allocation147_spill] sm:$0xff] %v2781_v61  ;;  %5386 = vst [vmem:[#allocation150_spill] sm:$0xff] %v2793_v11  ;;  %v2799_v5 = vsub.f32 %v5387_v31, %v2745_v35  ;;  %v2803_v3 = vmin.f32 %v5389_v44, 0.0  ;;  %v5392_v52 = vmin.f32 %v5219_v10, 0.0  ;;  %v5394_v21 = vsub.f32 0.0, %v5230_v34  ;;  %v3165_v33 = vld [vmem:[#allocation5 + $0x90] sm:$0xff] }
  0x91   :  { %5383 = vst [vmem:[#allocation148_spill] sm:$0xff] %v2787_v4  ;;  %5385 = vst [vmem:[#allocation149_spill] sm:$0xff] %v2791_v0  ;;  %1816 = vlog2.f32 %v2589_v29  ;;  %v5396_v44 = vmin.f32 %v5222_v50, 0.0  ;;  %v5398_v8 = vsub.f32 0.0, %v5231_v26  ;;  %v5400_v10 = vsub.f32 0.0, %v5234_v7  ;;  %v3122_v0 = vld [vmem:[#allocation5 + $0x48] sm:$0xff] }
  0x92   :  { %5388 = vst [vmem:[#allocation151_spill] sm:$0xff] %v2799_v5  ;;  %5390 = vst [vmem:[#allocation152_spill] sm:$0xff] %v2803_v3  ;;  %v2811_v6 = vsub.f32 %v5392_v52, %v2757_v2  ;;  %v2815_v4 = vmin.f32 %v5394_v21, 0.0  ;;  %v2831_v5 = vmul.f32 0.6931472, %v1787_v9  ;;  %1818 = vlog2.f32 %v2595_v30  ;;  %v3187_v3 = vld [vmem:[#allocation5 + $0xc8] sm:$0xff] }
  0x93   :  { %5391 = vst [vmem:[#allocation153_spill] sm:$0xff] %v2805_v56  ;;  %v2821_v31 = vsub.f32 %v5396_v44, %v2769_v53  ;;  %v2825_v24 = vmin.f32 %v5398_v8, 0.0  ;;  %v2829_v52 = vmin.f32 %v5400_v10, 0.0  ;;  %v2833_v21 = vmul.f32 0.6931472, %v1789_v13  ;;  %5519 = vst [vmem:[#allocation198_spill] sm:$0xff] %v3106_v46 }
  0x94   :  { %5393 = vst [vmem:[#allocation154_spill] sm:$0xff] %v2811_v6  ;;  %5395 = vst [vmem:[#allocation155_spill] sm:$0xff] %v2815_v4  ;;  %v1799_v6 = vpop.eup %1798  ;;  %v5404_v50 = vmin.f32 %v5223_v49, 0.0  ;;  %1820 = vlog2.f32 %v2601_v1  ;;  %v5407_v8 = vmin.f32 %v5226_v37, 0.0  ;;  %v5409_v9 = vsub.f32 0.0, %v5235_v42  ;;  %v3138_v53 = vld [vmem:[#allocation5 + $0x68] sm:$0xff] }
  0x95   :  { %5397 = vst [vmem:[#allocation156_spill] sm:$0xff] %v2821_v31  ;;  %5399 = vst [vmem:[#allocation157_spill] sm:$0xff] %v2825_v24  ;;  %v1801_v29 = vpop.eup %1800  ;;  %v2841_v31 = vmul.f32 0.6931472, %v1791_v14  ;;  %1822 = vlog2.f32 %v2607_v55  ;;  %v5412_v49 = vmin.f32 %v5227_v36, 0.0  ;;  %v5423_v36 = vmin.f32 %v5230_v34, 0.0 }
  0x96   :  { %5401 = vst [vmem:[#allocation158_spill] sm:$0xff] %v2829_v52  ;;  %5402 = vst [vmem:[#allocation159_spill] sm:$0xff] %v2831_v5  ;;  %v2839_v44 = vsub.f32 %v5404_v50, %v2781_v61  ;;  %v2847_v10 = vsub.f32 %v5407_v8, %v2793_v11  ;;  %v2851_v13 = vmin.f32 %v5409_v9, 0.0  ;;  %v1803_v30 = vpop.eup %1802  ;;  %v2853_v52 = vmul.f32 0.6931472, %v1793_v17  ;;  %v5414_v50 = vld [vmem:[#allocation22_spill] sm:$0xff] }
  0x97   :  { %5403 = vst [vmem:[#allocation160_spill] sm:$0xff] %v2833_v21  ;;  %5406 = vst [vmem:[#allocation162_spill] sm:$0xff] %v2841_v31  ;;  %v2859_v14 = vsub.f32 %v5412_v49, %v2805_v56  ;;  %v5415_v1 = vsub.f32 0.0, %v5414_v50  ;;  %v1805_v37 = vpop.eup %1804  ;;  %v2865_v8 = vmul.f32 0.6931472, %v1795_v18  ;;  %1824 = vlog2.f32 %v2618_v27  ;;  %v5419_v17 = vld [vmem:[#allocation23_spill] sm:$0xff] }
  0x98   :  { %5405 = vst [vmem:[#allocation161_spill] sm:$0xff] %v2839_v44  ;;  %5408 = vst [vmem:[#allocation163_spill] sm:$0xff] %v2847_v10  ;;  %v2867_v10 = vmul.f32 0.6931472, %v1797_v19  ;;  %v5420_v9 = vsub.f32 0.0, %v5419_v17  ;;  %v1807_v55 = vpop.eup %1806  ;;  %v2879_v49 = vsub.f32 %v5423_v36, %v2831_v5  ;;  %v5427_v19 = vld [vmem:[#allocation24_spill] sm:$0xff] }
  0x99   :  { %5410 = vst [vmem:[#allocation164_spill] sm:$0xff] %v2851_v13  ;;  %5411 = vst [vmem:[#allocation165_spill] sm:$0xff] %v2853_v52  ;;  %v2863_v44 = vmin.f32 %v5415_v1, 0.0  ;;  %v2874_v24 = vmul.f32 0.6931472, %v1799_v6  ;;  %v5425_v1 = vmin.f32 %v5231_v26, 0.0 }
  0x9a   :  { %5413 = vst [vmem:[#allocation166_spill] sm:$0xff] %v2859_v14  ;;  %5417 = vst [vmem:[#allocation167_spill] sm:$0xff] %v2865_v8  ;;  %v2872_v13 = vmin.f32 %v5420_v9, 0.0  ;;  %v5428_v14 = vsub.f32 0.0, %v5427_v19  ;;  %v2890_v9 = vmul.f32 0.6931472, %v1801_v29 }
  0x9b   :  { %5416 = vst [vmem:[#allocation22_spill] sm:$0xff] %v2863_v44  ;;  %5418 = vst [vmem:[#allocation168_spill] sm:$0xff] %v2867_v10  ;;  %v2884_v18 = vsub.f32 %v5425_v1, %v2833_v21  ;;  %v1809_v44 = vpop.eup %1808  ;;  %v5432_v6 = vmin.f32 %v5234_v7, 0.0  ;;  %v5434_v36 = vld [vmem:[#allocation25_spill] sm:$0xff]  ;;  %v2903_v1 = vmul.f32 0.6931472, %v1805_v37 }
  0x9c   :  { %5421 = vst [vmem:[#allocation23_spill] sm:$0xff] %v2872_v13  ;;  %5422 = vst [vmem:[#allocation169_spill] sm:$0xff] %v2874_v24  ;;  %v2888_v27 = vmin.f32 %v5428_v14, 0.0  ;;  %v2892_v13 = vmul.f32 0.6931472, %v1803_v30  ;;  %v1811_v26 = vpop.eup %1810  ;;  %v5438_v14 = vmin.f32 %v5235_v42, 0.0 }
  0x9d   :  { %5424 = vst [vmem:[#allocation170_spill] sm:$0xff] %v2879_v49  ;;  %5426 = vst [vmem:[#allocation171_spill] sm:$0xff] %v2884_v18  ;;  %v2897_v34 = vsub.f32 %v5432_v6, %v2841_v31  ;;  %v5435_v49 = vsub.f32 0.0, %v5434_v36  ;;  %v5440_v29 = vld [vmem:[#allocation26_spill] sm:$0xff]  ;;  %v5443_v21 = vld [vmem:[#allocation27_spill] sm:$0xff]  ;;  %v5447_v37 = vmin.f32 %v5414_v50, 0.0 }
  0x9e   :  { %5429 = vst [vmem:[#allocation24_spill] sm:$0xff] %v2888_v27  ;;  %5430 = vst [vmem:[#allocation172_spill] sm:$0xff] %v2890_v9  ;;  %v2908_v18 = vsub.f32 %v5438_v14, %v2853_v52  ;;  %v5441_v30 = vsub.f32 0.0, %v5440_v29  ;;  %v5444_v7 = vsub.f32 0.0, %v5443_v21  ;;  %v2918_v31 = vmul.f32 0.6931472, %v1807_v55 }
  0x9f   :  { %5431 = vst [vmem:[#allocation173_spill] sm:$0xff] %v2892_v13  ;;  %5433 = vst [vmem:[#allocation174_spill] sm:$0xff] %v2897_v34  ;;  %v2901_v4 = vmin.f32 %v5435_v49, 0.0  ;;  %v1813_v34 = vpop.eup %1812  ;;  %v2923_v49 = vsub.f32 %v5447_v37, %v2865_v8  ;;  %v5449_v42 = vmin.f32 %v5419_v17, 0.0  ;;  %v5454_v55 = vmin.f32 %v5427_v19, 0.0  ;;  %v5456_v50 = vld [vmem:[#allocation29_spill] sm:$0xff] }
  0xa0   :  { %5437 = vst [vmem:[#allocation175_spill] sm:$0xff] %v2903_v1  ;;  %5439 = vst [vmem:[#allocation176_spill] sm:$0xff] %v2908_v18  ;;  %v2912_v27 = vmin.f32 %v5441_v30, 0.0  ;;  %v2916_v6 = vmin.f32 %v5444_v7, 0.0  ;;  %v5451_v30 = vsub.f32 0.0, %v5250_v43  ;;  %v5457_v37 = vsub.f32 0.0, %v5456_v50 }
  0xa1   :  { %5436 = vst [vmem:[#allocation25_spill] sm:$0xff] %v2901_v4  ;;  %5446 = vst [vmem:[#allocation177_spill] sm:$0xff] %v2918_v31  ;;  %v2928_v14 = vsub.f32 %v5449_v42, %v2867_v10  ;;  %v2934_v7 = vmul.f32 0.6931472, %v1809_v44  ;;  %v5459_v4 = vld [vmem:[#allocation30_spill] sm:$0xff]  ;;  %v5464_v44 = vmin.f32 %v5440_v29, 0.0 }
  0xa2   :  { %5442 = vst [vmem:[#allocation26_spill] sm:$0xff] %v2912_v27  ;;  %5445 = vst [vmem:[#allocation27_spill] sm:$0xff] %v2916_v6  ;;  %v2932_v18 = vmin.f32 %v5451_v30, 0.0  ;;  %v1815_v27 = vpop.eup %1814  ;;  %v2939_v6 = vsub.f32 %v5454_v55, %v2874_v24  ;;  %v5460_v17 = vsub.f32 0.0, %v5459_v4  ;;  %v5462_v30 = vmin.f32 %v5434_v36, 0.0  ;;  %v5466_v55 = vld [vmem:[#allocation31_spill] sm:$0xff] }
  0xa3   :  { %5448 = vst [vmem:[#allocation178_spill] sm:$0xff] %v2923_v49  ;;  %5450 = vst [vmem:[#allocation179_spill] sm:$0xff] %v2928_v14  ;;  %v2943_v49 = vmin.f32 %v5457_v37, 0.0  ;;  %v1817_v14 = vpop.eup %1816  ;;  %v2957_v19 = vsub.f32 %v5464_v44, %v2892_v13  ;;  %v5469_v37 = vsub.f32 0.0, %v5258_v38  ;;  %v5472_v36 = vmin.f32 %v5443_v21, 0.0  ;;  %v3120_v8 = vld [vmem:[#allocation5 + $0x40] sm:$0xff] }
  0xa4   :  { %5452 = vst [vmem:[#allocation180_spill] sm:$0xff] %v2932_v18  ;;  %5453 = vst [vmem:[#allocation181_spill] sm:$0xff] %v2934_v7  ;;  %v2947_v42 = vmin.f32 %v5460_v17, 0.0  ;;  %v2952_v18 = vsub.f32 %v5462_v30, %v2890_v9  ;;  %v1819_v17 = vpop.eup %1818  ;;  %v2982_v13 = vmul.f32 0.6931472, %v1813_v34  ;;  %v5489_v34 = vmin.f32 %v5456_v50, 0.0 }
  0xa5   :  { %5455 = vst [vmem:[#allocation182_spill] sm:$0xff] %v2939_v6  ;;  %5458 = vst [vmem:[#allocation29_spill] sm:$0xff] %v2943_v49  ;;  %v5467_v6 = vsub.f32 0.0, %v5466_v55  ;;  %v2965_v49 = vmin.f32 %v5469_v37, 0.0  ;;  %v2972_v30 = vsub.f32 %v5472_v36, %v2903_v1  ;;  %v2997_v9 = vmul.f32 0.6931472, %v1815_v27 }
  0xa6   :  { %5461 = vst [vmem:[#allocation30_spill] sm:$0xff] %v2947_v42  ;;  %5463 = vst [vmem:[#allocation183_spill] sm:$0xff] %v2952_v18  ;;  %v2967_v42 = vmul.f32 0.6931472, %v1811_v26  ;;  %v5474_v18 = vld [vmem:[#allocation33_spill] sm:$0xff]  ;;  %v5480_v26 = vmin.f32 %v5250_v43, 0.0 }
  0xa7   :  { %5465 = vst [vmem:[#allocation184_spill] sm:$0xff] %v2957_v19  ;;  %v2961_v24 = vmin.f32 %v5467_v6, 0.0  ;;  %5470 = vst [vmem:[#allocation185_spill] sm:$0xff] %v2965_v49  ;;  %v5475_v29 = vsub.f32 0.0, %v5474_v18  ;;  %v5477_v19 = vsub.f32 0.0, %v5262_v16  ;;  %v5482_v49 = vld [vmem:[#allocation35_spill] sm:$0xff] }
  0xa8   :  { %5471 = vst [vmem:[#allocation186_spill] sm:$0xff] %v2967_v42  ;;  %5473 = vst [vmem:[#allocation187_spill] sm:$0xff] %v2972_v30  ;;  %v2987_v37 = vsub.f32 %v5480_v26, %v2918_v31  ;;  %v5483_v21 = vsub.f32 0.0, %v5482_v49  ;;  %v5485_v30 = vld [vmem:[#allocation36_spill] sm:$0xff]  ;;  %v3010_v31 = vmul.f32 0.6931472, %v1817_v14 }
  0xa9   :  { %5468 = vst [vmem:[#allocation31_spill] sm:$0xff] %v2961_v24  ;;  %v2976_v44 = vmin.f32 %v5475_v29, 0.0  ;;  %v2980_v6 = vmin.f32 %v5477_v19, 0.0  ;;  %v1821_v24 = vpop.eup %1820  ;;  %5479 = vst [vmem:[#allocation189_spill] sm:$0xff] %v2982_v13  ;;  %v5486_v1 = vsub.f32 0.0, %v5485_v30  ;;  %v3002_v19 = vsub.f32 %v5489_v34, %v2934_v7  ;;  %v3124_v10 = vld [vmem:[#allocation5 + $0x50] sm:$0xff] }
  0xaa   :  { %5481 = vst [vmem:[#allocation190_spill] sm:$0xff] %v2987_v37  ;;  %v2991_v36 = vmin.f32 %v5483_v21, 0.0  ;;  %5488 = vst [vmem:[#allocation191_spill] sm:$0xff] %v2997_v9  ;;  %v3018_v34 = vmul.f32 0.6931472, %v1821_v24  ;;  %v5503_v27 = vmin.f32 %v5466_v55, 0.0 }
  0xab   :  { %5476 = vst [vmem:[#allocation33_spill] sm:$0xff] %v2976_v44  ;;  %5478 = vst [vmem:[#allocation188_spill] sm:$0xff] %v2980_v6  ;;  %v2995_v29 = vmin.f32 %v5486_v1, 0.0  ;;  %v1823_v44 = vpop.eup %1822  ;;  %v5491_v6 = vld [vmem:[#allocation37_spill] sm:$0xff]  ;;  %v3012_v1 = vmul.f32 0.6931472, %v1819_v17 }
  0xac   :  { %5484 = vst [vmem:[#allocation35_spill] sm:$0xff] %v2991_v36  ;;  %5490 = vst [vmem:[#allocation192_spill] sm:$0xff] %v3002_v19  ;;  %v5492_v43 = vsub.f32 0.0, %v5491_v6  ;;  %v1825_v36 = vpop.eup %1824  ;;  %v3029_v37 = vmul.f32 0.6931472, %v1823_v44  ;;  %v3034_v54 = vsub.f32 %v5503_v27, %v2982_v13  ;;  %v5505_v58 = vmin.f32 %v5258_v38, 0.0 }
  0xad   :  { %5487 = vst [vmem:[#allocation36_spill] sm:$0xff] %v2995_v29  ;;  %5495 = vst [vmem:[#allocation193_spill] sm:$0xff] %v3010_v31  ;;  %v5506_v27 = vmin.f32 %v5474_v18, 0.0  ;;  %v5508_v44 = vmin.f32 %v5482_v49, 0.0  ;;  %v3136_v52 = vld [vmem:[#allocation5 + $0x60] sm:$0xff]  ;;  %v3150_v61 = vld [vmem:[#allocation5 + $0x78] sm:$0xff] }
  0xae   :  { %v3006_v26 = vmin.f32 %v5492_v43, 0.0  ;;  %5496 = vst [vmem:[#allocation194_spill] sm:$0xff] %v3012_v1  ;;  %5498 = vst [vmem:[#allocation195_spill] sm:$0xff] %v3018_v34  ;;  %v5499_v43 = vmin.f32 %v5459_v4, 0.0  ;;  %v3045_v50 = vsub.f32 %v5505_v58, %v2997_v9  ;;  %v3148_v58 = vld [vmem:[#allocation5 + $0x70] sm:$0xff]  ;;  %v3152_v13 = vld [vmem:[#allocation5 + $0x80] sm:$0xff] }
  0xaf   :  { %5502 = vst [vmem:[#allocation196_spill] sm:$0xff] %v3029_v37  ;;  %v3054_v24 = vsub.f32 %v5506_v27, %v3010_v31  ;;  %v3068_v55 = vsub.f32 %v5508_v44, %v3018_v34  ;;  %v5510_v27 = vmin.f32 %v5491_v6, 0.0  ;;  %v3118_v6 = vld [vmem:[#allocation5 + $0x38] sm:$0xff]  ;;  %5530 = vst [vmem:[#allocation201_spill] sm:$0xff] %v3120_v8  ;;  %v3163_v34 = vld [vmem:[#allocation5 + $0x88] sm:$0xff] }
  0xb0   :  { %5493 = vst [vmem:[#allocation37_spill] sm:$0xff] %v3006_v26  ;;  %v3023_v19 = vsub.f32 %v5499_v43, %v2967_v42  ;;  %v3040_v43 = vmul.f32 0.6931472, %v1825_v36  ;;  %v5507_v36 = vmin.f32 %v5262_v16, 0.0  ;;  %v3108_v16 = vld [vmem:[#allocation5 + $0x30] sm:$0xff]  ;;  %5529 = vst [vmem:[#allocation200_spill] sm:$0xff] %v3118_v6 }
  0xb1   :  { %5520 = vst [vmem:[#allocation199_spill] sm:$0xff] %v3108_v16  ;;  %5531 = vst [vmem:[#allocation202_spill] sm:$0xff] %v3122_v0  ;;  %v3134_v44 = vld [vmem:[#allocation5 + $0x58] sm:$0xff]  ;;  %v3173_v26 = vld [vmem:[#allocation5 + $0xa0] sm:$0xff] }
  0xb2   :  { %5504 = vst [vmem:[#allocation197_spill] sm:$0xff] %v3040_v43  ;;  %v3059_v4 = vsub.f32 %v5507_v36, %v3012_v1  ;;  %v5509_v36 = vmin.f32 %v5485_v30, 0.0  ;;  %v3090_v18 = vsub.f32 %v5510_v27, %v3040_v43  ;;  %5532 = vst [vmem:[#allocation203_spill] sm:$0xff] %v3124_v10  ;;  %v1902_v27 = vld [vmem:[%s4763_s2] ss:$0 sm:$0xff]  ;;  %v3167_v1 = vld [vmem:[#allocation5 + $0x98] sm:$0xff] }
  0xb3   :  { %5538 = vst [vmem:[#allocation204_spill] sm:$0xff] %v3134_v44  ;;  %5539 = vst [vmem:[#allocation205_spill] sm:$0xff] %v3136_v52  ;;  %v612_v7 = vmul.f32 %v1902_v27, %v3106_v46  ;;  %v613_v42 = vmul.f32 %v1902_v27, %v3108_v16  ;;  %v614_v2 = vmul.f32 %v1902_v27, %v3118_v6  ;;  %v3177_v49 = vld [vmem:[#allocation5 + $0xb0] sm:$0xff]  ;;  %v3183_v11 = vld [vmem:[#allocation5 + $0xb8] sm:$0xff]  ;;  %s2058_s2 = smov [#allocation7]  }
  0xb4   :  { %v3079_v38 = vsub.f32 %v5509_v36, %v3029_v37  ;;  %5540 = vst [vmem:[#allocation206_spill] sm:$0xff] %v3138_v53  ;;  %5545 = vst [vmem:[#allocation207_spill] sm:$0xff] %v3148_v58  ;;  %v615_v36 = vmul.f32 %v1902_v27, %v3120_v8  ;;  %v616_v5 = vmul.f32 %v1902_v27, %v3122_v0  ;;  %v3175_v37 = vld [vmem:[#allocation5 + $0xa8] sm:$0xff]  ;;  %v3185_v56 = vld [vmem:[#allocation5 + $0xc0] sm:$0xff]  ;;  %s1653_s13 = sshll.u32 %s2058_s2, 4  ;;  %s1654_s13 = int_to_ptr.vmem [resolvable:$true] %s1653_s13 }
  0xb5   :  { %5546 = vst [vmem:[#allocation208_spill] sm:$0xff] %v3150_v61  ;;  %5547 = vst [vmem:[#allocation209_spill] sm:$0xff] %v3152_v13  ;;  %v617_v43 = vmul.f32 %v1902_v27, %v3124_v10  ;;  %v618_v31 = vmul.f32 %v1902_v27, %v3134_v44  ;;  %v619_v30 = vmul.f32 %v1902_v27, %v3136_v52  ;;  %v3213_v14 = vld [vmem:[#allocation5 + $0x100] sm:$0xff]  ;;  %v3217_v21 = vld [vmem:[#allocation5 + $0x110] sm:$0xff]  ;;  %s2025_s14 = scalar_lea.vmem %s1654_s13, 16  ;;  %s2029_s15 = scalar_lea.vmem %s1654_s13, 32 }
  0xb6   :  { %5549 = vst [vmem:[#allocation210_spill] sm:$0xff] %v3163_v34  ;;  %5550 = vst [vmem:[#allocation211_spill] sm:$0xff] %v3165_v33  ;;  %v620_v9 = vmul.f32 %v1902_v27, %v3138_v53  ;;  %v621_v17 = vmul.f32 %v1902_v27, %v3148_v58  ;;  %v622_v23 = vmul.f32 %v1902_v27, %v3150_v61  ;;  %v5573_v61 = vld [vmem:[#allocation39_spill] sm:$0xff]  ;;  %p2026_p2 = scmp.ne.s32.totalorder %s1654_s13, %s2025_s14  ;;  %p2030_p3 = scmp.lt.s32.totalorder %s1654_s13, %s1654_s13 }
  0xb7   :  { %5551 = vst [vmem:[#allocation212_spill] sm:$0xff] %v3167_v1  ;;  %5552 = vst [vmem:[#allocation213_spill] sm:$0xff] %v3173_v26  ;;  %v623_v35 = vmul.f32 %v1902_v27, %v3152_v13  ;;  %v624_v41 = vmul.f32 %v1902_v27, %v3163_v34  ;;  %v625_v20 = vmul.f32 %v1902_v27, %v3165_v33  ;;  %v5571_v33 = vld [vmem:[#allocation38_spill] sm:$0xff]  ;;  %p2031_p4 = scmp.lt.s32.totalorder %s2029_s15, %s2025_s14 }
  0xb8   :  { %5553 = vst [vmem:[#allocation214_spill] sm:$0xff] %v3175_v37  ;;  %5554 = vst [vmem:[#allocation215_spill] sm:$0xff] %v3177_v49  ;;  %v626_v15 = vmul.f32 %v1902_v27, %v3167_v1  ;;  %v627_v40 = vmul.f32 %v1902_v27, %v3173_v26  ;;  %v628_v39 = vmul.f32 %v1902_v27, %v3175_v37  ;;  %v5570_v1 = vld [vmem:[#allocation115_spill] sm:$0xff]  ;;  %v5572_v13 = vld [vmem:[#allocation118_spill] sm:$0xff] }
  0xb9   :  { %5555 = vst [vmem:[#allocation216_spill] sm:$0xff] %v3183_v11  ;;  %5556 = vst [vmem:[#allocation217_spill] sm:$0xff] %v3185_v56  ;;  %v629_v22 = vmul.f32 %v1902_v27, %v3177_v49  ;;  %v630_v63 = vmul.f32 %v1902_v27, %v3183_v11  ;;  %v631_v48 = vmul.f32 %v1902_v27, %v3185_v56  ;;  %v3223_v49 = vld [vmem:[#allocation5 + $0x118] sm:$0xff]  ;;  %v3225_v56 = vld [vmem:[#allocation5 + $0x120] sm:$0xff]  ;;  %p2032_p5 = por %p2031_p4, %p2030_p3 }
  0xba   :  { %5557 = vst [vmem:[#allocation218_spill] sm:$0xff] %v3187_v3  ;;  %5558 = vst [vmem:[#allocation219_spill] sm:$0xff] %v3193_v12  ;;  %v632_v28 = vmul.f32 %v1902_v27, %v3187_v3  ;;  %v633_v60 = vmul.f32 %v1902_v27, %v3193_v12  ;;  %v634_v25 = vmul.f32 %v1902_v27, %v3195_v59  ;;  %v3227_v3 = vld [vmem:[#allocation5 + $0x128] sm:$0xf] }
  0xbb   :  { %5559 = vst [vmem:[#allocation220_spill] sm:$0xff] %v3195_v59  ;;  %5560 = vst [vmem:[#allocation221_spill] sm:$0xff] %v3197_v47  ;;  %v635_v29 = vmul.f32 %v1902_v27, %v3197_v47  ;;  %v636_v32 = vmul.f32 %v1902_v27, %v3203_v57  ;;  %v637_v11 = vmul.f32 %v1902_v27, %v3205_v45  ;;  %p2033_p6 = pnand %p2032_p5, %p2026_p2 }
  0xbc   :  { %5561 = vst [vmem:[#allocation222_spill] sm:$0xff] %v3203_v57  ;;  %5563 = vst [vmem:[#allocation224_spill] sm:$0xff] %v3207_v62  ;;  %v638_v12 = vmul.f32 %v1902_v27, %v3207_v62  ;;  %v639_v37 = vmul.f32 %v1902_v27, %v3213_v14  ;;  %v640_v26 = vmul.f32 %v1902_v27, %v3215_v51  ;;  %v5575_v62 = vld [vmem:[#allocation121_spill] sm:$0xff] }
  0xbd   :  { %5564 = vst [vmem:[#allocation225_spill] sm:$0xff] %v3213_v14  ;;  %5565 = vst [vmem:[#allocation226_spill] sm:$0xff] %v3215_v51  ;;  %v641_v59 = vmul.f32 %v1902_v27, %v3217_v21  ;;  %v642_v47 = vmul.f32 %v1902_v27, %v3223_v49  ;;  %v643_v57 = vmul.f32 %v1902_v27, %v3225_v56  ;;  %v5576_v14 = vld [vmem:[#allocation40_spill] sm:$0xff] }
  0xbe   :  { %5566 = vst [vmem:[#allocation227_spill] sm:$0xff] %v3217_v21  ;;  %5567 = vst [vmem:[#allocation228_spill] sm:$0xff] %v3223_v49  ;;  %v644_v45 = vmul.f32 %v1902_v27, %v3227_v3  ;;  %v3238_v34 = vmul.f32 %v5571_v33, %v5570_v1  ;;  %v3242_v58 = vmul.f32 %v5573_v61, %v5572_v13  ;;  %v5578_v51 = vld [vmem:[#allocation124_spill] sm:$0xff]  ;;  %v5579_v21 = vld [vmem:[#allocation41_spill] sm:$0xff] }
  0xbf   :  { %5568 = vst [vmem:[#allocation229_spill] sm:$0xff] %v3225_v56  ;;  %5569 = vst [vmem:[#allocation230_spill] sm:$0xff] %v3227_v3  ;;  %v3246_v53 = vmul.f32 %v5576_v14, %v5575_v62  ;;  %v3250_v52 = vmul.f32 %v5579_v21, %v5578_v51  ;;  %v5580_v49 = vld [vmem:[#allocation127_spill] sm:$0xff]  ;;  %v5581_v56 = vld [vmem:[#allocation42_spill] sm:$0xff] }
  0xc0   :  { %5574 = vst [vmem:[#allocation115_spill] sm:$0xff] %v3242_v58  ;;  %v3254_v44 = vmul.f32 %v5581_v56, %v5580_v49  ;;  %v5582_v27 = vld [vmem:[#allocation130_spill] sm:$0xff]  ;;  %v5583_v33 = vld [vmem:[#allocation133_spill] sm:$0xff]  ;;  %v5584_v61 = vld [vmem:[#allocation136_spill] sm:$0xff] }
  0xc1   :  { %5577 = vst [vmem:[#allocation38_spill] sm:$0xff] %v3246_v53  ;;  %v3257_v3 = vmul.f32 %v612_v7, %v5582_v27  ;;  %v3260_v1 = vmul.f32 %v613_v42, %v5583_v33  ;;  %v3263_v13 = vmul.f32 %v614_v2, %v5584_v61  ;;  %v5585_v58 = vld [vmem:[#allocation139_spill] sm:$0xff]  ;;  %v5586_v14 = vld [vmem:[#allocation142_spill] sm:$0xff]  ;;  %v5587_v51 = vld [vmem:[#allocation145_spill] sm:$0xff] }
  0xc2   :  { %v3266_v62 = vmul.f32 %v615_v36, %v5585_v58  ;;  %v3269_v53 = vmul.f32 %v616_v5, %v5586_v14  ;;  %v3272_v21 = vmul.f32 %v617_v43, %v5587_v51  ;;  %v5589_v56 = vld [vmem:[#allocation148_spill] sm:$0xff]  ;;  %v5591_v7 = vld [vmem:[#allocation151_spill] sm:$0xff]  ;;  %v5593_v42 = vld [vmem:[#allocation154_spill] sm:$0xff] }
  0xc3   :  { %v3275_v49 = vmul.f32 %v618_v31, %v5589_v56  ;;  %v3278_v27 = vmul.f32 %v619_v30, %v5591_v7  ;;  %v3281_v33 = vmul.f32 %v620_v9, %v5593_v42  ;;  %v5595_v2 = vld [vmem:[#allocation156_spill] sm:$0xff]  ;;  %v5597_v58 = vld [vmem:[#allocation161_spill] sm:$0xff]  ;;  %v5599_v5 = vld [vmem:[#allocation163_spill] sm:$0xff] }
  0xc4   :  { %5588 = vst [vmem:[#allocation118_spill] sm:$0xff] %v3272_v21  ;;  %v3284_v61 = vmul.f32 %v621_v17, %v5595_v2  ;;  %v3287_v36 = vmul.f32 %v622_v23, %v5597_v58  ;;  %v3290_v14 = vmul.f32 %v623_v35, %v5599_v5  ;;  %v5601_v43 = vld [vmem:[#allocation166_spill] sm:$0xff]  ;;  %v5605_v30 = vld [vmem:[#allocation171_spill] sm:$0xff]  ;;  %v5609_v17 = vld [vmem:[#allocation176_spill] sm:$0xff] }
  0xc5   :  { %5590 = vst [vmem:[#allocation39_spill] sm:$0xff] %v3275_v49  ;;  %5592 = vst [vmem:[#allocation121_spill] sm:$0xff] %v3278_v27  ;;  %v3293_v51 = vmul.f32 %v624_v41, %v5601_v43  ;;  %v5603_v31 = vld [vmem:[#allocation170_spill] sm:$0xff]  ;;  %v3299_v7 = vmul.f32 %v626_v15, %v5605_v30  ;;  %v3305_v2 = vmul.f32 %v628_v39, %v5609_v17  ;;  %v5613_v35 = vld [vmem:[#allocation179_spill] sm:$0xff] }
  0xc6   :  { %5594 = vst [vmem:[#allocation40_spill] sm:$0xff] %v3281_v33  ;;  %5596 = vst [vmem:[#allocation124_spill] sm:$0xff] %v3284_v61  ;;  %v3296_v56 = vmul.f32 %v625_v20, %v5603_v31  ;;  %v5607_v9 = vld [vmem:[#allocation174_spill] sm:$0xff]  ;;  %v3311_v5 = vmul.f32 %v630_v63, %v5613_v35  ;;  %v5617_v20 = vld [vmem:[#allocation183_spill] sm:$0xff]  ;;  %v3332_v63 = vmul.f32 %v637_v11, %v3023_v19  ;;  %v3396_v35 = vsub.f32 1.0, %v3124_v10 }
  0xc7   :  { %5598 = vst [vmem:[#allocation41_spill] sm:$0xff] %v3287_v36  ;;  %5600 = vst [vmem:[#allocation127_spill] sm:$0xff] %v3290_v14  ;;  %v3302_v42 = vmul.f32 %v627_v40, %v5607_v9  ;;  %v5611_v23 = vld [vmem:[#allocation178_spill] sm:$0xff]  ;;  %v3317_v31 = vmul.f32 %v632_v28, %v5617_v20  ;;  %v5619_v15 = vld [vmem:[#allocation184_spill] sm:$0xff]  ;;  %v3338_v28 = vmul.f32 %v639_v37, %v3045_v50 }
  0xc8   :  { %5602 = vst [vmem:[#allocation42_spill] sm:$0xff] %v3293_v51  ;;  %5604 = vst [vmem:[#allocation130_spill] sm:$0xff] %v3296_v56  ;;  %v3308_v58 = vmul.f32 %v629_v22, %v5611_v23  ;;  %v5615_v41 = vld [vmem:[#allocation182_spill] sm:$0xff]  ;;  %v3320_v30 = vmul.f32 %v633_v60, %v5619_v15  ;;  %v5621_v40 = vld [vmem:[#allocation187_spill] sm:$0xff]  ;;  %v3341_v60 = vmul.f32 %v640_v26, %v3054_v24  ;;  %v3381_v24 = vsub.f32 1.0, %v3106_v46 }
  0xc9   :  { %5606 = vst [vmem:[#allocation133_spill] sm:$0xff] %v3299_v7  ;;  %5608 = vst [vmem:[#allocation136_spill] sm:$0xff] %v3302_v42  ;;  %v3314_v43 = vmul.f32 %v631_v48, %v5615_v41  ;;  %v3323_v9 = vmul.f32 %v634_v25, %v5621_v40  ;;  %v5623_v39 = vld [vmem:[#allocation190_spill] sm:$0xff]  ;;  %v5625_v22 = vld [vmem:[#allocation192_spill] sm:$0xff]  ;;  %v3335_v48 = vmul.f32 %v638_v12, %v3034_v54 }
  0xca   :  { %5610 = vst [vmem:[#allocation139_spill] sm:$0xff] %v3305_v2  ;;  %5612 = vst [vmem:[#allocation142_spill] sm:$0xff] %v3308_v58  ;;  %v3326_v17 = vmul.f32 %v635_v29, %v5623_v39  ;;  %v3329_v23 = vmul.f32 %v636_v32, %v5625_v22  ;;  %v3344_v25 = vmul.f32 %v641_v59, %v3059_v4  ;;  %v3355_v54 = vld [vmem:[#allocation5] sm:$0xff]  ;;  %v3360_v37 = vld [vmem:[#allocation5 + $0x8] sm:$0xff]  ;;  %v3384_v4 = vsub.f32 1.0, %v3108_v16 }
  0xcb   :  { %5614 = vst [vmem:[#allocation145_spill] sm:$0xff] %v3311_v5  ;;  %5616 = vst [vmem:[#allocation148_spill] sm:$0xff] %v3314_v43  ;;  %v3347_v29 = vmul.f32 %v642_v47, %v3068_v55  ;;  %v3350_v32 = vmul.f32 %v643_v57, %v3079_v38  ;;  %v3353_v11 = vmul.f32 %v644_v45, %v3090_v18  ;;  %v3358_v12 = vsub.f32 1.0, %v3355_v54  ;;  %v3365_v59 = vld [vmem:[#allocation5 + $0x10] sm:$0xff]  ;;  %v3370_v57 = vld [vmem:[#allocation5 + $0x18] sm:$0xff] }
  0xcc   :  { %5618 = vst [vmem:[#allocation151_spill] sm:$0xff] %v3317_v31  ;;  %5620 = vst [vmem:[#allocation154_spill] sm:$0xff] %v3320_v30  ;;  %v3363_v19 = vsub.f32 1.0, %v3360_v37  ;;  %v3368_v47 = vsub.f32 1.0, %v3365_v59  ;;  %v3373_v45 = vsub.f32 1.0, %v3370_v57  ;;  %v3375_v26 = vld [vmem:[#allocation5 + $0x20] sm:$0xff] }
  0xcd   :  { %5622 = vst [vmem:[#allocation156_spill] sm:$0xff] %v3323_v9  ;;  %5624 = vst [vmem:[#allocation161_spill] sm:$0xff] %v3326_v17  ;;  %v3378_v50 = vsub.f32 1.0, %v3375_v26  ;;  %v3387_v55 = vsub.f32 1.0, %v3118_v6  ;;  %v3390_v38 = vsub.f32 1.0, %v3120_v8  ;;  %v3393_v18 = vsub.f32 1.0, %v3122_v0 }
  0xce   :  { %5626 = vst [vmem:[#allocation163_spill] sm:$0xff] %v3329_v23  ;;  %5627 = vst [vmem:[#allocation166_spill] sm:$0xff] %v3332_v63  ;;  %v5651_v41 = vld [vmem:[#allocation204_spill] sm:$0xff]  ;;  %v5653_v15 = vld [vmem:[#allocation205_spill] sm:$0xff] }
  0xcf   :  { %5628 = vst [vmem:[#allocation170_spill] sm:$0xff] %v3335_v48  ;;  %5629 = vst [vmem:[#allocation171_spill] sm:$0xff] %v3338_v28  ;;  %v3399_v20 = vsub.f32 1.0, %v5651_v41  ;;  %v3402_v40 = vsub.f32 1.0, %v5653_v15  ;;  %v5655_v39 = vld [vmem:[#allocation206_spill] sm:$0xff]  ;;  %v5657_v6 = vld [vmem:[#allocation207_spill] sm:$0xff] }
  0xd0   :  { %5630 = vst [vmem:[#allocation174_spill] sm:$0xff] %v3341_v60  ;;  %5631 = vst [vmem:[#allocation176_spill] sm:$0xff] %v3344_v25  ;;  %v3405_v22 = vsub.f32 1.0, %v5655_v39  ;;  %v3408_v16 = vsub.f32 1.0, %v5657_v6  ;;  %v5659_v8 = vld [vmem:[#allocation208_spill] sm:$0xff]  ;;  %v5661_v0 = vld [vmem:[#allocation209_spill] sm:$0xff] }
  0xd1   :  { %5632 = vst [vmem:[#allocation178_spill] sm:$0xff] %v3347_v29  ;;  %5633 = vst [vmem:[#allocation179_spill] sm:$0xff] %v3350_v32  ;;  %v3411_v46 = vsub.f32 1.0, %v5659_v8  ;;  %v5663_v10 = vld [vmem:[#allocation210_spill] sm:$0xff]  ;;  %v5665_v41 = vld [vmem:[#allocation211_spill] sm:$0xff] }
  0xd2   :  { %5634 = vst [vmem:[#allocation182_spill] sm:$0xff] %v3353_v11  ;;  %5635 = vst [vmem:[#allocation183_spill] sm:$0xff] %v3355_v54  ;;  %v5667_v15 = vld [vmem:[#allocation212_spill] sm:$0xff]  ;;  %v5669_v39 = vld [vmem:[#allocation213_spill] sm:$0xff] }
  0xd3   :  { %5636 = vst [vmem:[#allocation184_spill] sm:$0xff] %v3358_v12  ;;  %5637 = vst [vmem:[#allocation187_spill] sm:$0xff] %v3360_v37  ;;  %v3423_v37 = vsub.f32 1.0, %v5667_v15  ;;  %v3426_v54 = vsub.f32 1.0, %v5669_v39  ;;  %v5671_v6 = vld [vmem:[#allocation214_spill] sm:$0xff]  ;;  %v5673_v8 = vld [vmem:[#allocation215_spill] sm:$0xff] }
  0xd4   :  { %5638 = vst [vmem:[#allocation190_spill] sm:$0xff] %v3363_v19  ;;  %5639 = vst [vmem:[#allocation192_spill] sm:$0xff] %v3365_v59  ;;  %v3420_v59 = vsub.f32 1.0, %v5665_v41  ;;  %v3429_v11 = vsub.f32 1.0, %v5671_v6  ;;  %v3432_v32 = vsub.f32 1.0, %v5673_v8  ;;  %v5679_v41 = vld [vmem:[#allocation218_spill] sm:$0xff] }
  0xd5   :  { %5640 = vst [vmem:[#allocation231_spill] sm:$0xff] %v3368_v47  ;;  %5641 = vst [vmem:[#allocation232_spill] sm:$0xff] %v3370_v57  ;;  %v3417_v57 = vsub.f32 1.0, %v5663_v10  ;;  %v5677_v10 = vld [vmem:[#allocation217_spill] sm:$0xff]  ;;  %v3441_v60 = vsub.f32 1.0, %v5679_v41  ;;  %v5681_v15 = vld [vmem:[#allocation219_spill] sm:$0xff] }
  0xd6   :  { %5642 = vst [vmem:[#allocation233_spill] sm:$0xff] %v3373_v45  ;;  %5643 = vst [vmem:[#allocation234_spill] sm:$0xff] %v3375_v26  ;;  %v3414_v26 = vsub.f32 1.0, %v5661_v0  ;;  %v5675_v0 = vld [vmem:[#allocation216_spill] sm:$0xff]  ;;  %v3438_v25 = vsub.f32 1.0, %v5677_v10  ;;  %v3444_v28 = vsub.f32 1.0, %v5681_v15 }
  0xd7   :  { %5644 = vst [vmem:[#allocation235_spill] sm:$0xff] %v3378_v50  ;;  %5645 = vst [vmem:[#allocation236_spill] sm:$0xff] %v3381_v24  ;;  %v3435_v29 = vsub.f32 1.0, %v5675_v0  ;;  %v5683_v39 = vld [vmem:[#allocation220_spill] sm:$0xff]  ;;  %v5685_v6 = vld [vmem:[#allocation221_spill] sm:$0xff] }
  0xd8   :  { %5646 = vst [vmem:[#allocation237_spill] sm:$0xff] %v3384_v4  ;;  %5647 = vst [vmem:[#allocation238_spill] sm:$0xff] %v3387_v55  ;;  %v3447_v48 = vsub.f32 1.0, %v5683_v39  ;;  %v3450_v63 = vsub.f32 1.0, %v5685_v6  ;;  %v5687_v8 = vld [vmem:[#allocation222_spill] sm:$0xff]  ;;  %v5689_v0 = vld [vmem:[#allocation223_spill] sm:$0xff] }
  0xd9   :  { %5648 = vst [vmem:[#allocation239_spill] sm:$0xff] %v3390_v38  ;;  %5649 = vst [vmem:[#allocation240_spill] sm:$0xff] %v3393_v18  ;;  %v3453_v23 = vsub.f32 1.0, %v5687_v8  ;;  %v3456_v17 = vsub.f32 1.0, %v5689_v0  ;;  %v5691_v10 = vld [vmem:[#allocation224_spill] sm:$0xff]  ;;  %v5693_v41 = vld [vmem:[#allocation225_spill] sm:$0xff] }
  0xda   :  { %5650 = vst [vmem:[#allocation241_spill] sm:$0xff] %v3396_v35  ;;  %5652 = vst [vmem:[#allocation242_spill] sm:$0xff] %v3399_v20  ;;  %v3459_v9 = vsub.f32 1.0, %v5691_v10  ;;  %v3462_v30 = vsub.f32 1.0, %v5693_v41  ;;  %v5695_v15 = vld [vmem:[#allocation226_spill] sm:$0xff]  ;;  %v5697_v39 = vld [vmem:[#allocation227_spill] sm:$0xff] }
  0xdb   :  { %5654 = vst [vmem:[#allocation243_spill] sm:$0xff] %v3402_v40  ;;  %5656 = vst [vmem:[#allocation244_spill] sm:$0xff] %v3405_v22  ;;  %v3465_v31 = vsub.f32 1.0, %v5695_v15  ;;  %v3468_v43 = vsub.f32 1.0, %v5697_v39  ;;  %v5699_v6 = vld [vmem:[#allocation228_spill] sm:$0xff]  ;;  %v5701_v8 = vld [vmem:[#allocation229_spill] sm:$0xff] }
  0xdc   :  { %5658 = vst [vmem:[#allocation245_spill] sm:$0xff] %v3408_v16  ;;  %5660 = vst [vmem:[#allocation246_spill] sm:$0xff] %v3411_v46  ;;  %v3471_v5 = vsub.f32 1.0, %v5699_v6  ;;  %v3474_v58 = vsub.f32 1.0, %v5701_v8  ;;  %v5703_v0 = vld [vmem:[#allocation230_spill] sm:$0xff]  ;;  %v5705_v10 = vld [vmem:[#allocation107_spill] sm:$0xff] }
  0xdd   :  { %5662 = vst [vmem:[#allocation247_spill] sm:$0xff] %v3414_v26  ;;  %5664 = vst [vmem:[#allocation248_spill] sm:$0xff] %v3417_v57  ;;  %v3477_v2 = vsub.f32 1.0, %v5703_v0  ;;  %v5706_v42 = vld [vmem:[#allocation104_spill] sm:$0xff]  ;;  %v5708_v56 = vld [vmem:[#allocation109_spill] sm:$0xff] }
  0xde   :  { %5666 = vst [vmem:[#allocation249_spill] sm:$0xff] %v3420_v59  ;;  %5668 = vst [vmem:[#allocation250_spill] sm:$0xff] %v3423_v37  ;;  %v5707_v7 = vsub.f32 %v5705_v10, %v5706_v42  ;;  %v5709_v15 = vld [vmem:[#allocation106_spill] sm:$0xff]  ;;  %v5712_v36 = vld [vmem:[#allocation108_spill] sm:$0xff] }
  0xdf   :  { %5670 = vst [vmem:[#allocation251_spill] sm:$0xff] %v3426_v54  ;;  %5672 = vst [vmem:[#allocation252_spill] sm:$0xff] %v3429_v11  ;;  %v5710_v51 = vsub.f32 %v5708_v56, %v5709_v15  ;;  %v5711_v14 = vld [vmem:[#allocation110_spill] sm:$0xff]  ;;  %v5714_v8 = vld [vmem:[#allocation112_spill] sm:$0xff] }
  0xe0   :  { %5674 = vst [vmem:[#allocation253_spill] sm:$0xff] %v3432_v32  ;;  %5676 = vst [vmem:[#allocation254_spill] sm:$0xff] %v3435_v29  ;;  %v721_v41 = vmul.f32 %v3358_v12, %v5707_v7  ;;  %v5713_v6 = vsub.f32 %v5711_v14, %v5712_v36  ;;  %v5715_v33 = vld [vmem:[#allocation111_spill] sm:$0xff]  ;;  %v5717_v49 = vld [vmem:[#allocation113_spill] sm:$0xff] }
  0xe1   :  { %5678 = vst [vmem:[#allocation255_spill] sm:$0xff] %v3438_v25  ;;  %5680 = vst [vmem:[#allocation256_spill] sm:$0xff] %v3441_v60  ;;  %v722_v39 = vmul.f32 %v3363_v19, %v5710_v51  ;;  %v5716_v27 = vsub.f32 %v5714_v8, %v5715_v33  ;;  %v5718_v21 = vld [vmem:[#allocation114_spill] sm:$0xff]  ;;  %v5720_v42 = vld [vmem:[#allocation116_spill] sm:$0xff] }
  0xe2   :  { %5682 = vst [vmem:[#allocation257_spill] sm:$0xff] %v3444_v28  ;;  %5684 = vst [vmem:[#allocation258_spill] sm:$0xff] %v3447_v48  ;;  %v723_v61 = vmul.f32 %v3368_v47, %v5713_v6  ;;  %v5719_v10 = vsub.f32 %v5717_v49, %v5718_v21  ;;  %v5721_v12 = vld [vmem:[#allocation117_spill] sm:$0xff]  ;;  %v5723_v15 = vld [vmem:[#allocation119_spill] sm:$0xff] }
  0xe3   :  { %5686 = vst [vmem:[#allocation259_spill] sm:$0xff] %v3450_v63  ;;  %5688 = vst [vmem:[#allocation260_spill] sm:$0xff] %v3453_v23  ;;  %v724_v0 = vmul.f32 %v3373_v45, %v5716_v27  ;;  %v5722_v56 = vsub.f32 %v5720_v42, %v5721_v12  ;;  %v5724_v19 = vld [vmem:[#allocation120_spill] sm:$0xff]  ;;  %v5726_v14 = vld [vmem:[#allocation122_spill] sm:$0xff] }
  0xe4   :  { %5690 = vst [vmem:[#allocation261_spill] sm:$0xff] %v3456_v17  ;;  %5692 = vst [vmem:[#allocation262_spill] sm:$0xff] %v3459_v9  ;;  %v725_v7 = vmul.f32 %v3378_v50, %v5719_v10  ;;  %v5725_v36 = vsub.f32 %v5723_v15, %v5724_v19  ;;  %v5727_v47 = vld [vmem:[#allocation123_spill] sm:$0xff]  ;;  %v5729_v33 = vld [vmem:[#allocation125_spill] sm:$0xff] }
  0xe5   :  { %5694 = vst [vmem:[#allocation263_spill] sm:$0xff] %v3462_v30  ;;  %5696 = vst [vmem:[#allocation264_spill] sm:$0xff] %v3465_v31  ;;  %v726_v51 = vmul.f32 %v3381_v24, %v5722_v56  ;;  %v5728_v8 = vsub.f32 %v5726_v14, %v5727_v47  ;;  %v5730_v45 = vld [vmem:[#allocation126_spill] sm:$0xff]  ;;  %v5732_v10 = vld [vmem:[#allocation128_spill] sm:$0xff] }
  0xe6   :  { %5698 = vst [vmem:[#allocation265_spill] sm:$0xff] %v3468_v43  ;;  %5700 = vst [vmem:[#allocation266_spill] sm:$0xff] %v3471_v5  ;;  %v727_v6 = vmul.f32 %v3384_v4, %v5725_v36  ;;  %v5731_v21 = vsub.f32 %v5729_v33, %v5730_v45  ;;  %v5733_v50 = vld [vmem:[#allocation129_spill] sm:$0xff]  ;;  %v5735_v56 = vld [vmem:[#allocation131_spill] sm:$0xff] }
  0xe7   :  { %5702 = vst [vmem:[#allocation267_spill] sm:$0xff] %v3474_v58  ;;  %5704 = vst [vmem:[#allocation268_spill] sm:$0xff] %v3477_v2  ;;  %v728_v27 = vmul.f32 %v3387_v55, %v5728_v8  ;;  %v5734_v12 = vsub.f32 %v5732_v10, %v5733_v50  ;;  %v5736_v24 = vld [vmem:[#allocation132_spill] sm:$0xff]  ;;  %v5738_v36 = vld [vmem:[#allocation134_spill] sm:$0xff] }
  0xe8   :  { %v729_v49 = vmul.f32 %v3390_v38, %v5731_v21  ;;  %v5737_v19 = vsub.f32 %v5735_v56, %v5736_v24  ;;  %v5739_v4 = vld [vmem:[#allocation135_spill] sm:$0xff]  ;;  %v5741_v8 = vld [vmem:[#allocation137_spill] sm:$0xff]  ;;  %v5742_v55 = vld [vmem:[#allocation138_spill] sm:$0xff] }
  0xe9   :  { %v730_v42 = vmul.f32 %v3393_v18, %v5734_v12  ;;  %v5740_v47 = vsub.f32 %v5738_v36, %v5739_v4  ;;  %v5743_v45 = vsub.f32 %v5741_v8, %v5742_v55  ;;  %v5744_v21 = vld [vmem:[#allocation140_spill] sm:$0xff]  ;;  %v5745_v38 = vld [vmem:[#allocation141_spill] sm:$0xff]  ;;  %v5747_v12 = vld [vmem:[#allocation143_spill] sm:$0xff] }
  0xea   :  { %v731_v15 = vmul.f32 %v3396_v35, %v5737_v19  ;;  %v5746_v50 = vsub.f32 %v5744_v21, %v5745_v38  ;;  %v5748_v18 = vld [vmem:[#allocation144_spill] sm:$0xff]  ;;  %v5750_v19 = vld [vmem:[#allocation146_spill] sm:$0xff]  ;;  %v5751_v35 = vld [vmem:[#allocation147_spill] sm:$0xff] }
  0xeb   :  { %v732_v14 = vmul.f32 %v3399_v20, %v5740_v47  ;;  %v733_v33 = vmul.f32 %v3402_v40, %v5743_v45  ;;  %v5749_v24 = vsub.f32 %v5747_v12, %v5748_v18  ;;  %v5752_v4 = vsub.f32 %v5750_v19, %v5751_v35  ;;  %v5753_v47 = vld [vmem:[#allocation149_spill] sm:$0xff]  ;;  %v5754_v20 = vld [vmem:[#allocation150_spill] sm:$0xff]  ;;  %v5756_v45 = vld [vmem:[#allocation152_spill] sm:$0xff] }
  0xec   :  { %v734_v10 = vmul.f32 %v3405_v22, %v5746_v50  ;;  %v5755_v55 = vsub.f32 %v5753_v47, %v5754_v20  ;;  %v5757_v40 = vld [vmem:[#allocation153_spill] sm:$0xff]  ;;  %v5759_v50 = vld [vmem:[#allocation155_spill] sm:$0xff] }
  0xed   :  { %v735_v56 = vmul.f32 %v3408_v16, %v5749_v24  ;;  %v736_v36 = vmul.f32 %v3411_v46, %v5752_v4  ;;  %v5758_v38 = vsub.f32 %v5756_v45, %v5757_v40  ;;  %v5760_v22 = vld [vmem:[#allocation159_spill] sm:$0xff]  ;;  %v5762_v24 = vld [vmem:[#allocation157_spill] sm:$0xff]  ;;  %v5763_v16 = vld [vmem:[#allocation160_spill] sm:$0xff] }
  0xee   :  { %v737_v8 = vmul.f32 %v3414_v26, %v5755_v55  ;;  %v5761_v18 = vsub.f32 %v5759_v50, %v5760_v22  ;;  %v5764_v35 = vsub.f32 %v5762_v24, %v5763_v16  ;;  %v5765_v4 = vld [vmem:[#allocation158_spill] sm:$0xff]  ;;  %v5768_v55 = vld [vmem:[#allocation164_spill] sm:$0xff]  ;;  %v5769_v26 = vld [vmem:[#allocation165_spill] sm:$0xff] }
  0xef   :  { %v738_v21 = vmul.f32 %v3417_v57, %v5758_v38  ;;  %v5766_v46 = vld [vmem:[#allocation162_spill] sm:$0xff]  ;;  %v5770_v40 = vsub.f32 %v5768_v55, %v5769_v26  ;;  %v5772_v57 = vld [vmem:[#allocation167_spill] sm:$0xff] }
  0xf0   :  { %v739_v12 = vmul.f32 %v3420_v59, %v5761_v18  ;;  %v740_v19 = vmul.f32 %v3423_v37, %v5764_v35  ;;  %v5767_v20 = vsub.f32 %v5765_v4, %v5766_v46  ;;  %v5771_v38 = vld [vmem:[#allocation22_spill] sm:$0xff]  ;;  %v5774_v18 = vld [vmem:[#allocation23_spill] sm:$0xff]  ;;  %v5775_v59 = vld [vmem:[#allocation168_spill] sm:$0xff] }
  0xf1   :  { %v742_v45 = vmul.f32 %v3429_v11, %v5770_v40  ;;  %v5773_v22 = vsub.f32 %v5771_v38, %v5772_v57  ;;  %v5776_v16 = vsub.f32 %v5774_v18, %v5775_v59  ;;  %v5777_v35 = vld [vmem:[#allocation24_spill] sm:$0xff]  ;;  %v5778_v37 = vld [vmem:[#allocation169_spill] sm:$0xff]  ;;  %v5783_v40 = vld [vmem:[#allocation26_spill] sm:$0xff] }
  0xf2   :  { %v741_v47 = vmul.f32 %v3426_v54, %v5767_v20  ;;  %v5779_v46 = vsub.f32 %v5777_v35, %v5778_v37  ;;  %v5780_v20 = vld [vmem:[#allocation25_spill] sm:$0xff]  ;;  %v5781_v54 = vld [vmem:[#allocation172_spill] sm:$0xff] }
  0xf3   :  { %v743_v50 = vmul.f32 %v3432_v32, %v5773_v22  ;;  %v744_v24 = vmul.f32 %v3435_v29, %v5776_v16  ;;  %v5782_v26 = vsub.f32 %v5780_v20, %v5781_v54  ;;  %v5784_v11 = vld [vmem:[#allocation173_spill] sm:$0xff]  ;;  %v5786_v22 = vld [vmem:[#allocation27_spill] sm:$0xff]  ;;  %v5789_v16 = vld [vmem:[#allocation180_spill] sm:$0xff] }
  0xf4   :  { %v745_v4 = vmul.f32 %v3438_v25, %v5779_v46  ;;  %v5785_v57 = vsub.f32 %v5783_v40, %v5784_v11  ;;  %v5787_v32 = vld [vmem:[#allocation175_spill] sm:$0xff]  ;;  %v5790_v29 = vld [vmem:[#allocation177_spill] sm:$0xff] }
  0xf5   :  { %v746_v55 = vmul.f32 %v3441_v60, %v5782_v26  ;;  %v5788_v59 = vsub.f32 %v5786_v22, %v5787_v32  ;;  %v5791_v37 = vsub.f32 %v5789_v16, %v5790_v29  ;;  %v5792_v46 = vld [vmem:[#allocation29_spill] sm:$0xff]  ;;  %v5795_v26 = vld [vmem:[#allocation30_spill] sm:$0xff] }
  0xf6   :  { %v747_v38 = vmul.f32 %v3444_v28, %v5785_v57  ;;  %v5793_v25 = vld [vmem:[#allocation181_spill] sm:$0xff]  ;;  %v5796_v60 = vld [vmem:[#allocation186_spill] sm:$0xff]  ;;  %v5798_v57 = vld [vmem:[#allocation31_spill] sm:$0xff] }
  0xf7   :  { %v748_v18 = vmul.f32 %v3447_v48, %v5788_v59  ;;  %v749_v35 = vmul.f32 %v3450_v63, %v5791_v37  ;;  %v5794_v54 = vsub.f32 %v5792_v46, %v5793_v25  ;;  %v5797_v11 = vsub.f32 %v5795_v26, %v5796_v60  ;;  %v5799_v28 = vld [vmem:[#allocation189_spill] sm:$0xff]  ;;  %v5802_v48 = vld [vmem:[#allocation191_spill] sm:$0xff] }
  0xf8   :  { %v5800_v32 = vsub.f32 %v5798_v57, %v5799_v28  ;;  %v5801_v59 = vld [vmem:[#allocation185_spill] sm:$0xff] }
  0xf9   :  { %v750_v20 = vmul.f32 %v3453_v23, %v5794_v54  ;;  %v751_v40 = vmul.f32 %v3456_v17, %v5797_v11  ;;  %v5803_v29 = vsub.f32 %v5801_v59, %v5802_v48  ;;  %v5804_v37 = vld [vmem:[#allocation33_spill] sm:$0xff]  ;;  %v5807_v54 = vld [vmem:[#allocation188_spill] sm:$0xff]  ;;  %v5808_v23 = vld [vmem:[#allocation194_spill] sm:$0xff] }
  0xfa   :  { %v752_v22 = vmul.f32 %v3459_v9, %v5800_v32  ;;  %v5805_v63 = vld [vmem:[#allocation193_spill] sm:$0xff]  ;;  %v5809_v60 = vsub.f32 %v5807_v54, %v5808_v23  ;;  %v5810_v11 = vld [vmem:[#allocation35_spill] sm:$0xff]  ;;  %v5813_v32 = vld [vmem:[#allocation36_spill] sm:$0xff] }
  0xfb   :  { %v753_v16 = vmul.f32 %v3462_v30, %v5803_v29  ;;  %v5806_v25 = vsub.f32 %v5804_v37, %v5805_v63  ;;  %v5811_v17 = vld [vmem:[#allocation195_spill] sm:$0xff]  ;;  %v5814_v9 = vld [vmem:[#allocation196_spill] sm:$0xff]  ;;  %v5816_v29 = vld [vmem:[#allocation37_spill] sm:$0xff] }
  0xfc   :  { %v755_v26 = vmul.f32 %v3468_v43, %v5809_v60  ;;  %v5812_v28 = vsub.f32 %v5810_v11, %v5811_v17  ;;  %v5815_v48 = vsub.f32 %v5813_v32, %v5814_v9  ;;  %v5817_v30 = vld [vmem:[#allocation197_spill] sm:$0xff]  ;;  %v5820_v23 = vld [vmem:[#allocation115_spill] sm:$0xff]  ;;  %v5822_v60 = vld [vmem:[#allocation38_spill] sm:$0xff]  ;;  %v3641_v11 = vadd.f32 %v724_v0, %v3250_v52 }
  0xfd   :  { %v754_v46 = vmul.f32 %v3465_v31, %v5806_v25  ;;  %v5818_v63 = vsub.f32 %v5816_v29, %v5817_v30  ;;  %v3632_v25 = vadd.f32 %v721_v41, %v3238_v34  ;;  %v3635_v54 = vadd.f32 %v722_v39, %v5820_v23  ;;  %v5831_v0 = vld [vmem:[#allocation118_spill] sm:$0xff] }
  0xfe   :  { %v756_v57 = vmul.f32 %v3471_v5, %v5812_v28  ;;  %v757_v59 = vmul.f32 %v3474_v58, %v5815_v48  ;;  %v3638_v17 = vadd.f32 %v723_v61, %v5822_v60  ;;  %5824 = vst [vmem:[#allocation106_spill] sm:$0xff] %v3641_v11  ;;  %v3644_v9 = vadd.f32 %v725_v7, %v3254_v44  ;;  %v5833_v44 = vld [vmem:[#allocation39_spill] sm:$0xff]  ;;  %v5951_v11 = vld [vmem:[#allocation98_spill] sm:$0xff] }
  0xff   :  { %v758_v37 = vmul.f32 %v3477_v2, %v5818_v63  ;;  %5819 = vst [vmem:[#allocation107_spill] sm:$0xff] %v3632_v25  ;;  %5821 = vst [vmem:[#allocation104_spill] sm:$0xff] %v3635_v54  ;;  %v3647_v28 = vadd.f32 %v726_v51, %v3257_v3  ;;  %v3650_v30 = vadd.f32 %v727_v6, %v3260_v1  ;;  %v5835_v3 = vld [vmem:[#allocation121_spill] sm:$0xff]  ;;  %v5837_v1 = vld [vmem:[#allocation40_spill] sm:$0xff] }
 0x100   :  { %5823 = vst [vmem:[#allocation109_spill] sm:$0xff] %v3638_v17  ;;  %5825 = vst [vmem:[#allocation110_spill] sm:$0xff] %v3644_v9  ;;  %v3653_v34 = vadd.f32 %v728_v27, %v3263_v13  ;;  %v3656_v41 = vadd.f32 %v729_v49, %v3266_v62  ;;  %v3659_v61 = vadd.f32 %v730_v42, %v3269_v53  ;;  %v5839_v13 = vld [vmem:[#allocation124_spill] sm:$0xff]  ;;  %v5841_v62 = vld [vmem:[#allocation41_spill] sm:$0xff] }
 0x101   :  { %5826 = vst [vmem:[#allocation108_spill] sm:$0xff] %v3647_v28  ;;  %5827 = vst [vmem:[#allocation112_spill] sm:$0xff] %v3650_v30  ;;  %v3662_v52 = vadd.f32 %v731_v15, %v5831_v0  ;;  %v3665_v39 = vadd.f32 %v732_v14, %v5833_v44  ;;  %v3668_v7 = vadd.f32 %v733_v33, %v5835_v3  ;;  %v5843_v53 = vld [vmem:[#allocation127_spill] sm:$0xff]  ;;  %v5845_v42 = vld [vmem:[#allocation42_spill] sm:$0xff] }
 0x102   :  { %5828 = vst [vmem:[#allocation111_spill] sm:$0xff] %v3653_v34  ;;  %5829 = vst [vmem:[#allocation113_spill] sm:$0xff] %v3656_v41  ;;  %v3671_v51 = vadd.f32 %v734_v10, %v5837_v1  ;;  %v3674_v6 = vadd.f32 %v735_v56, %v5839_v13  ;;  %v3677_v27 = vadd.f32 %v736_v36, %v5841_v62  ;;  %v5847_v14 = vld [vmem:[#allocation130_spill] sm:$0xff]  ;;  %v5849_v33 = vld [vmem:[#allocation133_spill] sm:$0xff] }
 0x103   :  { %5830 = vst [vmem:[#allocation114_spill] sm:$0xff] %v3659_v61  ;;  %5832 = vst [vmem:[#allocation116_spill] sm:$0xff] %v3662_v52  ;;  %v3680_v49 = vadd.f32 %v737_v8, %v5843_v53  ;;  %v3683_v15 = vadd.f32 %v738_v21, %v5845_v42  ;;  %v3686_v32 = vadd.f32 %v739_v12, %v5847_v14  ;;  %v5851_v10 = vld [vmem:[#allocation136_spill] sm:$0xff]  ;;  %v5853_v56 = vld [vmem:[#allocation139_spill] sm:$0xff] }
 0x104   :  { %5834 = vst [vmem:[#allocation117_spill] sm:$0xff] %v3665_v39  ;;  %5836 = vst [vmem:[#allocation119_spill] sm:$0xff] %v3668_v7  ;;  %v3689_v48 = vadd.f32 %v740_v19, %v5849_v33  ;;  %v3692_v29 = vadd.f32 %v741_v47, %v5851_v10  ;;  %v3695_v63 = vadd.f32 %v742_v45, %v5853_v56  ;;  %v5855_v36 = vld [vmem:[#allocation142_spill] sm:$0xff]  ;;  %v5857_v8 = vld [vmem:[#allocation145_spill] sm:$0xff] }
 0x105   :  { %5838 = vst [vmem:[#allocation120_spill] sm:$0xff] %v3671_v51  ;;  %5840 = vst [vmem:[#allocation122_spill] sm:$0xff] %v3674_v6  ;;  %v3698_v23 = vadd.f32 %v743_v50, %v5855_v36  ;;  %v3701_v60 = vadd.f32 %v744_v24, %v5857_v8  ;;  %v5859_v21 = vld [vmem:[#allocation148_spill] sm:$0xff]  ;;  %v5861_v12 = vld [vmem:[#allocation151_spill] sm:$0xff] }
 0x106   :  { %5842 = vst [vmem:[#allocation123_spill] sm:$0xff] %v3677_v27  ;;  %5844 = vst [vmem:[#allocation125_spill] sm:$0xff] %v3680_v49  ;;  %v3704_v0 = vadd.f32 %v745_v4, %v5859_v21  ;;  %v3707_v44 = vadd.f32 %v746_v55, %v5861_v12  ;;  %v5863_v19 = vld [vmem:[#allocation154_spill] sm:$0xff]  ;;  %v5865_v47 = vld [vmem:[#allocation156_spill] sm:$0xff] }
 0x107   :  { %5846 = vst [vmem:[#allocation126_spill] sm:$0xff] %v3683_v15  ;;  %5848 = vst [vmem:[#allocation128_spill] sm:$0xff] %v3686_v32  ;;  %v3710_v3 = vadd.f32 %v747_v38, %v5863_v19  ;;  %v3713_v1 = vadd.f32 %v748_v18, %v5865_v47  ;;  %v5867_v45 = vld [vmem:[#allocation161_spill] sm:$0xff]  ;;  %v5869_v50 = vld [vmem:[#allocation163_spill] sm:$0xff] }
 0x108   :  { %5850 = vst [vmem:[#allocation129_spill] sm:$0xff] %v3689_v48  ;;  %5852 = vst [vmem:[#allocation131_spill] sm:$0xff] %v3692_v29  ;;  %v3716_v13 = vadd.f32 %v749_v35, %v5867_v45  ;;  %v3719_v62 = vadd.f32 %v750_v20, %v5869_v50  ;;  %v5871_v24 = vld [vmem:[#allocation166_spill] sm:$0xff]  ;;  %v5875_v55 = vld [vmem:[#allocation171_spill] sm:$0xff] }
 0x109   :  { %5854 = vst [vmem:[#allocation132_spill] sm:$0xff] %v3695_v63  ;;  %5856 = vst [vmem:[#allocation134_spill] sm:$0xff] %v3698_v23  ;;  %v3722_v53 = vadd.f32 %v751_v40, %v5871_v24  ;;  %v5873_v4 = vld [vmem:[#allocation170_spill] sm:$0xff]  ;;  %v3728_v14 = vadd.f32 %v753_v16, %v5875_v55  ;;  %v5880_v10 = vld [vmem:[#allocation176_spill] sm:$0xff] }
 0x10a   :  { %5858 = vst [vmem:[#allocation135_spill] sm:$0xff] %v3701_v60  ;;  %5860 = vst [vmem:[#allocation137_spill] sm:$0xff] %v3704_v0  ;;  %v3725_v42 = vadd.f32 %v752_v22, %v5873_v4  ;;  %v5877_v38 = vld [vmem:[#allocation174_spill] sm:$0xff]  ;;  %v3735_v35 = vadd.f32 %v755_v26, %v5880_v10  ;;  %v5884_v36 = vld [vmem:[#allocation179_spill] sm:$0xff] }
 0x10b   :  { %5862 = vst [vmem:[#allocation138_spill] sm:$0xff] %v3707_v44  ;;  %5864 = vst [vmem:[#allocation140_spill] sm:$0xff] %v3710_v3  ;;  %v3731_v33 = vadd.f32 %v754_v46, %v5877_v38  ;;  %v5879_v18 = vld [vmem:[#allocation50_spill] sm:$0xff]  ;;  %v3741_v40 = vadd.f32 %v757_v59, %v5884_v36  ;;  %v5886_v8 = vld [vmem:[#allocation52_spill] sm:$0xff] }
 0x10c   :  { %5866 = vst [vmem:[#allocation141_spill] sm:$0xff] %v3713_v1  ;;  %5868 = vst [vmem:[#allocation143_spill] sm:$0xff] %v3716_v13  ;;  %1826 = vrcp.f32 %v5879_v18  ;;  %v5882_v56 = vld [vmem:[#allocation178_spill] sm:$0xff]  ;;  %v5890_v47 = vld [vmem:[#allocation56_spill] sm:$0xff] }
 0x10d   :  { %5870 = vst [vmem:[#allocation144_spill] sm:$0xff] %v3719_v62  ;;  %5872 = vst [vmem:[#allocation146_spill] sm:$0xff] %v3722_v53  ;;  %v3738_v20 = vadd.f32 %v756_v57, %v5882_v56  ;;  %1828 = vrcp.f32 %v5886_v8  ;;  %v5887_v22 = vld [vmem:[#allocation182_spill] sm:$0xff]  ;;  %v5892_v38 = vld [vmem:[#allocation60_spill] sm:$0xff] }
 0x10e   :  { %5874 = vst [vmem:[#allocation147_spill] sm:$0xff] %v3725_v42  ;;  %5876 = vst [vmem:[#allocation149_spill] sm:$0xff] %v3728_v14  ;;  %v3745_v21 = vadd.f32 %v758_v37, %v5887_v22  ;;  %v5889_v12 = vld [vmem:[#allocation54_spill] sm:$0xff]  ;;  %v5895_v55 = vld [vmem:[#allocation15_spill] sm:$0xff] }
 0x10f   :  { %5878 = vst [vmem:[#allocation150_spill] sm:$0xff] %v3731_v33  ;;  %5881 = vst [vmem:[#allocation152_spill] sm:$0xff] %v3735_v35  ;;  %1830 = vrcp.f32 %v5889_v12  ;;  %v5891_v50 = vld [vmem:[#allocation58_spill] sm:$0xff]  ;;  %v5896_v10 = vld [vmem:[#allocation17_spill] sm:$0xff] }
 0x110   :  { %5883 = vst [vmem:[#allocation153_spill] sm:$0xff] %v3738_v20  ;;  %5885 = vst [vmem:[#allocation155_spill] sm:$0xff] %v3741_v40  ;;  %1832 = vrcp.f32 %v5890_v47  ;;  %v5893_v36 = vld [vmem:[#allocation62_spill] sm:$0xff]  ;;  %v5894_v47 = vld [vmem:[#allocation63_spill] sm:$0xff] }
 0x111   :  { %5888 = vst [vmem:[#allocation159_spill] sm:$0xff] %v3745_v21  ;;  %1834 = vrcp.f32 %v5891_v50  ;;  %v5897_v12 = vld [vmem:[#allocation19_spill] sm:$0xff]  ;;  %v5898_v56 = vld [vmem:[#allocation21_spill] sm:$0xff]  ;;  %v5902_v45 = vld [vmem:[#allocation70_spill] sm:$0xff] }
 0x112   :  { %1836 = vrcp.f32 %v5892_v38  ;;  %v5899_v4 = vld [vmem:[#allocation65_spill] sm:$0xff]  ;;  %v5900_v24 = vld [vmem:[#allocation67_spill] sm:$0xff]  ;;  %v5903_v59 = vld [vmem:[#allocation72_spill] sm:$0xff] }
 0x113   :  { %1838 = vrcp.f32 %v5893_v36  ;;  %v5901_v37 = vld [vmem:[#allocation69_spill] sm:$0xff]  ;;  %v1909_v36 = vld [vmem:[#allocation2 + $0x8] sm:$0xff]  ;;  %v1912_v50 = vld [vmem:[#allocation2 + $0x20] sm:$0xff] }
 0x114   :  { %1840 = vrcp.f32 %v5894_v47  ;;  %vm912_vm1 = vcmp.ge.f32.partialorder %v1909_v36, 0.0  ;;  %v1910_v8 = vld [vmem:[#allocation2 + $0x10] sm:$0xff]  ;;  %v1911_v47 = vld [vmem:[#allocation2 + $0x18] sm:$0xff]  ;;  %vm915_vm4 = vcmp.ge.f32.partialorder %v1912_v50, 0.0  ;;  %v3814_v38 = vld [vmem:[#allocation2 + $0x28] sm:$0xff] }
 0x115   :  { %1842 = vrcp.f32 %v5895_v55  ;;  %v1908_v55 = vld [vmem:[#allocation2] sm:$0xff]  ;;  %vm913_vm2 = vcmp.ge.f32.partialorder %v1910_v8, 0.0  ;;  %vm914_vm3 = vcmp.ge.f32.partialorder %v1911_v47, 0.0  ;;  %vm916_vm5 = vcmp.ge.f32.partialorder %v3814_v38, 0.0  ;;  %v3820_v57 = vld [vmem:[#allocation2 + $0x30] sm:$0xff]  ;;  %v3823_v19 = vld [vmem:[#allocation2 + $0x38] sm:$0xff] }
 0x116   :  { %1844 = vrcp.f32 %v5896_v10  ;;  %v3778_v22 = vpop.eup %1826  ;;  %vm911_vm0 = vcmp.ge.f32.partialorder %v1908_v55, 0.0  ;;  %vm917_vm6 = vcmp.ge.f32.partialorder %v3820_v57, 0.0  ;;  %vm918_vm7 = vcmp.ge.f32.partialorder %v3823_v19, 0.0  ;;  %v5906_v16 = vld [vmem:[#allocation74_spill] sm:$0xff]  ;;  %v5908_v21 = vld [vmem:[#allocation45_spill] sm:$0xff]  ;;  %v5909_v14 = vld [vmem:[#allocation76_spill] sm:$0xff] }
 0x117   :  { %1846 = vrcp.f32 %v5897_v12  ;;  %v3784_v18 = vpop.eup %1828  ;;  %v3831_v40 = vld [vmem:[#allocation2 + $0x40] sm:$0xff]  ;;  %v3841_v42 = vld [vmem:[#allocation2 + $0x48] sm:$0xff]  ;;  %v3910_v8 = vld [vmem:[#allocation2 + $0x78] sm:$0xff] }
 0x118   :  { %1848 = vrcp.f32 %v5898_v56  ;;  %vm919_vm8 = vcmp.ge.f32.partialorder %v3831_v40, 0.0  ;;  %vm920_vm9 = vcmp.ge.f32.partialorder %v3841_v42, 0.0  ;;  %v5913_v1 = vld [vmem:[#allocation183_spill] sm:$0xff]  ;;  %v5915_v0 = vld [vmem:[#allocation78_spill] sm:$0xff]  ;;  %v5919_v48 = vld [vmem:[#allocation80_spill] sm:$0xff]  ;;  %vm926_vm15 = vcmp.ge.f32.partialorder %v3910_v8, 0.0 }
 0x119   :  { %v3790_v10 = vpop.eup %1830  ;;  %1850 = vrcp.f32 %v5899_v4  ;;  %v3858_v3 = vmul.f32 0.25, %v5913_v1  ;;  %v3863_v60 = vld [vmem:[#allocation2 + $0x60] sm:$0xff]  ;;  %v3878_v32 = vld [vmem:[#allocation2 + $0x68] sm:$0xff]  ;;  %v5932_v6 = vld [vmem:[#allocation57_spill] sm:$0xff] }
 0x11a   :  { %v3796_v12 = vpop.eup %1832  ;;  %1852 = vrcp.f32 %v5900_v24  ;;  %v951_v35 = vmul.f32 %v3790_v10, %v5908_v21  ;;  %v3852_v21 = vld [vmem:[#allocation2 + $0x58] sm:$0xff]  ;;  %vm923_vm12 = vcmp.ge.f32.partialorder %v3863_v60, 0.0  ;;  %v5917_v63 = vld [vmem:[#allocation187_spill] sm:$0xff]  ;;  %vm924_vm13 = vcmp.ge.f32.partialorder %v3878_v32, 0.0  ;;  %v5929_v50 = vld [vmem:[#allocation192_spill] sm:$0xff] }
 0x11b   :  { %v3802_v56 = vpop.eup %1834  ;;  %1854 = vrcp.f32 %v5901_v37  ;;  %vm922_vm11 = vcmp.ge.f32.partialorder %v3852_v21, 0.0  ;;  %5914 = vst [vmem:[#allocation157_spill] sm:$0xff] %v3858_v3  ;;  %v5921_v55 = vld [vmem:[#allocation82_spill] sm:$0xff]  ;;  %v5922_v49 = vld [vmem:[#allocation51_spill] sm:$0xff]  ;;  %v5939_v52 = vld [vmem:[#allocation92_spill] sm:$0xff] }
 0x11c   :  { %v3808_v4 = vpop.eup %1836  ;;  %1856 = vrcp.f32 %v5902_v45  ;;  %v5904_v45 = vld [vmem:[#allocation73_spill] sm:$0xff]  ;;  %v5927_v47 = vld [vmem:[#allocation86_spill] sm:$0xff]  ;;  %v5936_v39 = vld [vmem:[#allocation59_spill] sm:$0xff] }
 0x11d   :  { %v3811_v24 = vpop.eup %1838  ;;  %1858 = vrcp.f32 %v5903_v59  ;;  %v5905_v59 = vld [vmem:[#allocation43_spill] sm:$0xff]  ;;  %v5935_v7 = vld [vmem:[#allocation90_spill] sm:$0xff]  ;;  %v5940_v61 = vld [vmem:[#allocation61_spill] sm:$0xff] }
 0x11e   :  { %v3817_v37 = vpop.eup %1840  ;;  %1860 = vrcp.f32 %v5904_v45  ;;  %v949_v26 = vmul.f32 %v3778_v22, %v5905_v59  ;;  %v5907_v45 = vld [vmem:[#allocation44_spill] sm:$0xff]  ;;  %v5937_v57 = vld [vmem:[#allocation234_spill] sm:$0xff]  ;;  %v5961_v60 = vld [vmem:[#allocation203_spill] sm:$0xff] }
 0x11f   :  { %v3828_v46 = vpop.eup %1842  ;;  %1862 = vrcp.f32 %v5906_v16  ;;  %v950_v20 = vmul.f32 %v3784_v18, %v5907_v45  ;;  %v3844_v59 = vld [vmem:[#allocation2 + $0x50] sm:$0xff]  ;;  %v5910_v16 = vld [vmem:[#allocation46_spill] sm:$0xff]  ;;  %v956_v27 = vmul.f32 %v3817_v37, %v5922_v49  ;;  %v3997_v34 = vld [vmem:[#allocation2 + $0xa8] sm:$0xff] }
 0x120   :  { %v3838_v33 = vpop.eup %1844  ;;  %1864 = vrcp.f32 %v5909_v14  ;;  %vm921_vm10 = vcmp.ge.f32.partialorder %v3844_v59, 0.0  ;;  %v952_v53 = vmul.f32 %v3796_v12, %v5910_v16  ;;  %v5911_v45 = vld [vmem:[#allocation12_spill] sm:$0xff]  ;;  %v5912_v14 = vld [vmem:[#allocation47_spill] sm:$0xff]  ;;  %v3870_v23 = vsel %vm911_vm0, %v3778_v22, %v949_v26  ;;  %v5941_v19 = vld [vmem:[#allocation198_spill] sm:$0xff] }
 0x121   :  { %v3849_v62 = vpop.eup %1846  ;;  %1866 = vrcp.f32 %v5911_v45  ;;  %v953_v13 = vmul.f32 %v3802_v56, %v5912_v14  ;;  %v5916_v16 = vld [vmem:[#allocation48_spill] sm:$0xff]  ;;  %v3873_v14 = vmul.f32 0.25, %v5917_v63  ;;  %v3889_v26 = vsel %vm913_vm2, %v3790_v10, %v951_v35  ;;  %v5925_v10 = vld [vmem:[#allocation53_spill] sm:$0xff]  ;;  %v5943_v41 = vld [vmem:[#allocation94_spill] sm:$0xff] }
 0x122   :  { %v3860_v44 = vpop.eup %1848  ;;  %1868 = vrcp.f32 %v5915_v0  ;;  %v954_v45 = vmul.f32 %v3808_v4, %v5916_v16  ;;  %v5920_v0 = vld [vmem:[#allocation49_spill] sm:$0xff]  ;;  %v3885_v16 = vsel %vm912_vm1, %v3784_v18, %v950_v20  ;;  %v3901_v36 = vsel %vm914_vm3, %v3796_v12, %v952_v53  ;;  %v5924_v18 = vld [vmem:[#allocation84_spill] sm:$0xff]  ;;  %v3926_v12 = vld [vmem:[#allocation2 + $0x80] sm:$0xff] }
 0x123   :  { %5918 = vst [vmem:[#allocation160_spill] sm:$0xff] %v3873_v14  ;;  %v3875_v29 = vpop.eup %1850  ;;  %1870 = vrcp.f32 %v5919_v48  ;;  %v955_v15 = vmul.f32 %v3811_v24, %v5920_v0  ;;  %v3894_v48 = vld [vmem:[#allocation2 + $0x70] sm:$0xff]  ;;  %v3905_v20 = vmul.f32 %v5913_v1, %v3870_v23  ;;  %v957_v0 = vmul.f32 %v3828_v46, %v5925_v10  ;;  %v5948_v9 = vld [vmem:[#allocation14_spill] sm:$0xff]  ;;  %v5955_v14 = vld [vmem:[#allocation99_spill] sm:$0xff] }
 0x124   :  { %v3891_v22 = vpop.eup %1852  ;;  %1872 = vrcp.f32 %v5921_v55  ;;  %vm925_vm14 = vcmp.ge.f32.partialorder %v3894_v48, 0.0  ;;  %v3917_v49 = vsel %vm915_vm4, %v3802_v56, %v953_v13  ;;  %v3921_v53 = vmul.f32 %v5917_v63, %v3885_v16  ;;  %v5928_v55 = vld [vmem:[#allocation55_spill] sm:$0xff]  ;;  %v5931_v10 = vld [vmem:[#allocation88_spill] sm:$0xff]  ;;  %v5956_v54 = vld [vmem:[#allocation18_spill] sm:$0xff] }
 0x125   :  { %5923 = vst [vmem:[#allocation158_spill] sm:$0xff] %v3905_v20  ;;  %v3907_v35 = vpop.eup %1854  ;;  %1874 = vrcp.f32 %v5924_v18  ;;  %vm927_vm0 = vcmp.ge.f32.partialorder %v3926_v12, 0.0  ;;  %v958_v18 = vmul.f32 %v3838_v33, %v5928_v55  ;;  %v3934_v13 = vsel %vm916_vm5, %v3808_v4, %v954_v45  ;;  %v5933_v4 = vld [vmem:[#allocation232_spill] sm:$0xff]  ;;  %v4034_v17 = vld [vmem:[#allocation2 + $0xc0] sm:$0xff] }
 0x126   :  { %5926 = vst [vmem:[#allocation162_spill] sm:$0xff] %v3921_v53  ;;  %v3923_v1 = vpop.eup %1856  ;;  %1876 = vrcp.f32 %v5927_v47  ;;  %v3938_v63 = vmul.f32 %v5929_v50, %v3889_v26  ;;  %v3943_v47 = vld [vmem:[#allocation2 + $0x88] sm:$0xff]  ;;  %v959_v55 = vmul.f32 %v3849_v62, %v5932_v6  ;;  %v3951_v38 = vsel %vm917_vm6, %v3811_v24, %v955_v15  ;;  %v4014_v28 = vld [vmem:[#allocation2 + $0xb0] sm:$0xff]  ;;  %v5957_v21 = vld [vmem:[#allocation202_spill] sm:$0xff] }
 0x127   :  { %v3940_v56 = vpop.eup %1858  ;;  %1878 = vrcp.f32 %v5931_v10  ;;  %vm928_vm1 = vcmp.ge.f32.partialorder %v3943_v47, 0.0  ;;  %v3955_v45 = vmul.f32 %v5933_v4, %v3901_v36  ;;  %v3960_v10 = vld [vmem:[#allocation2 + $0x90] sm:$0xff]  ;;  %v960_v6 = vmul.f32 %v3860_v44, %v5936_v39  ;;  %v4051_v3 = vld [vmem:[#allocation2 + $0xc8] sm:$0xff] }
 0x128   :  { %5930 = vst [vmem:[#allocation164_spill] sm:$0xff] %v3938_v63  ;;  %v3957_v51 = vpop.eup %1860  ;;  %1880 = vrcp.f32 %v5935_v7  ;;  %vm929_vm2 = vcmp.ge.f32.partialorder %v3960_v10, 0.0  ;;  %v3968_v15 = vsel %vm918_vm7, %v3817_v37, %v956_v27  ;;  %v3972_v24 = vmul.f32 %v5937_v57, %v3917_v49  ;;  %v3977_v7 = vld [vmem:[#allocation2 + $0x98] sm:$0xff]  ;;  %v5947_v30 = vld [vmem:[#allocation96_spill] sm:$0xff]  ;;  %v5980_v47 = vld [vmem:[#allocation207_spill] sm:$0xff] }
 0x129   :  { %5934 = vst [vmem:[#allocation165_spill] sm:$0xff] %v3955_v45  ;;  %v3974_v4 = vpop.eup %1862  ;;  %1882 = vrcp.f32 %v5939_v52  ;;  %vm930_vm3 = vcmp.ge.f32.partialorder %v3977_v7, 0.0  ;;  %v961_v39 = vmul.f32 %v3875_v29, %v5940_v61  ;;  %v3985_v27 = vsel %vm919_vm8, %v3828_v46, %v957_v0  ;;  %v3994_v52 = vld [vmem:[#allocation2 + $0xa0] sm:$0xff]  ;;  %v5944_v61 = vld [vmem:[#allocation13_spill] sm:$0xff]  ;;  %v5959_v25 = vld [vmem:[#allocation100_spill] sm:$0xff] }
 0x12a   :  { %5938 = vst [vmem:[#allocation22_spill] sm:$0xff] %v3972_v24  ;;  %v3989_v37 = vmul.f32 %v3934_v13, %v5941_v19  ;;  %v3991_v57 = vpop.eup %1864  ;;  %1884 = vrcp.f32 %v5943_v41  ;;  %vm931_vm4 = vcmp.ge.f32.partialorder %v3994_v52, 0.0  ;;  %vm932_vm5 = vcmp.ge.f32.partialorder %v3997_v34, 0.0  ;;  %v5945_v0 = vld [vmem:[#allocation199_spill] sm:$0xff]  ;;  %v5960_v50 = vld [vmem:[#allocation20_spill] sm:$0xff]  ;;  %v5979_v63 = vld [vmem:[#allocation34_spill] sm:$0xff] }
 0x12b   :  { %v962_v40 = vmul.f32 %v3891_v22, %v5944_v61  ;;  %v4005_v46 = vsel %vm920_vm9, %v3838_v33, %v958_v18  ;;  %v4009_v19 = vmul.f32 %v3951_v38, %v5945_v0  ;;  %v4011_v41 = vpop.eup %1866  ;;  %1886 = vrcp.f32 %v5947_v30  ;;  %v5949_v33 = vld [vmem:[#allocation200_spill] sm:$0xff]  ;;  %v4031_v30 = vld [vmem:[#allocation2 + $0xb8] sm:$0xff]  ;;  %v5982_v53 = vld [vmem:[#allocation75_spill] sm:$0xff] }
 0x12c   :  { %5942 = vst [vmem:[#allocation167_spill] sm:$0xff] %v3989_v37  ;;  %vm933_vm6 = vcmp.ge.f32.partialorder %v4014_v28, 0.0  ;;  %v963_v61 = vmul.f32 %v3907_v35, %v5948_v9  ;;  %v4022_v42 = vsel %vm921_vm10, %v3849_v62, %v959_v55  ;;  %v4026_v18 = vmul.f32 %v3968_v15, %v5949_v33  ;;  %v4028_v0 = vpop.eup %1868  ;;  %v5952_v9 = vld [vmem:[#allocation16_spill] sm:$0xff]  ;;  %v5953_v55 = vld [vmem:[#allocation201_spill] sm:$0xff]  ;;  %v5987_v2 = vld [vmem:[#allocation11_spill] sm:$0xff] }
 0x12d   :  { %5946 = vst [vmem:[#allocation23_spill] sm:$0xff] %v4009_v19  ;;  %1888 = vrcp.f32 %v5951_v11  ;;  %vm934_vm7 = vcmp.ge.f32.partialorder %v4031_v30, 0.0  ;;  %vm935_vm8 = vcmp.ge.f32.partialorder %v4034_v17, 0.0  ;;  %v964_v62 = vmul.f32 %v3923_v1, %v5952_v9  ;;  %v4048_v11 = vpop.eup %1870  ;;  %v5972_v19 = vld [vmem:[#allocation68_spill] sm:$0xff]  ;;  %v6001_v17 = vld [vmem:[#allocation215_spill] sm:$0xff] }
 0x12e   :  { %5950 = vst [vmem:[#allocation168_spill] sm:$0xff] %v4026_v18  ;;  %v4042_v59 = vsel %vm922_vm11, %v3860_v44, %v960_v6  ;;  %v4046_v33 = vmul.f32 %v3985_v27, %v5953_v55  ;;  %1890 = vrcp.f32 %v5955_v14  ;;  %vm936_vm9 = vcmp.ge.f32.partialorder %v4051_v3, 0.0  ;;  %v4065_v55 = vpop.eup %1872  ;;  %v4068_v14 = vld [vmem:[#allocation2 + $0xd0] sm:$0xff]  ;;  %v5968_v18 = vld [vmem:[#allocation66_spill] sm:$0xff]  ;;  %v4178_v20 = vld [vmem:[#allocation2 + $0x108] sm:$0xff] }
 0x12f   :  { %v965_v9 = vmul.f32 %v3940_v56, %v5956_v54  ;;  %v4059_v44 = vsel %vm923_vm12, %v3875_v29, %v961_v39  ;;  %v4063_v6 = vmul.f32 %v4005_v46, %v5957_v21  ;;  %1892 = vrcp.f32 %v5959_v25  ;;  %v4082_v21 = vpop.eup %1874  ;;  %v4085_v25 = vld [vmem:[#allocation2 + $0xd8] sm:$0xff]  ;;  %v5983_v10 = vld [vmem:[#allocation208_spill] sm:$0xff] }
 0x130   :  { %5954 = vst [vmem:[#allocation24_spill] sm:$0xff] %v4046_v33  ;;  %vm937_vm10 = vcmp.ge.f32.partialorder %v4068_v14, 0.0  ;;  %v966_v54 = vmul.f32 %v3957_v51, %v5960_v50  ;;  %v4076_v29 = vsel %vm924_vm13, %v3891_v22, %v962_v40  ;;  %v4080_v39 = vmul.f32 %v4022_v42, %v5961_v60  ;;  %v5964_v33 = vld [vmem:[#allocation64_spill] sm:$0xff]  ;;  %v4099_v60 = vpop.eup %1876 }
 0x131   :  { %5958 = vst [vmem:[#allocation169_spill] sm:$0xff] %v4063_v6  ;;  %v5963_v6 = vld [vmem:[#allocation101_spill] sm:$0xff]  ;;  %vm938_vm11 = vcmp.ge.f32.partialorder %v4085_v25, 0.0  ;;  %v967_v50 = vmul.f32 %v3974_v4, %v5964_v33  ;;  %v4093_v32 = vsel %vm925_vm14, %v3907_v35, %v963_v61  ;;  %v5965_v22 = vld [vmem:[#allocation204_spill] sm:$0xff]  ;;  %v968_v33 = vmul.f32 %v3991_v57, %v5968_v18 }
 0x132   :  { %5962 = vst [vmem:[#allocation25_spill] sm:$0xff] %v4080_v39  ;;  %1894 = vrcp.f32 %v5963_v6  ;;  %v4097_v40 = vmul.f32 %v4042_v59, %v5965_v22  ;;  %v5967_v39 = vld [vmem:[#allocation102_spill] sm:$0xff]  ;;  %v4110_v48 = vsel %vm926_vm15, %v3923_v1, %v964_v62  ;;  %v5969_v35 = vld [vmem:[#allocation205_spill] sm:$0xff]  ;;  %v1879_v22 = vpop.eup %1878  ;;  %v969_v37 = vmul.f32 %v4011_v41, %v5972_v19  ;;  %v5973_v18 = vld [vmem:[#allocation28_spill] sm:$0xff] }
 0x133   :  { %1896 = vrcp.f32 %v5967_v39  ;;  %v4102_v6 = vld [vmem:[#allocation2 + $0xe0] sm:$0xff]  ;;  %v4114_v61 = vmul.f32 %v4059_v44, %v5969_v35  ;;  %v4117_v39 = vld [vmem:[#allocation2 + $0xe8] sm:$0xff]  ;;  %v970_v24 = vmul.f32 %v4028_v0, %v5973_v18  ;;  %v4127_v8 = vsel %vm927_vm0, %v3940_v56, %v965_v9  ;;  %v1881_v1 = vpop.eup %1880  ;;  %v5974_v62 = vld [vmem:[#allocation105_spill] sm:$0xff] }
 0x134   :  { %5966 = vst [vmem:[#allocation172_spill] sm:$0xff] %v4097_v40  ;;  %vm939_vm12 = vcmp.ge.f32.partialorder %v4102_v6, 0.0  ;;  %v5971_v40 = vld [vmem:[#allocation103_spill] sm:$0xff]  ;;  %vm940_vm13 = vcmp.ge.f32.partialorder %v4117_v39, 0.0  ;;  %v4130_v35 = vld [vmem:[#allocation2 + $0xf0] sm:$0xff]  ;;  %v4138_v19 = vsel %vm928_vm1, %v3957_v51, %v966_v54  ;;  %v5976_v18 = vld [vmem:[#allocation206_spill] sm:$0xff]  ;;  %v1883_v56 = vpop.eup %1882  ;;  %v4154_v51 = vsel %vm929_vm2, %v3974_v4, %v967_v50 }
 0x135   :  { %5970 = vst [vmem:[#allocation26_spill] sm:$0xff] %v4114_v61  ;;  %1898 = vrcp.f32 %v5971_v40  ;;  %vm941_vm14 = vcmp.ge.f32.partialorder %v4130_v35, 0.0  ;;  %v5975_v40 = vld [vmem:[#allocation71_spill] sm:$0xff]  ;;  %v4142_v12 = vmul.f32 %v4076_v29, %v5976_v18  ;;  %v4144_v9 = vld [vmem:[#allocation2 + $0xf8] sm:$0xff]  ;;  %v4158_v54 = vmul.f32 %v4093_v32, %v5980_v47  ;;  %v1885_v18 = vpop.eup %1884  ;;  %v5993_v34 = vld [vmem:[#allocation212_spill] sm:$0xff] }
 0x136   :  { %1900 = vrcp.f32 %v5974_v62  ;;  %v971_v61 = vmul.f32 %v4048_v11, %v5975_v40  ;;  %vm942_vm15 = vcmp.ge.f32.partialorder %v4144_v9, 0.0  ;;  %v5978_v62 = vld [vmem:[#allocation32_spill] sm:$0xff]  ;;  %v973_v40 = vmul.f32 %v4082_v21, %v5979_v63  ;;  %v5985_v50 = vld [vmem:[#allocation209_spill] sm:$0xff] }
 0x137   :  { %5977 = vst [vmem:[#allocation173_spill] sm:$0xff] %v4142_v12  ;;  %v972_v45 = vmul.f32 %v4065_v55, %v5978_v62  ;;  %5981 = vst [vmem:[#allocation27_spill] sm:$0xff] %v4158_v54  ;;  %v4160_v12 = vld [vmem:[#allocation2 + $0x100] sm:$0xff]  ;;  %v974_v62 = vmul.f32 %v4099_v60, %v5982_v53  ;;  %v4168_v63 = vsel %vm930_vm3, %v3991_v57, %v968_v33  ;;  %v1887_v54 = vpop.eup %1886  ;;  %vm944_vm1 = vcmp.ge.f32.partialorder %v4178_v20, 0.0 }
 0x138   :  { %vm943_vm0 = vcmp.ge.f32.partialorder %v4160_v12, 0.0  ;;  %v4172_v4 = vmul.f32 %v4110_v48, %v5983_v10  ;;  %v4176_v47 = vmul.f32 %v4127_v8, %v5985_v50  ;;  %v975_v53 = vmul.f32 %v1879_v22, %v5987_v2  ;;  %v5988_v33 = vld [vmem:[#allocation210_spill] sm:$0xff]  ;;  %v1889_v50 = vpop.eup %1888 }
 0x139   :  { %v4185_v7 = vsel %vm931_vm4, %v4011_v41, %v969_v37  ;;  %v4190_v57 = vsel %vm932_vm5, %v4028_v0, %v970_v24  ;;  %v4194_v10 = vmul.f32 %v4138_v19, %v5988_v33  ;;  %v4200_v2 = vsel %vm933_vm6, %v4048_v11, %v971_v61  ;;  %v5991_v37 = vld [vmem:[#allocation211_spill] sm:$0xff]  ;;  %v1891_v41 = vpop.eup %1890  ;;  %v1943_v0 = vld [vmem:[#allocation2 + $0x118] sm:$0xff] }
 0x13a   :  { %5984 = vst [vmem:[#allocation175_spill] sm:$0xff] %v4172_v4  ;;  %5986 = vst [vmem:[#allocation180_spill] sm:$0xff] %v4176_v47  ;;  %v1942_v47 = vld [vmem:[#allocation2 + $0x110] sm:$0xff]  ;;  %v4204_v52 = vmul.f32 %v4154_v51, %v5991_v37  ;;  %v4208_v24 = vmul.f32 %v4168_v63, %v5993_v34  ;;  %vm946_vm3 = vcmp.ge.f32.partialorder %v1943_v0, 0.0  ;;  %v1944_v33 = vld [vmem:[#allocation2 + $0x120] sm:$0xff]  ;;  %v4214_v28 = vsel %vm934_vm7, %v4065_v55, %v972_v45  ;;  %v1893_v34 = vpop.eup %1892 }
 0x13b   :  { %5989 = vst [vmem:[#allocation177_spill] sm:$0xff] %v4194_v10  ;;  %vm945_vm2 = vcmp.ge.f32.partialorder %v1942_v47, 0.0  ;;  %v5990_v4 = vld [vmem:[#allocation77_spill] sm:$0xff]  ;;  %vm947_vm4 = vcmp.ge.f32.partialorder %v1944_v33, 0.0  ;;  %v5995_v10 = vld [vmem:[#allocation79_spill] sm:$0xff]  ;;  %v4219_v11 = vsel %vm935_vm8, %v4082_v21, %v973_v40  ;;  %v4229_v30 = vsel %vm936_vm9, %v4099_v60, %v974_v62  ;;  %v5999_v45 = vld [vmem:[#allocation214_spill] sm:$0xff] }
 0x13c   :  { %v976_v58 = vmul.f32 %v1881_v1, %v5990_v4  ;;  %5992 = vst [vmem:[#allocation29_spill] sm:$0xff] %v4204_v52  ;;  %5994 = vst [vmem:[#allocation181_spill] sm:$0xff] %v4208_v24  ;;  %v977_v4 = vmul.f32 %v1883_v56, %v5995_v10  ;;  %v5996_v61 = vld [vmem:[#allocation213_spill] sm:$0xff]  ;;  %v1945_v24 = vld [vmem:[#allocation2 + $0x128] sm:$0xf]  ;;  %v4233_v55 = vmul.f32 %v4190_v57, %v5999_v45  ;;  %v1895_v40 = vpop.eup %1894  ;;  %v1064_v6 = vsub.f32 1.0, %v3885_v16 }
 0x13d   :  { %v4223_v37 = vmul.f32 %v4185_v7, %v5996_v61  ;;  %vm948_vm5 = vcmp.ge.f32.partialorder %v1945_v24, 0.0  ;;  %v5998_v52 = vld [vmem:[#allocation81_spill] sm:$0xff]  ;;  %v4237_v21 = vmul.f32 %v4200_v2, %v6001_v17  ;;  %v6003_v10 = vld [vmem:[#allocation83_spill] sm:$0xff]  ;;  %v1897_v45 = vpop.eup %1896  ;;  %v1065_v39 = vsub.f32 1.0, %v3889_v26 }
 0x13e   :  { %v978_v5 = vmul.f32 %v1885_v18, %v5998_v52  ;;  %6000 = vst [vmem:[#allocation186_spill] sm:$0xff] %v4233_v55  ;;  %v979_v61 = vmul.f32 %v1887_v54, %v6003_v10  ;;  %v6004_v52 = vld [vmem:[#allocation216_spill] sm:$0xff]  ;;  %v6006_v60 = vld [vmem:[#allocation217_spill] sm:$0xff]  ;;  %v4255_v17 = vsel %vm938_vm11, %v1881_v1, %v976_v58  ;;  %v6009_v10 = vld [vmem:[#allocation218_spill] sm:$0xff]  ;;  %v1066_v16 = vsub.f32 1.0, %v3901_v36 }
 0x13f   :  { %5997 = vst [vmem:[#allocation30_spill] sm:$0xff] %v4223_v37  ;;  %6002 = vst [vmem:[#allocation31_spill] sm:$0xff] %v4237_v21  ;;  %v4242_v37 = vsel %vm937_vm10, %v1879_v22, %v975_v53  ;;  %v4246_v3 = vmul.f32 %v4214_v28, %v6004_v52  ;;  %v4250_v62 = vmul.f32 %v4219_v11, %v6006_v60  ;;  %v6008_v55 = vld [vmem:[#allocation85_spill] sm:$0xff]  ;;  %v6011_v22 = vld [vmem:[#allocation219_spill] sm:$0xff]  ;;  %v1899_v52 = vpop.eup %1898  ;;  %v1067_v26 = vsub.f32 1.0, %v3917_v49 }
 0x140   :  { %v980_v43 = vmul.f32 %v1889_v50, %v6008_v55  ;;  %v4259_v14 = vmul.f32 %v4229_v30, %v6009_v10  ;;  %v4263_v53 = vmul.f32 %v4242_v37, %v6011_v22  ;;  %v4268_v60 = vsel %vm939_vm12, %v1883_v56, %v977_v4  ;;  %v6014_v55 = vld [vmem:[#allocation220_spill] sm:$0xff]  ;;  %v1901_v1 = vpop.eup %1900  ;;  %v6016_v10 = vld [vmem:[#allocation89_spill] sm:$0xff]  ;;  %v6018_v56 = vld [vmem:[#allocation91_spill] sm:$0xff] }
 0x141   :  { %6005 = vst [vmem:[#allocation189_spill] sm:$0xff] %v4246_v3  ;;  %6007 = vst [vmem:[#allocation185_spill] sm:$0xff] %v4250_v62  ;;  %v6013_v3 = vld [vmem:[#allocation87_spill] sm:$0xff]  ;;  %v4272_v25 = vmul.f32 %v4255_v17, %v6014_v55  ;;  %v4278_v22 = vsel %vm940_vm13, %v1885_v18, %v978_v5  ;;  %v983_v4 = vmul.f32 %v1895_v40, %v6018_v56  ;;  %v6019_v58 = vld [vmem:[#allocation222_spill] sm:$0xff]  ;;  %v1068_v12 = vsub.f32 1.0, %v3934_v13 }
 0x142   :  { %6010 = vst [vmem:[#allocation191_spill] sm:$0xff] %v4259_v14  ;;  %6012 = vst [vmem:[#allocation33_spill] sm:$0xff] %v4263_v53  ;;  %v981_v21 = vmul.f32 %v1891_v41, %v6013_v3  ;;  %v982_v14 = vmul.f32 %v1893_v34, %v6016_v10  ;;  %v6017_v53 = vld [vmem:[#allocation221_spill] sm:$0xff]  ;;  %v4288_v55 = vsel %vm941_vm14, %v1887_v54, %v979_v61  ;;  %v6021_v10 = vld [vmem:[#allocation95_spill] sm:$0xff]  ;;  %v1069_v20 = vsub.f32 1.0, %v3951_v38 }
 0x143   :  { %6015 = vst [vmem:[#allocation193_spill] sm:$0xff] %v4272_v25  ;;  %v4282_v3 = vmul.f32 %v4268_v60, %v6017_v53  ;;  %v4292_v25 = vmul.f32 %v4278_v22, %v6019_v58  ;;  %v6020_v5 = vld [vmem:[#allocation93_spill] sm:$0xff]  ;;  %v985_v62 = vmul.f32 %v1899_v52, %v6021_v10  ;;  %v4299_v53 = vsel %vm942_vm15, %v1889_v50, %v980_v43  ;;  %v6023_v61 = vld [vmem:[#allocation223_spill] sm:$0xff]  ;;  %v6024_v43 = vld [vmem:[#allocation224_spill] sm:$0xff] }
 0x144   :  { %v984_v18 = vmul.f32 %v1897_v45, %v6020_v5  ;;  %v6022_v56 = vld [vmem:[#allocation97_spill] sm:$0xff]  ;;  %v4305_v54 = vsel %vm943_vm0, %v1891_v41, %v981_v21  ;;  %v4309_v58 = vmul.f32 %v4288_v55, %v6023_v61  ;;  %v4314_v5 = vsel %vm944_vm1, %v1893_v34, %v982_v14  ;;  %v6027_v21 = vld [vmem:[#allocation226_spill] sm:$0xff] }
 0x145   :  { %v986_v35 = vmul.f32 %v1901_v1, %v6022_v56  ;;  %v4318_v9 = vmul.f32 %v4299_v53, %v6024_v43  ;;  %v6025_v36 = vld [vmem:[#allocation225_spill] sm:$0xff]  ;;  %v4326_v41 = vsel %vm945_vm2, %v1895_v40, %v983_v4  ;;  %v4330_v49 = vmul.f32 %v4314_v5, %v6027_v21  ;;  %v6029_v56 = vld [vmem:[#allocation227_spill] sm:$0xff]  ;;  %v6031_v4 = vld [vmem:[#allocation228_spill] sm:$0xff] }
 0x146   :  { %v4322_v50 = vmul.f32 %v4305_v54, %v6025_v36  ;;  %v1070_v34 = vsub.f32 1.0, %v3968_v15  ;;  %v4335_v14 = vsel %vm946_vm3, %v1897_v45, %v984_v18  ;;  %v4338_v10 = vsel %vm947_vm4, %v1899_v52, %v985_v62  ;;  %v6033_v33 = vld [vmem:[#allocation229_spill] sm:$0xff]  ;;  %v6035_v45 = vld [vmem:[#allocation230_spill] sm:$0xff]  ;;  %v6037_v21 = vld [vmem:[#allocation184_spill] sm:$0xff] }
 0x147   :  { %6028 = vst [vmem:[#allocation194_spill] sm:$0xff] %v4330_v49  ;;  %v4342_v13 = vmul.f32 %v4326_v41, %v6029_v56  ;;  %v1071_v47 = vsub.f32 1.0, %v3985_v27  ;;  %v4346_v40 = vsel %vm948_vm5, %v1901_v1, %v986_v35  ;;  %v4350_v38 = vmul.f32 %v4335_v14, %v6031_v4  ;;  %v6039_v56 = vld [vmem:[#allocation190_spill] sm:$0xff]  ;;  %v6040_v4 = vld [vmem:[#allocation231_spill] sm:$0xff]  ;;  %v6047_v49 = vld [vmem:[#allocation240_spill] sm:$0xff] }
 0x148   :  { %6026 = vst [vmem:[#allocation188_spill] sm:$0xff] %v4322_v50  ;;  %v1072_v15 = vsub.f32 1.0, %v4005_v46  ;;  %v1073_v0 = vsub.f32 1.0, %v4022_v42  ;;  %v4356_v62 = vmul.f32 %v4338_v10, %v6033_v33  ;;  %v4360_v52 = vmul.f32 %v4346_v40, %v6035_v45  ;;  %v6041_v33 = vld [vmem:[#allocation233_spill] sm:$0xff]  ;;  %v6042_v45 = vld [vmem:[#allocation235_spill] sm:$0xff] }
 0x149   :  { %6030 = vst [vmem:[#allocation35_spill] sm:$0xff] %v4342_v13  ;;  %6032 = vst [vmem:[#allocation195_spill] sm:$0xff] %v4350_v38  ;;  %v1074_v27 = vsub.f32 1.0, %v4042_v59  ;;  %v1075_v24 = vsub.f32 1.0, %v4059_v44  ;;  %v1076_v1 = vsub.f32 1.0, %v4076_v29  ;;  %v1077_v18 = vsub.f32 1.0, %v4093_v32 }
 0x14a   :  { %6034 = vst [vmem:[#allocation36_spill] sm:$0xff] %v4356_v62  ;;  %6036 = vst [vmem:[#allocation196_spill] sm:$0xff] %v4360_v52  ;;  %v1078_v46 = vsub.f32 1.0, %v4110_v48  ;;  %v1079_v42 = vsub.f32 1.0, %v4127_v8  ;;  %v1080_v35 = vsub.f32 1.0, %v4138_v19  ;;  %v1081_v61 = vsub.f32 1.0, %v4154_v51 }
 0x14b   :  { %v1082_v43 = vsub.f32 1.0, %v4168_v63  ;;  %v1083_v36 = vsub.f32 1.0, %v4185_v7  ;;  %v1084_v59 = vsub.f32 1.0, %v4190_v57  ;;  %v1085_v44 = vsub.f32 1.0, %v4200_v2  ;;  %v6043_v52 = vld [vmem:[#allocation236_spill] sm:$0xff]  ;;  %v6044_v62 = vld [vmem:[#allocation237_spill] sm:$0xff] }
 0x14c   :  { %v1086_v29 = vsub.f32 1.0, %v4214_v28  ;;  %v1087_v32 = vsub.f32 1.0, %v4219_v11  ;;  %v1088_v48 = vsub.f32 1.0, %v4229_v30  ;;  %v1089_v8 = vsub.f32 1.0, %v4242_v37  ;;  %v6045_v38 = vld [vmem:[#allocation238_spill] sm:$0xff]  ;;  %v6046_v13 = vld [vmem:[#allocation239_spill] sm:$0xff] }
 0x14d   :  { %v1090_v19 = vsub.f32 1.0, %v4255_v17  ;;  %v1091_v51 = vsub.f32 1.0, %v4268_v60  ;;  %v1092_v63 = vsub.f32 1.0, %v4278_v22  ;;  %v1093_v7 = vsub.f32 1.0, %v4288_v55 }
 0x14e   :  { %v1094_v57 = vsub.f32 1.0, %v4299_v53  ;;  %v1095_v2 = vsub.f32 1.0, %v4305_v54  ;;  %v1096_v28 = vsub.f32 1.0, %v4314_v5  ;;  %v1097_v11 = vsub.f32 1.0, %v4326_v41 }
 0x14f   :  { %v1098_v30 = vsub.f32 1.0, %v4335_v14  ;;  %v1099_v37 = vsub.f32 1.0, %v4338_v10  ;;  %v1100_v17 = vsub.f32 1.0, %v4346_v40  ;;  %v6038_v60 = vsub.f32 1.0, %v3870_v23  ;;  %v6048_v23 = vld [vmem:[#allocation241_spill] sm:$0xff] }
 0x150   :  { %v1102_v55 = vmul.f32 %v1064_v6, %v6039_v56  ;;  %v1103_v53 = vmul.f32 %v1065_v39, %v6040_v4  ;;  %v1104_v54 = vmul.f32 %v1066_v16, %v6041_v33  ;;  %v1105_v5 = vmul.f32 %v1067_v26, %v6042_v45  ;;  %v6050_v56 = vld [vmem:[#allocation243_spill] sm:$0xff]  ;;  %v6051_v4 = vld [vmem:[#allocation244_spill] sm:$0xff]  ;;  %v6052_v33 = vld [vmem:[#allocation245_spill] sm:$0xff] }
 0x151   :  { %v1101_v22 = vmul.f32 %v6038_v60, %v6037_v21  ;;  %v1106_v41 = vmul.f32 %v1068_v12, %v6043_v52  ;;  %v1107_v14 = vmul.f32 %v1069_v20, %v6044_v62  ;;  %v1108_v10 = vmul.f32 %v1070_v34, %v6045_v38  ;;  %v6049_v21 = vld [vmem:[#allocation242_spill] sm:$0xff]  ;;  %v6054_v52 = vld [vmem:[#allocation247_spill] sm:$0xff]  ;;  %v6055_v62 = vld [vmem:[#allocation248_spill] sm:$0xff] }
 0x152   :  { %v1109_v40 = vmul.f32 %v1071_v47, %v6046_v13  ;;  %v1110_v50 = vmul.f32 %v1072_v15, %v6047_v49  ;;  %v1111_v60 = vmul.f32 %v1073_v0, %v6048_v23  ;;  %v1112_v6 = vmul.f32 %v1074_v27, %v6049_v21  ;;  %v6053_v45 = vld [vmem:[#allocation246_spill] sm:$0xff]  ;;  %v6056_v38 = vld [vmem:[#allocation249_spill] sm:$0xff]  ;;  %v6058_v49 = vld [vmem:[#allocation251_spill] sm:$0xff] }
 0x153   :  { %v1113_v39 = vmul.f32 %v1075_v24, %v6050_v56  ;;  %v1114_v16 = vmul.f32 %v1076_v1, %v6051_v4  ;;  %v1115_v26 = vmul.f32 %v1077_v18, %v6052_v33  ;;  %v1116_v12 = vmul.f32 %v1078_v46, %v6053_v45  ;;  %v6057_v13 = vld [vmem:[#allocation250_spill] sm:$0xff]  ;;  %v6059_v23 = vld [vmem:[#allocation252_spill] sm:$0xff]  ;;  %v6060_v21 = vld [vmem:[#allocation253_spill] sm:$0xff] }
 0x154   :  { %v1117_v20 = vmul.f32 %v1079_v42, %v6054_v52  ;;  %v1118_v34 = vmul.f32 %v1080_v35, %v6055_v62  ;;  %v1119_v47 = vmul.f32 %v1081_v61, %v6056_v38  ;;  %v1120_v15 = vmul.f32 %v1082_v43, %v6057_v13  ;;  %v6061_v56 = vld [vmem:[#allocation254_spill] sm:$0xff]  ;;  %v6062_v4 = vld [vmem:[#allocation255_spill] sm:$0xff]  ;;  %v6063_v33 = vld [vmem:[#allocation256_spill] sm:$0xff] }
 0x155   :  { %v1121_v0 = vmul.f32 %v1083_v36, %v6058_v49  ;;  %v1122_v27 = vmul.f32 %v1084_v59, %v6059_v23  ;;  %v1123_v24 = vmul.f32 %v1085_v44, %v6060_v21  ;;  %v1124_v1 = vmul.f32 %v1086_v29, %v6061_v56  ;;  %v6064_v45 = vld [vmem:[#allocation257_spill] sm:$0xff]  ;;  %v6065_v52 = vld [vmem:[#allocation258_spill] sm:$0xff]  ;;  %v6066_v62 = vld [vmem:[#allocation259_spill] sm:$0xff] }
 0x156   :  { %v1125_v18 = vmul.f32 %v1087_v32, %v6062_v4  ;;  %v1126_v46 = vmul.f32 %v1088_v48, %v6063_v33  ;;  %v1127_v42 = vmul.f32 %v1089_v8, %v6064_v45  ;;  %v1128_v35 = vmul.f32 %v1090_v19, %v6065_v52  ;;  %v6067_v38 = vld [vmem:[#allocation260_spill] sm:$0xff]  ;;  %v6068_v13 = vld [vmem:[#allocation261_spill] sm:$0xff]  ;;  %v6069_v49 = vld [vmem:[#allocation262_spill] sm:$0xff] }
 0x157   :  { %v1129_v61 = vmul.f32 %v1091_v51, %v6066_v62  ;;  %v1130_v43 = vmul.f32 %v1092_v63, %v6067_v38  ;;  %v1131_v36 = vmul.f32 %v1093_v7, %v6068_v13  ;;  %v1132_v59 = vmul.f32 %v1094_v57, %v6069_v49  ;;  %v6070_v23 = vld [vmem:[#allocation263_spill] sm:$0xff]  ;;  %v6071_v56 = vld [vmem:[#allocation265_spill] sm:$0xff]  ;;  %v6072_v4 = vld [vmem:[#allocation266_spill] sm:$0xff] }
 0x158   :  { %v1133_v44 = vmul.f32 %v1095_v2, %v6070_v23  ;;  %v1134_v29 = vmul.f32 %v1096_v28, %v3465_v31  ;;  %v1135_v32 = vmul.f32 %v1097_v11, %v6071_v56  ;;  %v1136_v48 = vmul.f32 %v1098_v30, %v6072_v4  ;;  %v6073_v33 = vld [vmem:[#allocation267_spill] sm:$0xff]  ;;  %v6074_v45 = vld [vmem:[#allocation268_spill] sm:$0xff]  ;;  %v6075_v52 = vld [vmem:[#allocation158_spill] sm:$0xff] }
 0x159   :  { %v1137_v8 = vmul.f32 %v1099_v37, %v6073_v33  ;;  %v1138_v19 = vmul.f32 %v1100_v17, %v6074_v45  ;;  %v1139_v51 = vadd.f32 %v1101_v22, %v6075_v52  ;;  %v6076_v62 = vld [vmem:[#allocation162_spill] sm:$0xff]  ;;  %v6077_v38 = vld [vmem:[#allocation164_spill] sm:$0xff]  ;;  %v6078_v13 = vld [vmem:[#allocation165_spill] sm:$0xff]  ;;  %vm1636_vm7 = vcmask 1043456  }
 0x15a   :  { %v1140_v63 = vadd.f32 %v1102_v55, %v6076_v62  ;;  %v1141_v7 = vadd.f32 %v1103_v53, %v6077_v38  ;;  %v1142_v57 = vadd.f32 %v1104_v54, %v6078_v13  ;;  %v6079_v49 = vld [vmem:[#allocation22_spill] sm:$0xff]  ;;  %v6080_v23 = vld [vmem:[#allocation167_spill] sm:$0xff]  ;;  %v6082_v30 = vld [vmem:[#allocation168_spill] sm:$0xff] }
 0x15b   :  { %v1143_v2 = vadd.f32 %v1105_v5, %v6079_v49  ;;  %v4435_v28 = vadd.f32 %v1106_v41, %v6080_v23  ;;  %v6081_v11 = vld [vmem:[#allocation23_spill] sm:$0xff]  ;;  %v4441_v37 = vadd.f32 %v1108_v10, %v6082_v30  ;;  %v6083_v17 = vld [vmem:[#allocation24_spill] sm:$0xff]  ;;  %v6084_v52 = vld [vmem:[#allocation169_spill] sm:$0xff] }
 0x15c   :  { %v4438_v56 = vadd.f32 %v1107_v14, %v6081_v11  ;;  %v4444_v33 = vadd.f32 %v1109_v40, %v6083_v17  ;;  %v4447_v62 = vadd.f32 %v1110_v50, %v6084_v52  ;;  %v6085_v38 = vld [vmem:[#allocation25_spill] sm:$0xff]  ;;  %v6086_v13 = vld [vmem:[#allocation172_spill] sm:$0xff]  ;;  %v6087_v55 = vld [vmem:[#allocation26_spill] sm:$0xff] }
 0x15d   :  { %v4450_v22 = vadd.f32 %v1111_v60, %v6085_v38  ;;  %v4453_v49 = vadd.f32 %v1112_v6, %v6086_v13  ;;  %v4456_v53 = vadd.f32 %v1113_v39, %v6087_v55  ;;  %v6088_v54 = vld [vmem:[#allocation173_spill] sm:$0xff]  ;;  %v6089_v41 = vld [vmem:[#allocation27_spill] sm:$0xff]  ;;  %v6091_v50 = vld [vmem:[#allocation180_spill] sm:$0xff]  ;;  %v1178_v55 = vsub.f32 1.0, %v1140_v63 }
 0x15e   :  { %v4459_v5 = vadd.f32 %v1114_v16, %v6088_v54  ;;  %v4462_v14 = vadd.f32 %v1115_v26, %v6089_v41  ;;  %v6090_v10 = vld [vmem:[#allocation175_spill] sm:$0xff]  ;;  %v4468_v23 = vadd.f32 %v1117_v20, %v6091_v50  ;;  %v6092_v60 = vld [vmem:[#allocation177_spill] sm:$0xff]  ;;  %v6095_v16 = vld [vmem:[#allocation30_spill] sm:$0xff]  ;;  %v1177_v20 = vsub.f32 1.0, %v1139_v51 }
 0x15f   :  { %v4465_v40 = vadd.f32 %v1116_v12, %v6090_v10  ;;  %v4471_v11 = vadd.f32 %v1118_v34, %v6092_v60  ;;  %v6093_v6 = vld [vmem:[#allocation29_spill] sm:$0xff]  ;;  %v4480_v52 = vadd.f32 %v1121_v0, %v6095_v16  ;;  %v6096_v26 = vld [vmem:[#allocation186_spill] sm:$0xff]  ;;  %v6097_v12 = vld [vmem:[#allocation31_spill] sm:$0xff]  ;;  %v4507_v51 = vadd.f32 %v1130_v43, %v4292_v25 }
 0x160   :  { %v4474_v30 = vadd.f32 %v1119_v47, %v6093_v6  ;;  %v6094_v39 = vld [vmem:[#allocation181_spill] sm:$0xff]  ;;  %v4483_v38 = vadd.f32 %v1122_v27, %v6096_v26  ;;  %v4486_v13 = vadd.f32 %v1123_v24, %v6097_v12  ;;  %v6100_v10 = vld [vmem:[#allocation191_spill] sm:$0xff]  ;;  %v4504_v24 = vadd.f32 %v1129_v61, %v4282_v3 }
 0x161   :  { %v4477_v17 = vadd.f32 %v1120_v15, %v6094_v39  ;;  %v6098_v54 = vld [vmem:[#allocation189_spill] sm:$0xff]  ;;  %v4495_v15 = vadd.f32 %v1126_v46, %v6100_v10  ;;  %v6103_v46 = vld [vmem:[#allocation188_spill] sm:$0xff]  ;;  %v6105_v39 = vld [vmem:[#allocation35_spill] sm:$0xff]  ;;  %v1180_v3 = vsub.f32 1.0, %v1142_v57  ;;  %v1215_v61 = vmul.f32 %v1177_v20, %v1177_v20 }
 0x162   :  { %v4489_v34 = vadd.f32 %v1124_v1, %v6098_v54  ;;  %v6099_v41 = vld [vmem:[#allocation185_spill] sm:$0xff]  ;;  %v4510_v1 = vadd.f32 %v1131_v36, %v4309_v58  ;;  %v4516_v63 = vadd.f32 %v1133_v44, %v6103_v46  ;;  %v4522_v16 = vadd.f32 %v1135_v32, %v6105_v39  ;;  %v6106_v43 = vld [vmem:[#allocation195_spill] sm:$0xff]  ;;  %v6107_v58 = vld [vmem:[#allocation36_spill] sm:$0xff] }
 0x163   :  { %v4492_v47 = vadd.f32 %v1125_v18, %v6099_v41  ;;  %v6101_v50 = vld [vmem:[#allocation33_spill] sm:$0xff]  ;;  %v4513_v18 = vadd.f32 %v1132_v59, %v4318_v9  ;;  %v1216_v25 = vmul.f32 %v1178_v55, %v1178_v55  ;;  %v4525_v26 = vadd.f32 %v1136_v48, %v6106_v43  ;;  %v6108_v9 = vld [vmem:[#allocation184_spill] sm:$0xff]  ;;  %v6109_v44 = vld [vmem:[#allocation190_spill] sm:$0xff] }
 0x164   :  { %v4498_v0 = vadd.f32 %v1127_v42, %v6101_v50  ;;  %v6102_v60 = vld [vmem:[#allocation193_spill] sm:$0xff]  ;;  %v6104_v42 = vld [vmem:[#allocation194_spill] sm:$0xff]  ;;  %v4528_v36 = vadd.f32 %v1137_v8, %v6107_v58  ;;  %v1329_v59 = vmul.f32 0.75, %v6108_v9  ;;  %v1330_v12 = vmul.f32 0.75, %v6109_v44  ;;  %v6110_v54 = vld [vmem:[#allocation196_spill] sm:$0xff] }
 0x165   :  { %v4501_v27 = vadd.f32 %v1128_v35, %v6102_v60  ;;  %v4519_v6 = vadd.f32 %v1134_v29, %v6104_v42  ;;  %v1179_v35 = vsub.f32 1.0, %v1141_v7  ;;  %v4533_v29 = vadd.f32 %v1138_v19, %v6110_v54  ;;  %v6112_v48 = vld [vmem:[#allocation192_spill] sm:$0xff]  ;;  %v6113_v10 = vld [vmem:[#allocation231_spill] sm:$0xff]  ;;  %v6118_v9 = vld [vmem:[#allocation233_spill] sm:$0xff] }
 0x166   :  { %v1181_v7 = vsub.f32 1.0, %v1143_v2  ;;  %v1182_v32 = vsub.f32 1.0, %v4435_v28  ;;  %v1183_v57 = vsub.f32 1.0, %v4438_v56  ;;  %v1184_v20 = vsub.f32 1.0, %v4441_v37  ;;  %v6114_v46 = vld [vmem:[#allocation107_spill] sm:$0xff]  ;;  %v6116_v19 = vld [vmem:[#allocation104_spill] sm:$0xff] }
 0x167   :  { %6111 = vst [vmem:[#allocation37_spill] sm:$0xff] %v4533_v29  ;;  %v1217_v55 = vmul.f32 %v1179_v35, %v1179_v35  ;;  %v1293_v41 = vmul.f32 0.25, %v6112_v48  ;;  %v1331_v8 = vmul.f32 0.75, %v6113_v10  ;;  %v1185_v50 = vsub.f32 1.0, %v4444_v33  ;;  %v1946_v58 = vld [vmem:[#allocation5 + $0x18] sm:$0xff]  ;;  %v6119_v44 = vld [vmem:[#allocation157_spill] sm:$0xff] }
 0x168   :  { %v1218_v60 = vmul.f32 %v1180_v3, %v1180_v3  ;;  %v6115_v42 = vsub.f32 0.0, %v6114_v46  ;;  %v6117_v43 = vsub.f32 0.0, %v6116_v19  ;;  %v1294_v28 = vmul.f32 0.25, %v1946_v58  ;;  %v6120_v35 = vld [vmem:[#allocation160_spill] sm:$0xff]  ;;  %v6121_v46 = vld [vmem:[#allocation109_spill] sm:$0xff] }
 0x169   :  { %v1332_v56 = vmul.f32 0.75, %v6118_v9  ;;  %v1367_v37 = vadd.f32 %v1329_v59, %v6119_v44  ;;  %v1368_v54 = vadd.f32 %v1330_v12, %v6120_v35  ;;  %v1186_v48 = vsub.f32 1.0, %v4447_v62  ;;  %v1947_v19 = vld [vmem:[#allocation5 + $0x20] sm:$0xff]  ;;  %v6124_v44 = vld [vmem:[#allocation106_spill] sm:$0xff] }
 0x16a   :  { %v1253_v39 = vmul.f32 %v1215_v61, %v6115_v42  ;;  %v1254_v2 = vmul.f32 %v1216_v25, %v6117_v43  ;;  %v1187_v10 = vsub.f32 1.0, %v4450_v22  ;;  %v1188_v33 = vsub.f32 1.0, %v4453_v49  ;;  %v6123_v43 = vld [vmem:[#allocation235_spill] sm:$0xff]  ;;  %v1948_v62 = vld [vmem:[#allocation5 + $0x28] sm:$0xff]  ;;  %v6126_v22 = vld [vmem:[#allocation236_spill] sm:$0xff] }
 0x16b   :  { %v1219_v3 = vmul.f32 %v1181_v7, %v1181_v7  ;;  %v6122_v61 = vsub.f32 0.0, %v6121_v46  ;;  %v1295_v25 = vmul.f32 0.25, %v1947_v19  ;;  %v1333_v58 = vmul.f32 0.75, %v6123_v43  ;;  %v6127_v19 = vld [vmem:[#allocation110_spill] sm:$0xff]  ;;  %v6129_v9 = vld [vmem:[#allocation237_spill] sm:$0xff] }
 0x16c   :  { %v1369_v4 = vadd.f32 %v1331_v8, %v1293_v41  ;;  %v1220_v59 = vmul.f32 %v1182_v32, %v1182_v32  ;;  %v6125_v12 = vsub.f32 0.0, %v6124_v44  ;;  %v1296_v45 = vmul.f32 0.25, %v1948_v62  ;;  %v1949_v43 = vld [vmem:[#allocation5 + $0x30] sm:$0xff] }
 0x16d   :  { %v1255_v42 = vmul.f32 %v1217_v55, %v6122_v61  ;;  %v1334_v31 = vmul.f32 0.75, %v6126_v22  ;;  %v1370_v49 = vadd.f32 %v1332_v56, %v1294_v28  ;;  %v1405_v7 = vmul.f32 %v1367_v37, %v1253_v39  ;;  %v6130_v28 = vld [vmem:[#allocation108_spill] sm:$0xff] }
 0x16e   :  { %v1256_v35 = vmul.f32 %v1218_v60, %v6125_v12  ;;  %v1406_v29 = vmul.f32 %v1368_v54, %v1254_v2  ;;  %v1221_v61 = vmul.f32 %v1183_v57, %v1183_v57  ;;  %v6128_v41 = vsub.f32 0.0, %v6127_v19  ;;  %v1950_v56 = vld [vmem:[#allocation5 + $0x38] sm:$0xff]  ;;  %v6132_v54 = vld [vmem:[#allocation238_spill] sm:$0xff] }
 0x16f   :  { %v1297_v32 = vmul.f32 0.25, %v1949_v43  ;;  %v1335_v44 = vmul.f32 0.75, %v6129_v9  ;;  %v1371_v60 = vadd.f32 %v1333_v58, %v1295_v25  ;;  %v1407_v12 = vmul.f32 %v1369_v4, %v1255_v42  ;;  %v6133_v43 = vld [vmem:[#allocation112_spill] sm:$0xff]  ;;  %v6135_v58 = vld [vmem:[#allocation239_spill] sm:$0xff] }
 0x170   :  { %v1257_v8 = vmul.f32 %v1219_v3, %v6128_v41  ;;  %v1222_v22 = vmul.f32 %v1184_v20, %v1184_v20  ;;  %v6131_v39 = vsub.f32 0.0, %v6130_v28  ;;  %v1298_v37 = vmul.f32 0.25, %v1950_v56  ;;  %v1951_v4 = vld [vmem:[#allocation5 + $0x40] sm:$0xff] }
 0x171   :  { %v1336_v46 = vmul.f32 0.75, %v6132_v54  ;;  %v1372_v57 = vadd.f32 %v1334_v31, %v1296_v45  ;;  %v1408_v55 = vmul.f32 %v1370_v49, %v1256_v35  ;;  %v1600_v19 = vadd.f32 %v1406_v29, %v1405_v7  ;;  %v6136_v54 = vld [vmem:[#allocation111_spill] sm:$0xff]  ;;  %v1952_v29 = vld [vmem:[#allocation5 + $0x48] sm:$0xff]  ;;  %v6138_v49 = vld [vmem:[#allocation240_spill] sm:$0xff] }
 0x172   :  { %v1258_v2 = vmul.f32 %v1220_v59, %v6131_v39  ;;  %v1193_v3 = vsub.f32 1.0, %v4468_v23  ;;  %v1223_v41 = vmul.f32 %v1185_v50, %v1185_v50  ;;  %v6134_v9 = vsub.f32 0.0, %v6133_v43 }
 0x173   :  { %v1299_v42 = vmul.f32 0.25, %v1951_v4  ;;  %v1337_v20 = vmul.f32 0.75, %v6135_v58  ;;  %v1373_v62 = vadd.f32 %v1335_v44, %v1297_v32  ;;  %v1409_v28 = vmul.f32 %v1371_v60, %v1257_v8  ;;  %v6139_v58 = vld [vmem:[#allocation113_spill] sm:$0xff]  ;;  %v1953_v44 = vld [vmem:[#allocation5 + $0x50] sm:$0xff] }
 0x174   :  { %v1259_v25 = vmul.f32 %v1221_v61, %v6134_v9  ;;  %v1601_v59 = vadd.f32 %v1600_v19, %v1407_v12  ;;  %v1194_v39 = vsub.f32 1.0, %v4471_v11  ;;  %v1224_v56 = vmul.f32 %v1186_v48, %v1186_v48  ;;  %v6141_v12 = vld [vmem:[#allocation241_spill] sm:$0xff] }
 0x175   :  { %v6137_v31 = vsub.f32 0.0, %v6136_v54  ;;  %v1300_v35 = vmul.f32 0.25, %v1952_v29  ;;  %v1338_v50 = vmul.f32 0.75, %v6138_v49  ;;  %v1374_v7 = vadd.f32 %v1336_v46, %v1298_v37  ;;  %v6142_v49 = vld [vmem:[#allocation114_spill] sm:$0xff] }
 0x176   :  { %v1410_v43 = vmul.f32 %v1372_v57, %v1258_v2  ;;  %v1602_v61 = vadd.f32 %v1601_v59, %v1408_v55  ;;  %v1195_v9 = vsub.f32 1.0, %v4474_v30  ;;  %v1225_v4 = vmul.f32 %v1187_v10, %v1187_v10  ;;  %v1954_v55 = vld [vmem:[#allocation5 + $0x58] sm:$0xff]  ;;  %v6144_v57 = vld [vmem:[#allocation242_spill] sm:$0xff] }
 0x177   :  { %v1260_v45 = vmul.f32 %v1222_v22, %v6137_v31  ;;  %v6140_v32 = vsub.f32 0.0, %v6139_v58  ;;  %v1301_v60 = vmul.f32 0.25, %v1953_v44  ;;  %v1339_v48 = vmul.f32 0.75, %v6141_v12 }
 0x178   :  { %v1375_v19 = vadd.f32 %v1337_v20, %v1299_v42  ;;  %v1411_v54 = vmul.f32 %v1373_v62, %v1259_v25  ;;  %v1603_v22 = vadd.f32 %v1602_v61, %v1409_v28  ;;  %v1196_v31 = vsub.f32 1.0, %v4477_v17  ;;  %v6146_v25 = vld [vmem:[#allocation116_spill] sm:$0xff]  ;;  %v6148_v61 = vld [vmem:[#allocation243_spill] sm:$0xff] }
 0x179   :  { %v1261_v8 = vmul.f32 %v1223_v41, %v6140_v32  ;;  %v1226_v29 = vmul.f32 %v1188_v33, %v1188_v33  ;;  %v6143_v46 = vsub.f32 0.0, %v6142_v49  ;;  %v1302_v37 = vmul.f32 0.25, %v1954_v55  ;;  %v1955_v33 = vld [vmem:[#allocation5 + $0x60] sm:$0xff] }
 0x17a   :  { %v1340_v10 = vmul.f32 0.75, %v6144_v57  ;;  %v1376_v59 = vadd.f32 %v1338_v50, %v1300_v35  ;;  %v1412_v58 = vmul.f32 %v1374_v7, %v1260_v45  ;;  %v1604_v41 = vadd.f32 %v1603_v22, %v1410_v43  ;;  %v6150_v7 = vld [vmem:[#allocation117_spill] sm:$0xff]  ;;  %v6152_v57 = vld [vmem:[#allocation244_spill] sm:$0xff] }
 0x17b   :  { %v1262_v2 = vmul.f32 %v1224_v56, %v6143_v46  ;;  %v1197_v32 = vsub.f32 1.0, %v4480_v52  ;;  %v6145_v44 = vsub.f32 1.0, %v4456_v53  ;;  %v6147_v42 = vsub.f32 0.0, %v6146_v25  ;;  %v1956_v22 = vld [vmem:[#allocation5 + $0x68] sm:$0xff] }
 0x17c   :  { %v1303_v28 = vmul.f32 0.25, %v1955_v33  ;;  %v1341_v56 = vmul.f32 0.75, %v6148_v61  ;;  %v1377_v12 = vadd.f32 %v1339_v48, %v1301_v60  ;;  %v1413_v49 = vmul.f32 %v1375_v19, %v1261_v8  ;;  %v6154_v19 = vld [vmem:[#allocation119_spill] sm:$0xff]  ;;  %v6156_v61 = vld [vmem:[#allocation245_spill] sm:$0xff] }
 0x17d   :  { %v1227_v62 = vmul.f32 %v6145_v44, %v6145_v44  ;;  %v1263_v20 = vmul.f32 %v1225_v4, %v6147_v42  ;;  %v1605_v46 = vadd.f32 %v1604_v41, %v1411_v54  ;;  %v1198_v35 = vsub.f32 1.0, %v4483_v38  ;;  %v1957_v41 = vld [vmem:[#allocation5 + $0x70] sm:$0xff] }
 0x17e   :  { %v6149_v45 = vsub.f32 1.0, %v4459_v5  ;;  %v6151_v53 = vsub.f32 0.0, %v6150_v7  ;;  %v1304_v55 = vmul.f32 0.25, %v1956_v22  ;;  %v1342_v4 = vmul.f32 0.75, %v6152_v57  ;;  %v6160_v57 = vld [vmem:[#allocation246_spill] sm:$0xff] }
 0x17f   :  { %v1378_v44 = vadd.f32 %v1340_v10, %v1302_v37  ;;  %v1414_v25 = vmul.f32 %v1376_v59, %v1262_v2  ;;  %v1606_v42 = vadd.f32 %v1605_v46, %v1412_v58  ;;  %v1199_v60 = vsub.f32 1.0, %v4486_v13  ;;  %v6158_v59 = vld [vmem:[#allocation120_spill] sm:$0xff] }
 0x180   :  { %v1228_v50 = vmul.f32 %v6149_v45, %v6149_v45  ;;  %v1264_v43 = vmul.f32 %v1226_v29, %v6151_v53  ;;  %v6153_v8 = vsub.f32 1.0, %v4462_v14  ;;  %v6155_v5 = vsub.f32 0.0, %v6154_v19  ;;  %v1958_v46 = vld [vmem:[#allocation5 + $0x78] sm:$0xff] }
 0x181   :  { %v1305_v33 = vmul.f32 0.25, %v1957_v41  ;;  %v1343_v29 = vmul.f32 0.75, %v6156_v61  ;;  %v1379_v45 = vadd.f32 %v1341_v56, %v1303_v28  ;;  %v1415_v7 = vmul.f32 %v1377_v12, %v1263_v20  ;;  %v6161_v56 = vld [vmem:[#allocation122_spill] sm:$0xff]  ;;  %v6163_v41 = vld [vmem:[#allocation247_spill] sm:$0xff] }
 0x182   :  { %v1229_v48 = vmul.f32 %v6153_v8, %v6153_v8  ;;  %v1265_v54 = vmul.f32 %v1227_v62, %v6155_v5  ;;  %v1607_v53 = vadd.f32 %v1606_v42, %v1413_v49  ;;  %v1200_v37 = vsub.f32 1.0, %v4489_v34  ;;  %v1959_v49 = vld [vmem:[#allocation5 + $0x80] sm:$0xff] }
 0x183   :  { %v6157_v2 = vsub.f32 1.0, %v4465_v40  ;;  %v6159_v14 = vsub.f32 0.0, %v6158_v59  ;;  %v1306_v22 = vmul.f32 0.25, %v1958_v46  ;;  %v1344_v62 = vmul.f32 0.75, %v6160_v57 }
 0x184   :  { %v1380_v8 = vadd.f32 %v1342_v4, %v1304_v55  ;;  %v1416_v19 = vmul.f32 %v1378_v44, %v1264_v43  ;;  %v1608_v5 = vadd.f32 %v1607_v53, %v1414_v25  ;;  %v1201_v28 = vsub.f32 1.0, %v4492_v47  ;;  %v6164_v4 = vld [vmem:[#allocation123_spill] sm:$0xff]  ;;  %v6166_v53 = vld [vmem:[#allocation248_spill] sm:$0xff] }
 0x185   :  { %v1230_v10 = vmul.f32 %v6157_v2, %v6157_v2  ;;  %v1266_v58 = vmul.f32 %v1228_v50, %v6159_v14  ;;  %v1231_v20 = vmul.f32 %v1193_v3, %v1193_v3  ;;  %v6162_v40 = vsub.f32 0.0, %v6161_v56  ;;  %v1960_v3 = vld [vmem:[#allocation5 + $0x88] sm:$0xff] }
 0x186   :  { %v1307_v42 = vmul.f32 0.25, %v1959_v49  ;;  %v1345_v50 = vmul.f32 0.75, %v6163_v41  ;;  %v1381_v61 = vadd.f32 %v1343_v29, %v1305_v33  ;;  %v1417_v2 = vmul.f32 %v1379_v45, %v1265_v54  ;;  %v6167_v29 = vld [vmem:[#allocation125_spill] sm:$0xff]  ;;  %v6172_v41 = vld [vmem:[#allocation250_spill] sm:$0xff] }
 0x187   :  { %v1267_v12 = vmul.f32 %v1229_v48, %v6162_v40  ;;  %v1609_v59 = vadd.f32 %v1608_v5, %v1415_v7  ;;  %v1202_v55 = vsub.f32 1.0, %v4495_v15  ;;  %v1232_v43 = vmul.f32 %v1194_v39, %v1194_v39  ;;  %v1961_v39 = vld [vmem:[#allocation5 + $0x90] sm:$0xff]  ;;  %v6169_v5 = vld [vmem:[#allocation249_spill] sm:$0xff] }
 0x188   :  { %v6165_v23 = vsub.f32 0.0, %v6164_v4  ;;  %v1308_v25 = vmul.f32 0.25, %v1960_v3  ;;  %v1346_v48 = vmul.f32 0.75, %v6166_v53  ;;  %v1382_v14 = vadd.f32 %v1344_v62, %v1306_v22  ;;  %v6170_v62 = vld [vmem:[#allocation126_spill] sm:$0xff]  ;;  %v6175_v3 = vld [vmem:[#allocation251_spill] sm:$0xff] }
 0x189   :  { %v1418_v46 = vmul.f32 %v1380_v8, %v1266_v58  ;;  %v1610_v57 = vadd.f32 %v1609_v59, %v1416_v19  ;;  %v1203_v33 = vsub.f32 1.0, %v4498_v0  ;;  %v1233_v54 = vmul.f32 %v1195_v9, %v1195_v9  ;;  %v1962_v9 = vld [vmem:[#allocation5 + $0x98] sm:$0xff] }
 0x18a   :  { %v1268_v44 = vmul.f32 %v1230_v10, %v6165_v23  ;;  %v6168_v11 = vsub.f32 0.0, %v6167_v29  ;;  %v1309_v7 = vmul.f32 0.25, %v1961_v39  ;;  %v1347_v10 = vmul.f32 0.75, %v6169_v5 }
 0x18b   :  { %v1383_v56 = vadd.f32 %v1345_v50, %v1307_v42  ;;  %v1419_v40 = vmul.f32 %v1381_v61, %v1267_v12  ;;  %v1611_v49 = vadd.f32 %v1610_v57, %v1417_v2  ;;  %v1204_v22 = vsub.f32 1.0, %v4501_v27  ;;  %v6173_v50 = vld [vmem:[#allocation128_spill] sm:$0xff] }
 0x18c   :  { %v1269_v45 = vmul.f32 %v1231_v20, %v6168_v11  ;;  %v1234_v58 = vmul.f32 %v1196_v31, %v1196_v31  ;;  %v6171_v30 = vsub.f32 0.0, %v6170_v62  ;;  %v1310_v19 = vmul.f32 0.25, %v1962_v9  ;;  %v1963_v31 = vld [vmem:[#allocation5 + $0xa0] sm:$0xff] }
 0x18d   :  { %v1348_v20 = vmul.f32 0.75, %v6172_v41  ;;  %v1384_v59 = vadd.f32 %v1346_v48, %v1308_v25  ;;  %v1420_v4 = vmul.f32 %v1382_v14, %v1268_v44  ;;  %v1612_v23 = vadd.f32 %v1611_v49, %v1418_v46  ;;  %v6176_v48 = vld [vmem:[#allocation129_spill] sm:$0xff]  ;;  %v6178_v11 = vld [vmem:[#allocation252_spill] sm:$0xff] }
 0x18e   :  { %v1270_v8 = vmul.f32 %v1232_v43, %v6171_v30  ;;  %v1205_v42 = vsub.f32 1.0, %v4504_v24  ;;  %v1235_v12 = vmul.f32 %v1197_v32, %v1197_v32  ;;  %v6174_v17 = vsub.f32 0.0, %v6173_v50  ;;  %v1964_v32 = vld [vmem:[#allocation5 + $0xa8] sm:$0xff]  ;;  %v6181_v41 = vld [vmem:[#allocation132_spill] sm:$0xff] }
 0x18f   :  { %v1311_v2 = vmul.f32 0.25, %v1963_v31  ;;  %v1349_v43 = vmul.f32 0.75, %v6175_v3  ;;  %v1385_v53 = vadd.f32 %v1347_v10, %v1309_v7  ;;  %v1421_v57 = vmul.f32 %v1383_v56, %v1269_v45  ;;  %v6179_v10 = vld [vmem:[#allocation131_spill] sm:$0xff]  ;;  %v6184_v31 = vld [vmem:[#allocation134_spill] sm:$0xff] }
 0x190   :  { %v1271_v61 = vmul.f32 %v1233_v54, %v6174_v17  ;;  %v1613_v29 = vadd.f32 %v1612_v23, %v1419_v40  ;;  %v1206_v25 = vsub.f32 1.0, %v4507_v51  ;;  %v1236_v44 = vmul.f32 %v1198_v35, %v1198_v35  ;;  %v1965_v35 = vld [vmem:[#allocation5 + $0xb0] sm:$0xff] }
 0x191   :  { %v6177_v52 = vsub.f32 0.0, %v6176_v48  ;;  %v1312_v46 = vmul.f32 0.25, %v1964_v32  ;;  %v1350_v54 = vmul.f32 0.75, %v6178_v11  ;;  %v1386_v39 = vadd.f32 %v1348_v20, %v1310_v19  ;;  %v6189_v11 = vld [vmem:[#allocation256_spill] sm:$0xff] }
 0x192   :  { %v1422_v5 = vmul.f32 %v1384_v59, %v1270_v8  ;;  %v1614_v49 = vadd.f32 %v1613_v29, %v1420_v4  ;;  %v1207_v7 = vsub.f32 1.0, %v4510_v1  ;;  %v1237_v45 = vmul.f32 %v1199_v60, %v1199_v60  ;;  %v1966_v60 = vld [vmem:[#allocation5 + $0xb8] sm:$0xff]  ;;  %v6183_v4 = vld [vmem:[#allocation254_spill] sm:$0xff] }
 0x193   :  { %v1272_v14 = vmul.f32 %v1234_v58, %v6177_v52  ;;  %v6180_v38 = vsub.f32 0.0, %v6179_v10  ;;  %v1313_v40 = vmul.f32 0.25, %v1965_v35  ;;  %v1351_v58 = vmul.f32 0.75, %v6060_v21  ;;  %v6190_v10 = vld [vmem:[#allocation137_spill] sm:$0xff] }
 0x194   :  { %v1387_v62 = vadd.f32 %v1349_v43, %v1311_v2  ;;  %v1423_v30 = vmul.f32 %v1385_v53, %v1271_v61  ;;  %v1615_v9 = vadd.f32 %v1614_v49, %v1421_v57  ;;  %v1208_v19 = vsub.f32 1.0, %v4513_v18  ;;  %v6186_v43 = vld [vmem:[#allocation255_spill] sm:$0xff]  ;;  %v6192_v35 = vld [vmem:[#allocation257_spill] sm:$0xff] }
 0x195   :  { %v1273_v56 = vmul.f32 %v1235_v12, %v6180_v38  ;;  %v1238_v8 = vmul.f32 %v1200_v37, %v1200_v37  ;;  %v6182_v13 = vsub.f32 0.0, %v6181_v41  ;;  %v1314_v59 = vmul.f32 0.25, %v1966_v60  ;;  %v1967_v37 = vld [vmem:[#allocation5 + $0xc0] sm:$0xff] }
 0x196   :  { %v1352_v23 = vmul.f32 0.75, %v6183_v4  ;;  %v1388_v12 = vadd.f32 %v1350_v54, %v1312_v46  ;;  %v1424_v50 = vmul.f32 %v1386_v39, %v1272_v14  ;;  %v1616_v17 = vadd.f32 %v1615_v9, %v1422_v5  ;;  %v6187_v14 = vld [vmem:[#allocation135_spill] sm:$0xff] }
 0x197   :  { %v1274_v20 = vmul.f32 %v1236_v44, %v6182_v13  ;;  %v1209_v21 = vsub.f32 1.0, %v4516_v63  ;;  %v1239_v61 = vmul.f32 %v1201_v28, %v1201_v28  ;;  %v6185_v34 = vsub.f32 0.0, %v6184_v31  ;;  %v1968_v28 = vld [vmem:[#allocation5 + $0xc8] sm:$0xff]  ;;  %v6198_v31 = vld [vmem:[#allocation259_spill] sm:$0xff] }
 0x198   :  { %v1315_v3 = vmul.f32 0.25, %v1967_v37  ;;  %v1353_v53 = vmul.f32 0.75, %v6186_v43  ;;  %v1389_v57 = vadd.f32 %v1351_v58, %v1313_v40  ;;  %v1425_v29 = vmul.f32 %v1387_v62, %v1273_v56  ;;  %v6199_v43 = vld [vmem:[#allocation37_spill] sm:$0xff] }
 0x199   :  { %v1275_v2 = vmul.f32 %v1237_v45, %v6185_v34  ;;  %v1617_v44 = vadd.f32 %v1616_v17, %v1423_v30  ;;  %v1210_v48 = vsub.f32 1.0, %v4519_v6  ;;  %v1240_v52 = vmul.f32 %v1202_v55, %v1202_v55  ;;  %v1969_v55 = vld [vmem:[#allocation5 + $0xd0] sm:$0xff] }
 0x19a   :  { %v6188_v47 = vsub.f32 0.0, %v6187_v14  ;;  %v1316_v46 = vmul.f32 0.25, %v1968_v28  ;;  %v1354_v54 = vmul.f32 0.75, %v6189_v11  ;;  %v1390_v39 = vadd.f32 %v1352_v23, %v1314_v59  ;;  %v6202_v14 = vld [vmem:[#allocation260_spill] sm:$0xff] }
 0x19b   :  { %v1426_v5 = vmul.f32 %v1388_v12, %v1274_v20  ;;  %v1618_v49 = vadd.f32 %v1617_v44, %v1424_v50  ;;  %v1211_v45 = vsub.f32 1.0, %v4522_v16  ;;  %v1241_v6 = vmul.f32 %v1203_v33, %v1203_v33  ;;  %v1970_v33 = vld [vmem:[#allocation5 + $0xd8] sm:$0xff]  ;;  %v6195_v20 = vld [vmem:[#allocation258_spill] sm:$0xff] }
 0x19c   :  { %v1276_v32 = vmul.f32 %v1238_v8, %v6188_v47  ;;  %v6191_v15 = vsub.f32 0.0, %v6190_v10  ;;  %v1317_v56 = vmul.f32 0.25, %v1969_v55  ;;  %v1355_v40 = vmul.f32 0.75, %v6192_v35  ;;  %v6193_v8 = vld [vmem:[#allocation138_spill] sm:$0xff]  ;;  %v6196_v50 = vld [vmem:[#allocation140_spill] sm:$0xff] }
 0x19d   :  { %v1391_v58 = vadd.f32 %v1353_v53, %v1315_v3  ;;  %v1427_v62 = vmul.f32 %v1389_v57, %v1275_v2  ;;  %v1619_v30 = vadd.f32 %v1618_v49, %v1425_v29  ;;  %v1212_v9 = vsub.f32 1.0, %v4525_v26  ;;  %v6200_v29 = vld [vmem:[#allocation141_spill] sm:$0xff] }
 0x19e   :  { %v1277_v38 = vmul.f32 %v1239_v61, %v6191_v15  ;;  %v1242_v16 = vmul.f32 %v1204_v22, %v1204_v22  ;;  %v6194_v0 = vsub.f32 0.0, %v6193_v8  ;;  %v1318_v13 = vmul.f32 0.25, %v1970_v33  ;;  %v1971_v22 = vld [vmem:[#allocation5 + $0xe0] sm:$0xff]  ;;  %v6209_v33 = vld [vmem:[#allocation146_spill] sm:$0xff] }
 0x19f   :  { %v1356_v60 = vmul.f32 0.75, %v6195_v20  ;;  %v1392_v59 = vadd.f32 %v1354_v54, %v1316_v46  ;;  %v1428_v4 = vmul.f32 %v1390_v39, %v1276_v32  ;;  %v1620_v23 = vadd.f32 %v1619_v30, %v1426_v5  ;;  %v6203_v54 = vld [vmem:[#allocation143_spill] sm:$0xff] }
 0x1a0   :  { %v1278_v41 = vmul.f32 %v1240_v52, %v6194_v0  ;;  %v1213_v12 = vsub.f32 1.0, %v4528_v36  ;;  %v1243_v26 = vmul.f32 %v1205_v42, %v1205_v42  ;;  %v6197_v27 = vsub.f32 0.0, %v6196_v50  ;;  %v1972_v42 = vld [vmem:[#allocation5 + $0xe8] sm:$0xff]  ;;  %v1973_v5 = vld [vmem:[#allocation5 + $0xf0] sm:$0xff]  ;;  %v1980_v36 = vld [vmem:[#allocation5 + $0x120] sm:$0xff] }
 0x1a1   :  { %v1319_v61 = vmul.f32 0.25, %v1971_v22  ;;  %v1357_v34 = vmul.f32 0.75, %v6198_v31  ;;  %v1393_v2 = vadd.f32 %v1355_v40, %v1317_v56  ;;  %v1429_v37 = vmul.f32 %v1391_v58, %v1277_v38  ;;  %v1974_v40 = vld [vmem:[#allocation5 + $0xf8] sm:$0xff]  ;;  %v6208_v58 = vld [vmem:[#allocation262_spill] sm:$0xff] }
 0x1a2   :  { %v1279_v17 = vmul.f32 %v1241_v6, %v6197_v27  ;;  %v1621_v3 = vadd.f32 %v1620_v23, %v1427_v62  ;;  %v1214_v53 = vsub.f32 1.0, %v6199_v43  ;;  %v1244_v57 = vmul.f32 %v1206_v25, %v1206_v25  ;;  %v6205_v6 = vld [vmem:[#allocation261_spill] sm:$0xff]  ;;  %v6212_v50 = vld [vmem:[#allocation147_spill] sm:$0xff] }
 0x1a3   :  { %v6201_v24 = vsub.f32 0.0, %v6200_v29  ;;  %v1320_v52 = vmul.f32 0.25, %v1972_v42  ;;  %v1358_v47 = vmul.f32 0.75, %v6202_v14  ;;  %v1394_v32 = vadd.f32 %v1356_v60, %v1318_v13  ;;  %v1975_v60 = vld [vmem:[#allocation5 + $0x100] sm:$0xff]  ;;  %v1976_v22 = vld [vmem:[#allocation5 + $0x108] sm:$0xff]  ;;  %v1977_v29 = vld [vmem:[#allocation5 + $0x110] sm:$0xff] }
 0x1a4   :  { %v1430_v28 = vmul.f32 %v1392_v59, %v1278_v41  ;;  %v1622_v46 = vadd.f32 %v1621_v3, %v1428_v4  ;;  %v1245_v11 = vmul.f32 %v1207_v7, %v1207_v7  ;;  %v1246_v51 = vmul.f32 %v1208_v19, %v1208_v19  ;;  %v6206_v7 = vld [vmem:[#allocation144_spill] sm:$0xff]  ;;  %v6211_v59 = vld [vmem:[#allocation263_spill] sm:$0xff]  ;;  %v6215_v3 = vld [vmem:[#allocation149_spill] sm:$0xff] }
 0x1a5   :  { %v1280_v44 = vmul.f32 %v1242_v16, %v6201_v24  ;;  %v6204_v25 = vsub.f32 0.0, %v6203_v54  ;;  %v1321_v49 = vmul.f32 0.25, %v1973_v5  ;;  %v1359_v10 = vmul.f32 0.75, %v6205_v6  ;;  %v6218_v14 = vld [vmem:[#allocation268_spill] sm:$0xff]  ;;  %v6221_v6 = vld [vmem:[#allocation266_spill] sm:$0xff] }
 0x1a6   :  { %v1395_v15 = vadd.f32 %v1357_v34, %v1319_v61  ;;  %v1431_v38 = vmul.f32 %v1393_v2, %v1279_v17  ;;  %v1623_v55 = vadd.f32 %v1622_v46, %v1429_v37  ;;  %v1247_v1 = vmul.f32 %v1209_v21, %v1209_v21  ;;  %v6214_v34 = vld [vmem:[#allocation264_spill] sm:$0xff] }
 0x1a7   :  { %v1281_v39 = vmul.f32 %v1243_v26, %v6204_v25  ;;  %v1248_v56 = vmul.f32 %v1210_v48, %v1210_v48  ;;  %v6207_v35 = vsub.f32 0.0, %v6206_v7  ;;  %v1322_v19 = vmul.f32 0.25, %v1974_v40 }
 0x1a8   :  { %v1360_v62 = vmul.f32 0.75, %v6208_v58  ;;  %v1396_v30 = vadd.f32 %v1358_v47, %v1320_v52  ;;  %v1432_v16 = vmul.f32 %v1394_v32, %v1280_v44  ;;  %v1624_v8 = vadd.f32 %v1623_v55, %v1430_v28  ;;  %v1978_v44 = vld [vmem:[#allocation5 + $0x128] sm:$0xf] }
 0x1a9   :  { %v1282_v18 = vmul.f32 %v1244_v57, %v6207_v35  ;;  %v1249_v0 = vmul.f32 %v1211_v45, %v1211_v45  ;;  %v1250_v41 = vmul.f32 %v1212_v9, %v1212_v9  ;;  %v6210_v13 = vsub.f32 0.0, %v6209_v33  ;;  %v6217_v52 = vld [vmem:[#allocation265_spill] sm:$0xff] }
 0x1aa   :  { %v1323_v63 = vmul.f32 0.25, %v1975_v60  ;;  %v1361_v21 = vmul.f32 0.75, %v6211_v59  ;;  %v1397_v48 = vadd.f32 %v1359_v10, %v1321_v49  ;;  %v1433_v4 = vmul.f32 %v1395_v15, %v1281_v39  ;;  %v1979_v39 = vld [vmem:[#allocation5 + $0x118] sm:$0xff] }
 0x1ab   :  { %v1283_v20 = vmul.f32 %v1245_v11, %v6210_v13  ;;  %v1625_v23 = vadd.f32 %v1624_v8, %v1431_v38  ;;  %v1252_v26 = vmul.f32 %v1214_v53, %v1214_v53  ;;  %v6213_v27 = vsub.f32 0.0, %v6212_v50  ;;  %v6227_v13 = vld [vmem:[#allocation153_spill] sm:$0xff] }
 0x1ac   :  { %v1324_v61 = vmul.f32 0.25, %v1976_v22  ;;  %v1445_v31 = vlaneseq  ;;  %v1362_v45 = vmul.f32 0.75, %v6214_v34  ;;  %v1398_v9 = vadd.f32 %v1360_v62, %v1322_v19 }
 0x1ad   :  { %v1284_v17 = vmul.f32 %v1246_v51, %v6213_v27  ;;  %v1434_v2 = vmul.f32 %v1396_v30, %v1282_v18  ;;  %v1626_v37 = vadd.f32 %v1625_v23, %v1432_v16  ;;  %v6216_v43 = vsub.f32 0.0, %v6215_v3  ;;  %v6219_v51 = vld [vmem:[#allocation150_spill] sm:$0xff]  ;;  %v6224_v18 = vld [vmem:[#allocation159_spill] sm:$0xff] }
 0x1ae   :  { %v1325_v24 = vmul.f32 0.25, %v1977_v29  ;;  %v1328_v42 = vmul.f32 0.25, %v1978_v44  ;;  %v1363_v53 = vmul.f32 0.75, %v6217_v52  ;;  %v1366_v47 = vmul.f32 0.75, %v6218_v14 }
 0x1af   :  { %v1285_v57 = vmul.f32 %v1247_v1, %v6216_v43  ;;  %v1399_v32 = vadd.f32 %v1361_v21, %v1323_v63  ;;  %v1435_v28 = vmul.f32 %v1397_v48, %v1283_v20  ;;  %v1627_v46 = vadd.f32 %v1626_v37, %v1433_v4  ;;  %v6222_v1 = vld [vmem:[#allocation152_spill] sm:$0xff]  ;;  %v6229_v48 = vld [vmem:[#allocation155_spill] sm:$0xff] }
 0x1b0   :  { %v1251_v11 = vmul.f32 %v1213_v12, %v1213_v12  ;;  %v6220_v54 = vsub.f32 0.0, %v6219_v51  ;;  %v1326_v5 = vmul.f32 0.25, %v1979_v39  ;;  %v1446_v49 = vshrl.u32 %v1445_v31, 7  ;;  %v6226_v12 = vld [vmem:[#allocation267_spill] sm:$0xff] }
 0x1b1   :  { %v1364_v10 = vmul.f32 0.75, %v6221_v6  ;;  %v1400_v15 = vadd.f32 %v1362_v45, %v1324_v61  ;;  %v1436_v38 = vmul.f32 %v1398_v9, %v1284_v17  ;;  %v1628_v55 = vadd.f32 %v1627_v46, %v1434_v2 }
 0x1b2   :  { %v1286_v25 = vmul.f32 %v1248_v56, %v6220_v54  ;;  %v6223_v7 = vsub.f32 0.0, %v6222_v1  ;;  %v6225_v40 = vsub.f32 0.0, %v6224_v18  ;;  %v1327_v58 = vmul.f32 0.25, %v1980_v36 }
 0x1b3   :  { %v1365_v62 = vmul.f32 0.75, %v6226_v12  ;;  %v1401_v30 = vadd.f32 %v1363_v53, %v1325_v24  ;;  %v1404_v56 = vadd.f32 %v1366_v47, %v1328_v42  ;;  %v1437_v16 = vmul.f32 %v1399_v32, %v1285_v57  ;;  %v1599_v24 = vld [vmem:[#allocation7] sm:$0x1] }
 0x1b4   :  { %v1287_v35 = vmul.f32 %v1249_v0, %v6223_v7  ;;  %v1290_v19 = vmul.f32 %v1252_v26, %v6225_v40  ;;  %v1629_v8 = vadd.f32 %v1628_v55, %v1435_v28  ;;  %v1483_v33 = vadd.s32 296, %v1446_v49 }
 0x1b5   :  { %v6228_v20 = vsub.f32 0.0, %v6227_v13  ;;  %v1402_v63 = vadd.f32 %v1364_v10, %v1326_v5  ;;  %v1438_v59 = vmul.f32 %v1400_v15, %v1286_v25  ;;  %v6230_v0 = vsub.f32 0.0, %v6229_v48 }
 0x1b6   :  { %v1630_v21 = vadd.f32 %v1629_v8, %v1436_v38  ;;  %v1403_v23 = vadd.f32 %v1365_v62, %v1327_v58  ;;  %v1439_v26 = vmul.f32 %v1401_v30, %v1287_v35  ;;  %v1442_v50 = vmul.f32 %v1404_v56, %v1290_v19 }
 0x1b7   :  { %v1288_v60 = vmul.f32 %v1250_v41, %v6228_v20  ;;  %v1289_v4 = vmul.f32 %v1251_v11, %v6230_v0  ;;  %vm1560_vm6 = vcmp.lt.s32.totalorder %v1483_v33, 300 }
 0x1b8   :  { %v1631_v27 = vadd.f32 %v1630_v21, %v1437_v16  ;;  %v1598_v31 = vsel %vm1560_vm6, %v1442_v50, 0.0 }
 0x1b9   :  { %v1440_v17 = vmul.f32 %v1402_v63, %v1288_v60  ;;  %v1441_v61 = vmul.f32 %v1403_v23, %v1289_v4  ;;  %v1637_v9 = vsel %vm1636_vm7, %v1598_v31, 0.0 }
 0x1ba   :  { %v1632_v22 = vadd.f32 %v1631_v27, %v1438_v59 }
 0x1bc   :  { %v1633_v34 = vadd.f32 %v1632_v22, %v1439_v26 }
 0x1be   :  { %v1634_v45 = vadd.f32 %v1633_v34, %v1440_v17 }
 0x1c0   :  { %v1635_v41 = vadd.f32 %v1634_v45, %v1441_v61 }
 0x1c2   :  { %v1638_v2 = vadd.f32 %v1637_v9, %v1635_v41 }
 0x1c4   :  { %v1639_v37 = vrot.slane %v1638_v2, 4 }
 0x1c6   :  { %v1640_v3 = vadd.f32 %v1639_v37, %v1638_v2 }
 0x1c8   :  { %v1641_v43 = vrot.slane %v1640_v3, 2 }
 0x1ca   :  { %v1642_v57 = vadd.f32 %v1641_v43, %v1640_v3 }
 0x1cc   :  { %v1643_v29 = vrot.slane %v1642_v57, 1 }
 0x1ce   :  { %v1644_v44 = vadd.f32 %v1643_v29, %v1642_v57 }
 0x1d0   :  { %v1645_v42 = vadd.f32 %v1644_v44, %v1599_v24 }
 0x1d2   :  { %1646 = vst [vmem:[#allocation7] sm:$0x1] %v1645_v42 }
 0x1d3   :  { %2036 = shalt.err (!%p2033_p6)
}
 0x1d4   :  { %s2037_s18 = scalar_lea.hbm %s4764_s3, 16 }
 0x1d5   :  { %p2038_p7 = scmp.ne.s32.totalorder %s4764_s3, %s2037_s18  ;;  %p2041_p8 = scmp.lt.u32.totalorder %s2037_s18, %s4764_s3 }
 0x1d7   :  { %p2043_p9 = pnand %p2041_p8, %p2038_p7 }
 0x1d9   :  { %2046 = shalt.err (!%p2043_p9)
}
 0x1da   :  { %1656 = dma.vmem_to_hbm [thread:$0]  %s1654_s13, 16, %s4764_s3, [#allocation4]  }
 0x1db   :  { %2051 = dma.done.wait [#allocation4], 16  }
 0x1dc   :  { %2052 = vsyncadd [#allocation4], 4294967280 }
 0x1dd   :  { %1660 = vsyncpa [#allocation3], 1 }
 0x1de   :  { %1661 = vsyncpa [#allocation6], 1 }
 0x1df   :  { %1662 = vsyncpa [#allocation4], 1 }

</bundles_post_ra>
